<compile_context>
chip_gen: v7x
topology: tpu7x:2x2x1
jax: 0.10.0
libtpu: 0.0.40
codegen_flags: <defaults>
</compile_context>

<pallas_src>
import numpy as np
import jax
import jax.numpy as jnp
from jax.experimental import pallas as pl
from jax.experimental.pallas import tpu as pltpu

# ---------------- configuration (stand-in for argparse args) ----------------
CNN_FILTER = 8        # args.cnn_filter
CNN_KERNEL = 3        # args.cnn_kernelsize
FC_DIM = 32           # args.fc_dim
USE_DROPOUT = False   # args.dropout (eval-mode dropout is identity anyway)
BN_EPS = 1e-5

BATCH = 2
IN_C, IN_H, IN_W = 10, 16, 14                 # gives 32 * 10 * 8 = 2560

C1, C2, C3 = CNN_FILTER, CNN_FILTER * 2, CNN_FILTER * 4          # 8, 16, 32
H3 = IN_H - 3 * (CNN_KERNEL - 1)              # 10  (conv3 output height)
W3 = IN_W - 3 * (CNN_KERNEL - 1)              # 8   (conv3 output width)
FLAT = C3 * H3 * W3                           # 2560
FC_K = W3 * C3                                # 256 = compressed FC band depth

NROWS = BATCH * IN_H                          # 32 frame rows computed per layer
PAD_ROWS = 40                                 # scratch rows (mult of 8, >= 34)
M_FC = 24                                     # FC acc rows (mult of 8, > 16)

# Input-frame lane offset of channel c (channel-major input lanes).  A block is
# bumped to the next 128-lane tile if it would straddle a tile boundary, so the
# in-kernel re-layout stores never cross a lane tile.
_IN_OFFS = []
_off = 0
for _c in range(IN_C):
    if _off // 128 != (_off + IN_W - 1) // 128:
        _off = (_off // 128 + 1) * 128
    _IN_OFFS.append(_off)
    _off += IN_W
IN_LANES = _off                               # 142 (lanes 126..127 are a gap)

# Bias packing: all four folded bias vectors live in one [1, 1024] f32 buffer
# at 128-aligned lane offsets.
B1_OFF, B2_OFF, B3_OFF, BFC_OFF = 0, 128, 384, 896
BIAS_LANES = 1024


# ------------------------------ Pallas kernel -------------------------------
def _elu(z):
    # F.elu(alpha=1).  The negative branch is clamped before exp so the
    # unselected branch never produces inf (exp runs on the EUP slot).
    return jnp.where(z > 0.0, z, jnp.exp(jnp.minimum(z, 0.0)) - 1.0)


def cnn_fused_kernel(x_ref, w1_ref, w2_ref, w3_ref, wfc_ref, bias_ref, o_ref,
                     xin_ref, a1_ref, a2_ref, a3_ref):
    """Whole network in one kernel; all activations stay in VMEM.

    Garbage-containment invariant (activation scratches are NOT zeroed):
      * the input frame is fully zero-initialized (cheap, ~23 KB), so conv1
        rows 0..31 are finite;
      * stale VMEM is only ever read from scratch rows >= 32, and its effect
        stays confined to frame rows >= 30 (a1), >= 28 (a2/a3);
      * the FC taps read only conv3 frame rows 0..9 and 16..25 (clean) and the
        first 256 lanes (all written), so the emitted outputs never see it.
    """

    # ---- NCHW -> frame re-layout, entirely in VMEM (no host prologue) ------
    xin_ref[...] = jnp.zeros((PAD_ROWS, IN_LANES), jnp.float32)
    for b in range(BATCH):                                     # static unroll
        for c in range(IN_C):
            r = (b * IN_C + c) * IN_H
            xin_ref[b * IN_H:(b + 1) * IN_H,
                    _IN_OFFS[c]:_IN_OFFS[c] + IN_W] = x_ref[r:r + IN_H, :]

    # ---- conv{1,2,3} + BatchNorm + ELU as banded row-shifted matmuls -------
    def band_layer(in_ref, w_ref, bias, out_ref):
        acc = jnp.zeros((NROWS, w_ref.shape[-1]), jnp.float32)
        for dy in range(CNN_KERNEL):                           # static unroll
            lhs = in_ref[pl.ds(dy, NROWS), :].astype(jnp.bfloat16)
            acc = acc + jnp.dot(lhs, w_ref[dy],
                                preferred_element_type=jnp.float32)
        out_ref[pl.ds(0, NROWS), :] = _elu(acc + bias)         # rows 0..31 only

    band_layer(xin_ref, w1_ref, bias_ref[:, B1_OFF:B1_OFF + IN_W * C1], a1_ref)
    band_layer(a1_ref, w2_ref, bias_ref[:, B2_OFF:B2_OFF + IN_W * C2], a2_ref)
    band_layer(a2_ref, w3_ref, bias_ref[:, B3_OFF:B3_OFF + IN_W * C3], a3_ref)

    # ---- FC1 + BatchNorm1d + ELU: H3 row taps over the compressed 256-lane
    # prefix of the conv3 frame (two exact 128-lane tiles).
    acc = jnp.zeros((M_FC, FC_DIM), jnp.float32)
    for dy in range(H3):                                       # static unroll
        lhs = a3_ref[pl.ds(dy, M_FC), pl.ds(0, FC_K)].astype(jnp.bfloat16)
        acc = acc + jnp.dot(lhs, wfc_ref[dy],
                            preferred_element_type=jnp.float32)
    z = _elu(acc + bias_ref[:, BFC_OFF:BFC_OFF + FC_DIM])
    # Valid FC rows sit at y == 0 of each sample (frame rows 0 and 16); emit
    # them with a single 2-row store.
    o_ref[...] = jnp.concatenate([z[0:1, :], z[IN_H:IN_H + 1, :]], axis=0)


def _vmem_spec():
    return pl.BlockSpec(memory_space=pltpu.MemorySpace.VMEM)


@jax.jit
def cnn_forward(x_nchw, kp):
    # Row-major NCHW -> [B*C*H, W] is a free (bitcast) reshape; the actual
    # layout change into frame form happens inside the kernel, so there is no
    # separate XLA transpose/pad launch before the pallas_call.
    x2 = x_nchw.reshape(BATCH * IN_C * IN_H, IN_W).astype(jnp.float32)
    return pl.pallas_call(
        cnn_fused_kernel,
        out_shape=jax.ShapeDtypeStruct((BATCH, FC_DIM), jnp.float32),
        in_specs=[_vmem_spec()] * 6,
        out_specs=_vmem_spec(),
        scratch_shapes=[
            pltpu.VMEM((PAD_ROWS, IN_LANES), jnp.float32),     # input frame
            pltpu.VMEM((PAD_ROWS, IN_W * C1), jnp.float32),    # act1 frame
            pltpu.VMEM((PAD_ROWS, IN_W * C2), jnp.float32),    # act2 frame
            pltpu.VMEM((PAD_ROWS, IN_W * C3), jnp.float32),    # act3 frame
        ],
    )(x2, kp["w1"], kp["w2"], kp["w3"], kp["wfc"], kp["bias"])


# --------------------- offline parameter preparation -------------------------
def _fold_bn(bias, gamma, beta, mean, var):
    s = gamma / np.sqrt(var + BN_EPS)
    return s, (bias - mean) * s + beta


def _band_conv1(w, scale):
    """conv1: channel-major input lanes (_IN_OFFS[ci] + xi) -> x-major output
    lanes (xo*Cout + co).  Returns KH banded matrices [IN_LANES, IN_W*Cout]."""
    kh, kw, cin, cout = w.shape
    ws = w * scale[None, None, None, :]
    band = np.zeros((kh, IN_LANES, IN_W * cout), np.float32)
    for dy in range(kh):
        for xo in range(IN_W):
            for dx in range(kw):
                xi = xo + dx
                if xi < IN_W:
                    for ci in range(cin):
                        band[dy, _IN_OFFS[ci] + xi,
                             xo * cout:(xo + 1) * cout] = ws[dy, dx, ci]
    return band


def _band_conv(w, scale, width):
    """conv2/3: x-major lanes on both sides -> KH banded [width*Cin, width*Cout]."""
    kh, kw, cin, cout = w.shape
    ws = w * scale[None, None, None, :]
    band = np.zeros((kh, width * cin, width * cout), np.float32)
    for dy in range(kh):
        for xo in range(width):
            for dx in range(kw):
                xi = xo + dx
                if xi < width:
                    band[dy, xi * cin:(xi + 1) * cin,
                         xo * cout:(xo + 1) * cout] = ws[dy, dx]
    return band


def _band_fc(wfc, scale):
    """[2560, FC_DIM] FC weight (rows in PyTorch NCHW flatten order c*80+y*8+x)
    -> compressed [H3, W3*C3, FC_DIM] row taps over the conv3 frame prefix."""
    ws = wfc * scale[None, :]
    band = np.zeros((H3, FC_K, FC_DIM), np.float32)
    for y in range(H3):
        for x in range(W3):
            for c in range(C3):
                band[y, x * C3 + c, :] = ws[c * (H3 * W3) + y * W3 + x, :]
    return band


def prepare_params(params):
    """One-time transform: fold conv bias + BatchNorm into the weights, build
    the banded bf16 weight matrices and pack all biases into one f32 buffer."""
    kp = {}
    bias = np.zeros((1, BIAS_LANES), np.float32)
    offs = {1: B1_OFF, 2: B2_OFF, 3: B3_OFF}
    for i in (1, 2, 3):
        p = {k: np.asarray(v) for k, v in params[f"conv{i}"].items()}
        s, b = _fold_bn(p["b"], p["gamma"], p["beta"], p["mean"], p["var"])
        band = _band_conv1(p["w"], s) if i == 1 else _band_conv(p["w"], s, IN_W)
        kp[f"w{i}"] = jnp.asarray(band, dtype=jnp.bfloat16)
        t = np.tile(b, IN_W).astype(np.float32)
        bias[0, offs[i]:offs[i] + t.size] = t
    fc = {k: np.asarray(v) for k, v in params["fc"].items()}
    s, b = _fold_bn(fc["b"], fc["gamma"], fc["beta"], fc["mean"], fc["var"])
    kp["wfc"] = jnp.asarray(_band_fc(fc["w"], s), dtype=jnp.bfloat16)
    bias[0, BFC_OFF:BFC_OFF + FC_DIM] = b.astype(np.float32)
    kp["bias"] = jnp.asarray(bias)
    return kp


# ---------------------------- parameter creation -----------------------------
def make_params(key):
    ks = iter(jax.random.split(key, 32))
    params = {}
    cins = [IN_C, C1, C2]
    couts = [C1, C2, C3]
    for i, (ci, co) in enumerate(zip(cins, couts), start=1):
        params[f"conv{i}"] = dict(
            w=0.05 * jax.random.normal(next(ks), (CNN_KERNEL, CNN_KERNEL, ci, co), jnp.float32),
            b=0.1 * jax.random.normal(next(ks), (co,), jnp.float32),
            gamma=jax.random.uniform(next(ks), (co,), jnp.float32, 0.5, 1.5),
            beta=0.1 * jax.random.normal(next(ks), (co,), jnp.float32),
            mean=0.1 * jax.random.normal(next(ks), (co,), jnp.float32),
            var=jax.random.uniform(next(ks), (co,), jnp.float32, 0.5, 1.5),
        )
    params["fc"] = dict(
        w=0.02 * jax.random.normal(next(ks), (FLAT, FC_DIM), jnp.float32),
        b=0.1 * jax.random.normal(next(ks), (FC_DIM,), jnp.float32),
        gamma=jax.random.uniform(next(ks), (FC_DIM,), jnp.float32, 0.5, 1.5),
        beta=0.1 * jax.random.normal(next(ks), (FC_DIM,), jnp.float32),
        mean=0.1 * jax.random.normal(next(ks), (FC_DIM,), jnp.float32),
        var=jax.random.uniform(next(ks), (FC_DIM,), jnp.float32, 0.5, 1.5),
    )
    return params


# ------------------------------ pure-JAX reference ---------------------------
def reference_forward(x_nchw, params):
    x = x_nchw.astype(jnp.float32)
    for i in (1, 2, 3):
        p = params[f"conv{i}"]
        w_oihw = jnp.transpose(p["w"], (3, 2, 0, 1))          # [Cout, Cin, KH, KW]
        x = jax.lax.conv_general_dilated(
            x, w_oihw, window_strides=(1, 1), padding="VALID",
            dimension_numbers=("NCHW", "OIHW", "NCHW"))
        x = x + p["b"][None, :, None, None]
        s = p["gamma"] / jnp.sqrt(p["var"] + BN_EPS)
        x = (x - p["mean"][None, :, None, None]) * s[None, :, None, None] \
            + p["beta"][None, :, None, None]
        x = jax.nn.elu(x)
    x = x.reshape(x.shape[0], -1)                              # [B, 2560] (NCHW order)
    fc = params["fc"]
    x = x @ fc["w"] + fc["b"]
    s = fc["gamma"] / jnp.sqrt(fc["var"] + BN_EPS)
    x = (x - fc["mean"]) * s + fc["beta"]
    return jax.nn.elu(x)


# ------------------------------------ main ------------------------------------
if __name__ == "__main__":
    key = jax.random.PRNGKey(0)
    k_x, k_p = jax.random.split(key)
    x = jax.random.normal(k_x, (BATCH, IN_C, IN_H, IN_W), jnp.float32)   # NCHW input
    params = make_params(k_p)
    kparams = prepare_params(params)        # offline: BN fold + bf16 banded weights
    # TODO(synk): nn.Dropout skipped — args.dropout is False / eval-mode identity.

    out = jax.block_until_ready(cnn_forward(x, kparams))
    assert out.shape == (BATCH, FC_DIM), out.shape

    ref = jax.block_until_ready(reference_forward(x, params))
    max_err = float(jnp.max(jnp.abs(out - ref)))
    # Tolerance reflects the bf16 weight/activation quantization in the kernel
    # (the reference is pure f32); f32 MXU accumulation keeps the error small.
    assert jnp.allclose(out, ref, rtol=5e-2, atol=5e-2), max_err

    print("KERNEL_OK")
</pallas_src>

<mosaic_0001>
module attributes {stable_mosaic.version = 11 : i64} {
  func.func @cnn_fused_kernel(%arg0: memref<320x14xf32, #tpu.memory_space<vmem>>, %arg1: memref<3x142x112xbf16, #tpu.memory_space<vmem>>, %arg2: memref<3x112x224xbf16, #tpu.memory_space<vmem>>, %arg3: memref<3x224x448xbf16, #tpu.memory_space<vmem>>, %arg4: memref<10x256x32xbf16, #tpu.memory_space<vmem>>, %arg5: memref<1x1024xf32, #tpu.memory_space<vmem>>, %arg6: memref<2x32xf32, #tpu.memory_space<vmem>>, %arg7: memref<40x142xf32, #tpu.memory_space<vmem>>, %arg8: memref<40x112xf32, #tpu.memory_space<vmem>>, %arg9: memref<40x224xf32, #tpu.memory_space<vmem>>, %arg10: memref<40x448xf32, #tpu.memory_space<vmem>>) attributes {dimension_semantics = [], scalar_prefetch = 0 : i64, scratch_operands = 4 : i64, tpu.core_type = #tpu.core_type<tc>} {
    %cst = arith.constant 0.000000e+00 : f32
    %0 = vector.broadcast %cst : f32 to vector<40x142xf32>
    %c0 = arith.constant 0 : index
    %c0_0 = arith.constant 0 : index
    %1 = vector.load %arg7[%c0, %c0_0] : memref<40x142xf32, #tpu.memory_space<vmem>>, vector<40x142xf32>
    tpu.vector_store %arg7[%c0, %c0_0], %0 {strides = array<i32>} : memref<40x142xf32, #tpu.memory_space<vmem>>, vector<40x142xf32>,
    %c0_1 = arith.constant 0 : index
    %c0_2 = arith.constant 0 : index
    %2 = vector.load %arg0[%c0_1, %c0_2] : memref<320x14xf32, #tpu.memory_space<vmem>>, vector<16x14xf32>
    %c0_3 = arith.constant 0 : index
    %c0_4 = arith.constant 0 : index
    %3 = vector.load %arg7[%c0_3, %c0_4] : memref<40x142xf32, #tpu.memory_space<vmem>>, vector<16x14xf32>
    tpu.vector_store %arg7[%c0_3, %c0_4], %2 {strides = array<i32>} : memref<40x142xf32, #tpu.memory_space<vmem>>, vector<16x14xf32>,
    %c16 = arith.constant 16 : index
    %c0_5 = arith.constant 0 : index
    %4 = vector.load %arg0[%c16, %c0_5] : memref<320x14xf32, #tpu.memory_space<vmem>>, vector<16x14xf32>
    %c0_6 = arith.constant 0 : index
    %c14 = arith.constant 14 : index
    %5 = vector.load %arg7[%c0_6, %c14] : memref<40x142xf32, #tpu.memory_space<vmem>>, vector<16x14xf32>
    tpu.vector_store %arg7[%c0_6, %c14], %4 {strides = array<i32>} : memref<40x142xf32, #tpu.memory_space<vmem>>, vector<16x14xf32>,
    %c32 = arith.constant 32 : index
    %c0_7 = arith.constant 0 : index
    %6 = vector.load %arg0[%c32, %c0_7] : memref<320x14xf32, #tpu.memory_space<vmem>>, vector<16x14xf32>
    %c0_8 = arith.constant 0 : index
    %c28 = arith.constant 28 : index
    %7 = vector.load %arg7[%c0_8, %c28] : memref<40x142xf32, #tpu.memory_space<vmem>>, vector<16x14xf32>
    tpu.vector_store %arg7[%c0_8, %c28], %6 {strides = array<i32>} : memref<40x142xf32, #tpu.memory_space<vmem>>, vector<16x14xf32>,
    %c48 = arith.constant 48 : index
    %c0_9 = arith.constant 0 : index
    %8 = vector.load %arg0[%c48, %c0_9] : memref<320x14xf32, #tpu.memory_space<vmem>>, vector<16x14xf32>
    %c0_10 = arith.constant 0 : index
    %c42 = arith.constant 42 : index
    %9 = vector.load %arg7[%c0_10, %c42] : memref<40x142xf32, #tpu.memory_space<vmem>>, vector<16x14xf32>
    tpu.vector_store %arg7[%c0_10, %c42], %8 {strides = array<i32>} : memref<40x142xf32, #tpu.memory_space<vmem>>, vector<16x14xf32>,
    %c64 = arith.constant 64 : index
    %c0_11 = arith.constant 0 : index
    %10 = vector.load %arg0[%c64, %c0_11] : memref<320x14xf32, #tpu.memory_space<vmem>>, vector<16x14xf32>
    %c0_12 = arith.constant 0 : index
    %c56 = arith.constant 56 : index
    %11 = vector.load %arg7[%c0_12, %c56] : memref<40x142xf32, #tpu.memory_space<vmem>>, vector<16x14xf32>
    tpu.vector_store %arg7[%c0_12, %c56], %10 {strides = array<i32>} : memref<40x142xf32, #tpu.memory_space<vmem>>, vector<16x14xf32>,
    %c80 = arith.constant 80 : index
    %c0_13 = arith.constant 0 : index
    %12 = vector.load %arg0[%c80, %c0_13] : memref<320x14xf32, #tpu.memory_space<vmem>>, vector<16x14xf32>
    %c0_14 = arith.constant 0 : index
    %c70 = arith.constant 70 : index
    %13 = vector.load %arg7[%c0_14, %c70] : memref<40x142xf32, #tpu.memory_space<vmem>>, vector<16x14xf32>
    tpu.vector_store %arg7[%c0_14, %c70], %12 {strides = array<i32>} : memref<40x142xf32, #tpu.memory_space<vmem>>, vector<16x14xf32>,
    %c96 = arith.constant 96 : index
    %c0_15 = arith.constant 0 : index
    %14 = vector.load %arg0[%c96, %c0_15] : memref<320x14xf32, #tpu.memory_space<vmem>>, vector<16x14xf32>
    %c0_16 = arith.constant 0 : index
    %c84 = arith.constant 84 : index
    %15 = vector.load %arg7[%c0_16, %c84] : memref<40x142xf32, #tpu.memory_space<vmem>>, vector<16x14xf32>
    tpu.vector_store %arg7[%c0_16, %c84], %14 {strides = array<i32>} : memref<40x142xf32, #tpu.memory_space<vmem>>, vector<16x14xf32>,
    %c112 = arith.constant 112 : index
    %c0_17 = arith.constant 0 : index
    %16 = vector.load %arg0[%c112, %c0_17] : memref<320x14xf32, #tpu.memory_space<vmem>>, vector<16x14xf32>
    %c0_18 = arith.constant 0 : index
    %c98 = arith.constant 98 : index
    %17 = vector.load %arg7[%c0_18, %c98] : memref<40x142xf32, #tpu.memory_space<vmem>>, vector<16x14xf32>
    tpu.vector_store %arg7[%c0_18, %c98], %16 {strides = array<i32>} : memref<40x142xf32, #tpu.memory_space<vmem>>, vector<16x14xf32>,
    %c128 = arith.constant 128 : index
    %c0_19 = arith.constant 0 : index
    %18 = vector.load %arg0[%c128, %c0_19] : memref<320x14xf32, #tpu.memory_space<vmem>>, vector<16x14xf32>
    %c0_20 = arith.constant 0 : index
    %c112_21 = arith.constant 112 : index
    %19 = vector.load %arg7[%c0_20, %c112_21] : memref<40x142xf32, #tpu.memory_space<vmem>>, vector<16x14xf32>
    tpu.vector_store %arg7[%c0_20, %c112_21], %18 {strides = array<i32>} : memref<40x142xf32, #tpu.memory_space<vmem>>, vector<16x14xf32>,
    %c144 = arith.constant 144 : index
    %c0_22 = arith.constant 0 : index
    %20 = vector.load %arg0[%c144, %c0_22] : memref<320x14xf32, #tpu.memory_space<vmem>>, vector<16x14xf32>
    %c0_23 = arith.constant 0 : index
    %c128_24 = arith.constant 128 : index
    %21 = vector.load %arg7[%c0_23, %c128_24] : memref<40x142xf32, #tpu.memory_space<vmem>>, vector<16x14xf32>
    tpu.vector_store %arg7[%c0_23, %c128_24], %20 {strides = array<i32>} : memref<40x142xf32, #tpu.memory_space<vmem>>, vector<16x14xf32>,
    %c160 = arith.constant 160 : index
    %c0_25 = arith.constant 0 : index
    %22 = vector.load %arg0[%c160, %c0_25] : memref<320x14xf32, #tpu.memory_space<vmem>>, vector<16x14xf32>
    %c16_26 = arith.constant 16 : index
    %c0_27 = arith.constant 0 : index
    %23 = vector.load %arg7[%c16_26, %c0_27] : memref<40x142xf32, #tpu.memory_space<vmem>>, vector<16x14xf32>
    tpu.vector_store %arg7[%c16_26, %c0_27], %22 {strides = array<i32>} : memref<40x142xf32, #tpu.memory_space<vmem>>, vector<16x14xf32>,
    %c176 = arith.constant 176 : index
    %c0_28 = arith.constant 0 : index
    %24 = vector.load %arg0[%c176, %c0_28] : memref<320x14xf32, #tpu.memory_space<vmem>>, vector<16x14xf32>
    %c16_29 = arith.constant 16 : index
    %c14_30 = arith.constant 14 : index
    %25 = vector.load %arg7[%c16_29, %c14_30] : memref<40x142xf32, #tpu.memory_space<vmem>>, vector<16x14xf32>
    tpu.vector_store %arg7[%c16_29, %c14_30], %24 {strides = array<i32>} : memref<40x142xf32, #tpu.memory_space<vmem>>, vector<16x14xf32>,
    %c192 = arith.constant 192 : index
    %c0_31 = arith.constant 0 : index
    %26 = vector.load %arg0[%c192, %c0_31] : memref<320x14xf32, #tpu.memory_space<vmem>>, vector<16x14xf32>
    %c16_32 = arith.constant 16 : index
    %c28_33 = arith.constant 28 : index
    %27 = vector.load %arg7[%c16_32, %c28_33] : memref<40x142xf32, #tpu.memory_space<vmem>>, vector<16x14xf32>
    tpu.vector_store %arg7[%c16_32, %c28_33], %26 {strides = array<i32>} : memref<40x142xf32, #tpu.memory_space<vmem>>, vector<16x14xf32>,
    %c208 = arith.constant 208 : index
    %c0_34 = arith.constant 0 : index
    %28 = vector.load %arg0[%c208, %c0_34] : memref<320x14xf32, #tpu.memory_space<vmem>>, vector<16x14xf32>
    %c16_35 = arith.constant 16 : index
    %c42_36 = arith.constant 42 : index
    %29 = vector.load %arg7[%c16_35, %c42_36] : memref<40x142xf32, #tpu.memory_space<vmem>>, vector<16x14xf32>
    tpu.vector_store %arg7[%c16_35, %c42_36], %28 {strides = array<i32>} : memref<40x142xf32, #tpu.memory_space<vmem>>, vector<16x14xf32>,
    %c224 = arith.constant 224 : index
    %c0_37 = arith.constant 0 : index
    %30 = vector.load %arg0[%c224, %c0_37] : memref<320x14xf32, #tpu.memory_space<vmem>>, vector<16x14xf32>
    %c16_38 = arith.constant 16 : index
    %c56_39 = arith.constant 56 : index
    %31 = vector.load %arg7[%c16_38, %c56_39] : memref<40x142xf32, #tpu.memory_space<vmem>>, vector<16x14xf32>
    tpu.vector_store %arg7[%c16_38, %c56_39], %30 {strides = array<i32>} : memref<40x142xf32, #tpu.memory_space<vmem>>, vector<16x14xf32>,
    %c240 = arith.constant 240 : index
    %c0_40 = arith.constant 0 : index
    %32 = vector.load %arg0[%c240, %c0_40] : memref<320x14xf32, #tpu.memory_space<vmem>>, vector<16x14xf32>
    %c16_41 = arith.constant 16 : index
    %c70_42 = arith.constant 70 : index
    %33 = vector.load %arg7[%c16_41, %c70_42] : memref<40x142xf32, #tpu.memory_space<vmem>>, vector<16x14xf32>
    tpu.vector_store %arg7[%c16_41, %c70_42], %32 {strides = array<i32>} : memref<40x142xf32, #tpu.memory_space<vmem>>, vector<16x14xf32>,
    %c256 = arith.constant 256 : index
    %c0_43 = arith.constant 0 : index
    %34 = vector.load %arg0[%c256, %c0_43] : memref<320x14xf32, #tpu.memory_space<vmem>>, vector<16x14xf32>
    %c16_44 = arith.constant 16 : index
    %c84_45 = arith.constant 84 : index
    %35 = vector.load %arg7[%c16_44, %c84_45] : memref<40x142xf32, #tpu.memory_space<vmem>>, vector<16x14xf32>
    tpu.vector_store %arg7[%c16_44, %c84_45], %34 {strides = array<i32>} : memref<40x142xf32, #tpu.memory_space<vmem>>, vector<16x14xf32>,
    %c272 = arith.constant 272 : index
    %c0_46 = arith.constant 0 : index
    %36 = vector.load %arg0[%c272, %c0_46] : memref<320x14xf32, #tpu.memory_space<vmem>>, vector<16x14xf32>
    %c16_47 = arith.constant 16 : index
    %c98_48 = arith.constant 98 : index
    %37 = vector.load %arg7[%c16_47, %c98_48] : memref<40x142xf32, #tpu.memory_space<vmem>>, vector<16x14xf32>
    tpu.vector_store %arg7[%c16_47, %c98_48], %36 {strides = array<i32>} : memref<40x142xf32, #tpu.memory_space<vmem>>, vector<16x14xf32>,
    %c288 = arith.constant 288 : index
    %c0_49 = arith.constant 0 : index
    %38 = vector.load %arg0[%c288, %c0_49] : memref<320x14xf32, #tpu.memory_space<vmem>>, vector<16x14xf32>
    %c16_50 = arith.constant 16 : index
    %c112_51 = arith.constant 112 : index
    %39 = vector.load %arg7[%c16_50, %c112_51] : memref<40x142xf32, #tpu.memory_space<vmem>>, vector<16x14xf32>
    tpu.vector_store %arg7[%c16_50, %c112_51], %38 {strides = array<i32>} : memref<40x142xf32, #tpu.memory_space<vmem>>, vector<16x14xf32>,
    %c304 = arith.constant 304 : index
    %c0_52 = arith.constant 0 : index
    %40 = vector.load %arg0[%c304, %c0_52] : memref<320x14xf32, #tpu.memory_space<vmem>>, vector<16x14xf32>
    %c16_53 = arith.constant 16 : index
    %c128_54 = arith.constant 128 : index
    %41 = vector.load %arg7[%c16_53, %c128_54] : memref<40x142xf32, #tpu.memory_space<vmem>>, vector<16x14xf32>
    tpu.vector_store %arg7[%c16_53, %c128_54], %40 {strides = array<i32>} : memref<40x142xf32, #tpu.memory_space<vmem>>, vector<16x14xf32>,
    %c0_55 = arith.constant 0 : index
    %c0_56 = arith.constant 0 : index
    %42 = vector.load %arg5[%c0_55, %c0_56] : memref<1x1024xf32, #tpu.memory_space<vmem>>, vector<1x112xf32>
    %cst_57 = arith.constant 0.000000e+00 : f32
    %43 = vector.broadcast %cst_57 : f32 to vector<32x112xf32>
    %c0_58 = arith.constant 0 : index
    %c0_59 = arith.constant 0 : index
    %44 = vector.load %arg7[%c0_58, %c0_59] : memref<40x142xf32, #tpu.memory_space<vmem>>, vector<32x142xf32>
    %45 = arith.truncf %44 : vector<32x142xf32> to vector<32x142xbf16>
    %c0_60 = arith.constant 0 : index
    %c0_61 = arith.constant 0 : index
    %c0_62 = arith.constant 0 : index
    %46 = vector.load %arg1[%c0_60, %c0_61, %c0_62] : memref<3x142x112xbf16, #tpu.memory_space<vmem>>, vector<1x142x112xbf16>
    %47 = vector.shape_cast %46 : vector<1x142x112xbf16> to vector<142x112xbf16>
    %cst_63 = arith.constant dense<0.000000e+00> : vector<32x112xf32>
    %48 = tpu.matmul %45, %47, %cst_63 {dimension_numbers = #tpu.dot_dimension_numbers<[1], [0], [0], [1], [0, 0, 1, 1], [], []>} : vector<32x142xbf16>, vector<142x112xbf16>, vector<32x112xf32> -> vector<32x112xf32>
    %49 = arith.addf %43, %48 : vector<32x112xf32>
    %c1 = arith.constant 1 : index
    %c0_64 = arith.constant 0 : index
    %50 = vector.load %arg7[%c1, %c0_64] : memref<40x142xf32, #tpu.memory_space<vmem>>, vector<32x142xf32>
    %51 = arith.truncf %50 : vector<32x142xf32> to vector<32x142xbf16>
    %c1_65 = arith.constant 1 : index
    %c0_66 = arith.constant 0 : index
    %c0_67 = arith.constant 0 : index
    %52 = vector.load %arg1[%c1_65, %c0_66, %c0_67] : memref<3x142x112xbf16, #tpu.memory_space<vmem>>, vector<1x142x112xbf16>
    %53 = vector.shape_cast %52 : vector<1x142x112xbf16> to vector<142x112xbf16>
    %cst_68 = arith.constant dense<0.000000e+00> : vector<32x112xf32>
    %54 = tpu.matmul %51, %53, %cst_68 {dimension_numbers = #tpu.dot_dimension_numbers<[1], [0], [0], [1], [0, 0, 1, 1], [], []>} : vector<32x142xbf16>, vector<142x112xbf16>, vector<32x112xf32> -> vector<32x112xf32>
    %55 = arith.addf %49, %54 : vector<32x112xf32>
    %c2 = arith.constant 2 : index
    %c0_69 = arith.constant 0 : index
    %56 = vector.load %arg7[%c2, %c0_69] : memref<40x142xf32, #tpu.memory_space<vmem>>, vector<32x142xf32>
    %57 = arith.truncf %56 : vector<32x142xf32> to vector<32x142xbf16>
    %c2_70 = arith.constant 2 : index
    %c0_71 = arith.constant 0 : index
    %c0_72 = arith.constant 0 : index
    %58 = vector.load %arg1[%c2_70, %c0_71, %c0_72] : memref<3x142x112xbf16, #tpu.memory_space<vmem>>, vector<1x142x112xbf16>
    %59 = vector.shape_cast %58 : vector<1x142x112xbf16> to vector<142x112xbf16>
    %cst_73 = arith.constant dense<0.000000e+00> : vector<32x112xf32>
    %60 = tpu.matmul %57, %59, %cst_73 {dimension_numbers = #tpu.dot_dimension_numbers<[1], [0], [0], [1], [0, 0, 1, 1], [], []>} : vector<32x142xbf16>, vector<142x112xbf16>, vector<32x112xf32> -> vector<32x112xf32>
    %61 = arith.addf %55, %60 : vector<32x112xf32>
    %62 = vector.broadcast %42 : vector<1x112xf32> to vector<32x112xf32>
    %63 = arith.addf %61, %62 : vector<32x112xf32>
    %cst_74 = arith.constant 0.000000e+00 : f32
    %64 = vector.broadcast %cst_74 : f32 to vector<32x112xf32>
    %65 = arith.cmpf ogt, %63, %64 : vector<32x112xf32>
    %cst_75 = arith.constant 0.000000e+00 : f32
    %66 = vector.broadcast %cst_75 : f32 to vector<32x112xf32>
    %67 = arith.minimumf %63, %66 : vector<32x112xf32>
    %68 = math.exp %67 : vector<32x112xf32>
    %cst_76 = arith.constant 1.000000e+00 : f32
    %69 = vector.broadcast %cst_76 : f32 to vector<32x112xf32>
    %70 = arith.subf %68, %69 : vector<32x112xf32>
    %71 = arith.select %65, %63, %70 : vector<32x112xi1>, vector<32x112xf32>
    %c0_77 = arith.constant 0 : index
    %c0_78 = arith.constant 0 : index
    %72 = vector.load %arg8[%c0_77, %c0_78] : memref<40x112xf32, #tpu.memory_space<vmem>>, vector<32x112xf32>
    tpu.vector_store %arg8[%c0_77, %c0_78], %71 {strides = array<i32>} : memref<40x112xf32, #tpu.memory_space<vmem>>, vector<32x112xf32>,
    %c0_79 = arith.constant 0 : index
    %c128_80 = arith.constant 128 : index
    %73 = vector.load %arg5[%c0_79, %c128_80] : memref<1x1024xf32, #tpu.memory_space<vmem>>, vector<1x224xf32>
    %cst_81 = arith.constant 0.000000e+00 : f32
    %74 = vector.broadcast %cst_81 : f32 to vector<32x224xf32>
    %c0_82 = arith.constant 0 : index
    %c0_83 = arith.constant 0 : index
    %75 = vector.load %arg8[%c0_82, %c0_83] : memref<40x112xf32, #tpu.memory_space<vmem>>, vector<32x112xf32>
    %76 = arith.truncf %75 : vector<32x112xf32> to vector<32x112xbf16>
    %c0_84 = arith.constant 0 : index
    %c0_85 = arith.constant 0 : index
    %c0_86 = arith.constant 0 : index
    %77 = vector.load %arg2[%c0_84, %c0_85, %c0_86] : memref<3x112x224xbf16, #tpu.memory_space<vmem>>, vector<1x112x224xbf16>
    %78 = vector.shape_cast %77 : vector<1x112x224xbf16> to vector<112x224xbf16>
    %cst_87 = arith.constant dense<0.000000e+00> : vector<32x224xf32>
    %79 = tpu.matmul %76, %78, %cst_87 {dimension_numbers = #tpu.dot_dimension_numbers<[1], [0], [0], [1], [0, 0, 1, 1], [], []>} : vector<32x112xbf16>, vector<112x224xbf16>, vector<32x224xf32> -> vector<32x224xf32>
    %80 = arith.addf %74, %79 : vector<32x224xf32>
    %c1_88 = arith.constant 1 : index
    %c0_89 = arith.constant 0 : index
    %81 = vector.load %arg8[%c1_88, %c0_89] : memref<40x112xf32, #tpu.memory_space<vmem>>, vector<32x112xf32>
    %82 = arith.truncf %81 : vector<32x112xf32> to vector<32x112xbf16>
    %c1_90 = arith.constant 1 : index
    %c0_91 = arith.constant 0 : index
    %c0_92 = arith.constant 0 : index
    %83 = vector.load %arg2[%c1_90, %c0_91, %c0_92] : memref<3x112x224xbf16, #tpu.memory_space<vmem>>, vector<1x112x224xbf16>
    %84 = vector.shape_cast %83 : vector<1x112x224xbf16> to vector<112x224xbf16>
    %cst_93 = arith.constant dense<0.000000e+00> : vector<32x224xf32>
    %85 = tpu.matmul %82, %84, %cst_93 {dimension_numbers = #tpu.dot_dimension_numbers<[1], [0], [0], [1], [0, 0, 1, 1], [], []>} : vector<32x112xbf16>, vector<112x224xbf16>, vector<32x224xf32> -> vector<32x224xf32>
    %86 = arith.addf %80, %85 : vector<32x224xf32>
    %c2_94 = arith.constant 2 : index
    %c0_95 = arith.constant 0 : index
    %87 = vector.load %arg8[%c2_94, %c0_95] : memref<40x112xf32, #tpu.memory_space<vmem>>, vector<32x112xf32>
    %88 = arith.truncf %87 : vector<32x112xf32> to vector<32x112xbf16>
    %c2_96 = arith.constant 2 : index
    %c0_97 = arith.constant 0 : index
    %c0_98 = arith.constant 0 : index
    %89 = vector.load %arg2[%c2_96, %c0_97, %c0_98] : memref<3x112x224xbf16, #tpu.memory_space<vmem>>, vector<1x112x224xbf16>
    %90 = vector.shape_cast %89 : vector<1x112x224xbf16> to vector<112x224xbf16>
    %cst_99 = arith.constant dense<0.000000e+00> : vector<32x224xf32>
    %91 = tpu.matmul %88, %90, %cst_99 {dimension_numbers = #tpu.dot_dimension_numbers<[1], [0], [0], [1], [0, 0, 1, 1], [], []>} : vector<32x112xbf16>, vector<112x224xbf16>, vector<32x224xf32> -> vector<32x224xf32>
    %92 = arith.addf %86, %91 : vector<32x224xf32>
    %93 = vector.broadcast %73 : vector<1x224xf32> to vector<32x224xf32>
    %94 = arith.addf %92, %93 : vector<32x224xf32>
    %cst_100 = arith.constant 0.000000e+00 : f32
    %95 = vector.broadcast %cst_100 : f32 to vector<32x224xf32>
    %96 = arith.cmpf ogt, %94, %95 : vector<32x224xf32>
    %cst_101 = arith.constant 0.000000e+00 : f32
    %97 = vector.broadcast %cst_101 : f32 to vector<32x224xf32>
    %98 = arith.minimumf %94, %97 : vector<32x224xf32>
    %99 = math.exp %98 : vector<32x224xf32>
    %cst_102 = arith.constant 1.000000e+00 : f32
    %100 = vector.broadcast %cst_102 : f32 to vector<32x224xf32>
    %101 = arith.subf %99, %100 : vector<32x224xf32>
    %102 = arith.select %96, %94, %101 : vector<32x224xi1>, vector<32x224xf32>
    %c0_103 = arith.constant 0 : index
    %c0_104 = arith.constant 0 : index
    %103 = vector.load %arg9[%c0_103, %c0_104] : memref<40x224xf32, #tpu.memory_space<vmem>>, vector<32x224xf32>
    tpu.vector_store %arg9[%c0_103, %c0_104], %102 {strides = array<i32>} : memref<40x224xf32, #tpu.memory_space<vmem>>, vector<32x224xf32>,
    %c0_105 = arith.constant 0 : index
    %c384 = arith.constant 384 : index
    %104 = vector.load %arg5[%c0_105, %c384] : memref<1x1024xf32, #tpu.memory_space<vmem>>, vector<1x448xf32>
    %cst_106 = arith.constant 0.000000e+00 : f32
    %105 = vector.broadcast %cst_106 : f32 to vector<32x448xf32>
    %c0_107 = arith.constant 0 : index
    %c0_108 = arith.constant 0 : index
    %106 = vector.load %arg9[%c0_107, %c0_108] : memref<40x224xf32, #tpu.memory_space<vmem>>, vector<32x224xf32>
    %107 = arith.truncf %106 : vector<32x224xf32> to vector<32x224xbf16>
    %c0_109 = arith.constant 0 : index
    %c0_110 = arith.constant 0 : index
    %c0_111 = arith.constant 0 : index
    %108 = vector.load %arg3[%c0_109, %c0_110, %c0_111] : memref<3x224x448xbf16, #tpu.memory_space<vmem>>, vector<1x224x448xbf16>
    %109 = vector.shape_cast %108 : vector<1x224x448xbf16> to vector<224x448xbf16>
    %cst_112 = arith.constant dense<0.000000e+00> : vector<32x448xf32>
    %110 = tpu.matmul %107, %109, %cst_112 {dimension_numbers = #tpu.dot_dimension_numbers<[1], [0], [0], [1], [0, 0, 1, 1], [], []>} : vector<32x224xbf16>, vector<224x448xbf16>, vector<32x448xf32> -> vector<32x448xf32>
    %111 = arith.addf %105, %110 : vector<32x448xf32>
    %c1_113 = arith.constant 1 : index
    %c0_114 = arith.constant 0 : index
    %112 = vector.load %arg9[%c1_113, %c0_114] : memref<40x224xf32, #tpu.memory_space<vmem>>, vector<32x224xf32>
    %113 = arith.truncf %112 : vector<32x224xf32> to vector<32x224xbf16>
    %c1_115 = arith.constant 1 : index
    %c0_116 = arith.constant 0 : index
    %c0_117 = arith.constant 0 : index
    %114 = vector.load %arg3[%c1_115, %c0_116, %c0_117] : memref<3x224x448xbf16, #tpu.memory_space<vmem>>, vector<1x224x448xbf16>
    %115 = vector.shape_cast %114 : vector<1x224x448xbf16> to vector<224x448xbf16>
    %cst_118 = arith.constant dense<0.000000e+00> : vector<32x448xf32>
    %116 = tpu.matmul %113, %115, %cst_118 {dimension_numbers = #tpu.dot_dimension_numbers<[1], [0], [0], [1], [0, 0, 1, 1], [], []>} : vector<32x224xbf16>, vector<224x448xbf16>, vector<32x448xf32> -> vector<32x448xf32>
    %117 = arith.addf %111, %116 : vector<32x448xf32>
    %c2_119 = arith.constant 2 : index
    %c0_120 = arith.constant 0 : index
    %118 = vector.load %arg9[%c2_119, %c0_120] : memref<40x224xf32, #tpu.memory_space<vmem>>, vector<32x224xf32>
    %119 = arith.truncf %118 : vector<32x224xf32> to vector<32x224xbf16>
    %c2_121 = arith.constant 2 : index
    %c0_122 = arith.constant 0 : index
    %c0_123 = arith.constant 0 : index
    %120 = vector.load %arg3[%c2_121, %c0_122, %c0_123] : memref<3x224x448xbf16, #tpu.memory_space<vmem>>, vector<1x224x448xbf16>
    %121 = vector.shape_cast %120 : vector<1x224x448xbf16> to vector<224x448xbf16>
    %cst_124 = arith.constant dense<0.000000e+00> : vector<32x448xf32>
    %122 = tpu.matmul %119, %121, %cst_124 {dimension_numbers = #tpu.dot_dimension_numbers<[1], [0], [0], [1], [0, 0, 1, 1], [], []>} : vector<32x224xbf16>, vector<224x448xbf16>, vector<32x448xf32> -> vector<32x448xf32>
    %123 = arith.addf %117, %122 : vector<32x448xf32>
    %124 = vector.broadcast %104 : vector<1x448xf32> to vector<32x448xf32>
    %125 = arith.addf %123, %124 : vector<32x448xf32>
    %cst_125 = arith.constant 0.000000e+00 : f32
    %126 = vector.broadcast %cst_125 : f32 to vector<32x448xf32>
    %127 = arith.cmpf ogt, %125, %126 : vector<32x448xf32>
    %cst_126 = arith.constant 0.000000e+00 : f32
    %128 = vector.broadcast %cst_126 : f32 to vector<32x448xf32>
    %129 = arith.minimumf %125, %128 : vector<32x448xf32>
    %130 = math.exp %129 : vector<32x448xf32>
    %cst_127 = arith.constant 1.000000e+00 : f32
    %131 = vector.broadcast %cst_127 : f32 to vector<32x448xf32>
    %132 = arith.subf %130, %131 : vector<32x448xf32>
    %133 = arith.select %127, %125, %132 : vector<32x448xi1>, vector<32x448xf32>
    %c0_128 = arith.constant 0 : index
    %c0_129 = arith.constant 0 : index
    %134 = vector.load %arg10[%c0_128, %c0_129] : memref<40x448xf32, #tpu.memory_space<vmem>>, vector<32x448xf32>
    tpu.vector_store %arg10[%c0_128, %c0_129], %133 {strides = array<i32>} : memref<40x448xf32, #tpu.memory_space<vmem>>, vector<32x448xf32>,
    %cst_130 = arith.constant 0.000000e+00 : f32
    %135 = vector.broadcast %cst_130 : f32 to vector<24x32xf32>
    %c0_131 = arith.constant 0 : index
    %c0_132 = arith.constant 0 : index
    %136 = vector.load %arg10[%c0_131, %c0_132] : memref<40x448xf32, #tpu.memory_space<vmem>>, vector<24x256xf32>
    %137 = arith.truncf %136 : vector<24x256xf32> to vector<24x256xbf16>
    %c0_133 = arith.constant 0 : index
    %c0_134 = arith.constant 0 : index
    %c0_135 = arith.constant 0 : index
    %138 = vector.load %arg4[%c0_133, %c0_134, %c0_135] : memref<10x256x32xbf16, #tpu.memory_space<vmem>>, vector<1x256x32xbf16>
    %139 = vector.shape_cast %138 : vector<1x256x32xbf16> to vector<256x32xbf16>
    %cst_136 = arith.constant dense<0.000000e+00> : vector<24x32xf32>
    %140 = tpu.matmul %137, %139, %cst_136 {dimension_numbers = #tpu.dot_dimension_numbers<[1], [0], [0], [1], [0, 0, 1, 1], [], []>} : vector<24x256xbf16>, vector<256x32xbf16>, vector<24x32xf32> -> vector<24x32xf32>
    %141 = arith.addf %135, %140 : vector<24x32xf32>
    %c1_137 = arith.constant 1 : index
    %c0_138 = arith.constant 0 : index
    %142 = vector.load %arg10[%c1_137, %c0_138] : memref<40x448xf32, #tpu.memory_space<vmem>>, vector<24x256xf32>
    %143 = arith.truncf %142 : vector<24x256xf32> to vector<24x256xbf16>
    %c1_139 = arith.constant 1 : index
    %c0_140 = arith.constant 0 : index
    %c0_141 = arith.constant 0 : index
    %144 = vector.load %arg4[%c1_139, %c0_140, %c0_141] : memref<10x256x32xbf16, #tpu.memory_space<vmem>>, vector<1x256x32xbf16>
    %145 = vector.shape_cast %144 : vector<1x256x32xbf16> to vector<256x32xbf16>
    %cst_142 = arith.constant dense<0.000000e+00> : vector<24x32xf32>
    %146 = tpu.matmul %143, %145, %cst_142 {dimension_numbers = #tpu.dot_dimension_numbers<[1], [0], [0], [1], [0, 0, 1, 1], [], []>} : vector<24x256xbf16>, vector<256x32xbf16>, vector<24x32xf32> -> vector<24x32xf32>
    %147 = arith.addf %141, %146 : vector<24x32xf32>
    %c2_143 = arith.constant 2 : index
    %c0_144 = arith.constant 0 : index
    %148 = vector.load %arg10[%c2_143, %c0_144] : memref<40x448xf32, #tpu.memory_space<vmem>>, vector<24x256xf32>
    %149 = arith.truncf %148 : vector<24x256xf32> to vector<24x256xbf16>
    %c2_145 = arith.constant 2 : index
    %c0_146 = arith.constant 0 : index
    %c0_147 = arith.constant 0 : index
    %150 = vector.load %arg4[%c2_145, %c0_146, %c0_147] : memref<10x256x32xbf16, #tpu.memory_space<vmem>>, vector<1x256x32xbf16>
    %151 = vector.shape_cast %150 : vector<1x256x32xbf16> to vector<256x32xbf16>
    %cst_148 = arith.constant dense<0.000000e+00> : vector<24x32xf32>
    %152 = tpu.matmul %149, %151, %cst_148 {dimension_numbers = #tpu.dot_dimension_numbers<[1], [0], [0], [1], [0, 0, 1, 1], [], []>} : vector<24x256xbf16>, vector<256x32xbf16>, vector<24x32xf32> -> vector<24x32xf32>
    %153 = arith.addf %147, %152 : vector<24x32xf32>
    %c3 = arith.constant 3 : index
    %c0_149 = arith.constant 0 : index
    %154 = vector.load %arg10[%c3, %c0_149] : memref<40x448xf32, #tpu.memory_space<vmem>>, vector<24x256xf32>
    %155 = arith.truncf %154 : vector<24x256xf32> to vector<24x256xbf16>
    %c3_150 = arith.constant 3 : index
    %c0_151 = arith.constant 0 : index
    %c0_152 = arith.constant 0 : index
    %156 = vector.load %arg4[%c3_150, %c0_151, %c0_152] : memref<10x256x32xbf16, #tpu.memory_space<vmem>>, vector<1x256x32xbf16>
    %157 = vector.shape_cast %156 : vector<1x256x32xbf16> to vector<256x32xbf16>
    %cst_153 = arith.constant dense<0.000000e+00> : vector<24x32xf32>
    %158 = tpu.matmul %155, %157, %cst_153 {dimension_numbers = #tpu.dot_dimension_numbers<[1], [0], [0], [1], [0, 0, 1, 1], [], []>} : vector<24x256xbf16>, vector<256x32xbf16>, vector<24x32xf32> -> vector<24x32xf32>
    %159 = arith.addf %153, %158 : vector<24x32xf32>
    %c4 = arith.constant 4 : index
    %c0_154 = arith.constant 0 : index
    %160 = vector.load %arg10[%c4, %c0_154] : memref<40x448xf32, #tpu.memory_space<vmem>>, vector<24x256xf32>
    %161 = arith.truncf %160 : vector<24x256xf32> to vector<24x256xbf16>
    %c4_155 = arith.constant 4 : index
    %c0_156 = arith.constant 0 : index
    %c0_157 = arith.constant 0 : index
    %162 = vector.load %arg4[%c4_155, %c0_156, %c0_157] : memref<10x256x32xbf16, #tpu.memory_space<vmem>>, vector<1x256x32xbf16>
    %163 = vector.shape_cast %162 : vector<1x256x32xbf16> to vector<256x32xbf16>
    %cst_158 = arith.constant dense<0.000000e+00> : vector<24x32xf32>
    %164 = tpu.matmul %161, %163, %cst_158 {dimension_numbers = #tpu.dot_dimension_numbers<[1], [0], [0], [1], [0, 0, 1, 1], [], []>} : vector<24x256xbf16>, vector<256x32xbf16>, vector<24x32xf32> -> vector<24x32xf32>
    %165 = arith.addf %159, %164 : vector<24x32xf32>
    %c5 = arith.constant 5 : index
    %c0_159 = arith.constant 0 : index
    %166 = vector.load %arg10[%c5, %c0_159] : memref<40x448xf32, #tpu.memory_space<vmem>>, vector<24x256xf32>
    %167 = arith.truncf %166 : vector<24x256xf32> to vector<24x256xbf16>
    %c5_160 = arith.constant 5 : index
    %c0_161 = arith.constant 0 : index
    %c0_162 = arith.constant 0 : index
    %168 = vector.load %arg4[%c5_160, %c0_161, %c0_162] : memref<10x256x32xbf16, #tpu.memory_space<vmem>>, vector<1x256x32xbf16>
    %169 = vector.shape_cast %168 : vector<1x256x32xbf16> to vector<256x32xbf16>
    %cst_163 = arith.constant dense<0.000000e+00> : vector<24x32xf32>
    %170 = tpu.matmul %167, %169, %cst_163 {dimension_numbers = #tpu.dot_dimension_numbers<[1], [0], [0], [1], [0, 0, 1, 1], [], []>} : vector<24x256xbf16>, vector<256x32xbf16>, vector<24x32xf32> -> vector<24x32xf32>
    %171 = arith.addf %165, %170 : vector<24x32xf32>
    %c6 = arith.constant 6 : index
    %c0_164 = arith.constant 0 : index
    %172 = vector.load %arg10[%c6, %c0_164] : memref<40x448xf32, #tpu.memory_space<vmem>>, vector<24x256xf32>
    %173 = arith.truncf %172 : vector<24x256xf32> to vector<24x256xbf16>
    %c6_165 = arith.constant 6 : index
    %c0_166 = arith.constant 0 : index
    %c0_167 = arith.constant 0 : index
    %174 = vector.load %arg4[%c6_165, %c0_166, %c0_167] : memref<10x256x32xbf16, #tpu.memory_space<vmem>>, vector<1x256x32xbf16>
    %175 = vector.shape_cast %174 : vector<1x256x32xbf16> to vector<256x32xbf16>
    %cst_168 = arith.constant dense<0.000000e+00> : vector<24x32xf32>
    %176 = tpu.matmul %173, %175, %cst_168 {dimension_numbers = #tpu.dot_dimension_numbers<[1], [0], [0], [1], [0, 0, 1, 1], [], []>} : vector<24x256xbf16>, vector<256x32xbf16>, vector<24x32xf32> -> vector<24x32xf32>
    %177 = arith.addf %171, %176 : vector<24x32xf32>
    %c7 = arith.constant 7 : index
    %c0_169 = arith.constant 0 : index
    %178 = vector.load %arg10[%c7, %c0_169] : memref<40x448xf32, #tpu.memory_space<vmem>>, vector<24x256xf32>
    %179 = arith.truncf %178 : vector<24x256xf32> to vector<24x256xbf16>
    %c7_170 = arith.constant 7 : index
    %c0_171 = arith.constant 0 : index
    %c0_172 = arith.constant 0 : index
    %180 = vector.load %arg4[%c7_170, %c0_171, %c0_172] : memref<10x256x32xbf16, #tpu.memory_space<vmem>>, vector<1x256x32xbf16>
    %181 = vector.shape_cast %180 : vector<1x256x32xbf16> to vector<256x32xbf16>
    %cst_173 = arith.constant dense<0.000000e+00> : vector<24x32xf32>
    %182 = tpu.matmul %179, %181, %cst_173 {dimension_numbers = #tpu.dot_dimension_numbers<[1], [0], [0], [1], [0, 0, 1, 1], [], []>} : vector<24x256xbf16>, vector<256x32xbf16>, vector<24x32xf32> -> vector<24x32xf32>
    %183 = arith.addf %177, %182 : vector<24x32xf32>
    %c8 = arith.constant 8 : index
    %c0_174 = arith.constant 0 : index
    %184 = vector.load %arg10[%c8, %c0_174] : memref<40x448xf32, #tpu.memory_space<vmem>>, vector<24x256xf32>
    %185 = arith.truncf %184 : vector<24x256xf32> to vector<24x256xbf16>
    %c8_175 = arith.constant 8 : index
    %c0_176 = arith.constant 0 : index
    %c0_177 = arith.constant 0 : index
    %186 = vector.load %arg4[%c8_175, %c0_176, %c0_177] : memref<10x256x32xbf16, #tpu.memory_space<vmem>>, vector<1x256x32xbf16>
    %187 = vector.shape_cast %186 : vector<1x256x32xbf16> to vector<256x32xbf16>
    %cst_178 = arith.constant dense<0.000000e+00> : vector<24x32xf32>
    %188 = tpu.matmul %185, %187, %cst_178 {dimension_numbers = #tpu.dot_dimension_numbers<[1], [0], [0], [1], [0, 0, 1, 1], [], []>} : vector<24x256xbf16>, vector<256x32xbf16>, vector<24x32xf32> -> vector<24x32xf32>
    %189 = arith.addf %183, %188 : vector<24x32xf32>
    %c9 = arith.constant 9 : index
    %c0_179 = arith.constant 0 : index
    %190 = vector.load %arg10[%c9, %c0_179] : memref<40x448xf32, #tpu.memory_space<vmem>>, vector<24x256xf32>
    %191 = arith.truncf %190 : vector<24x256xf32> to vector<24x256xbf16>
    %c9_180 = arith.constant 9 : index
    %c0_181 = arith.constant 0 : index
    %c0_182 = arith.constant 0 : index
    %192 = vector.load %arg4[%c9_180, %c0_181, %c0_182] : memref<10x256x32xbf16, #tpu.memory_space<vmem>>, vector<1x256x32xbf16>
    %193 = vector.shape_cast %192 : vector<1x256x32xbf16> to vector<256x32xbf16>
    %cst_183 = arith.constant dense<0.000000e+00> : vector<24x32xf32>
    %194 = tpu.matmul %191, %193, %cst_183 {dimension_numbers = #tpu.dot_dimension_numbers<[1], [0], [0], [1], [0, 0, 1, 1], [], []>} : vector<24x256xbf16>, vector<256x32xbf16>, vector<24x32xf32> -> vector<24x32xf32>
    %195 = arith.addf %189, %194 : vector<24x32xf32>
    %c0_184 = arith.constant 0 : index
    %c896 = arith.constant 896 : index
    %196 = vector.load %arg5[%c0_184, %c896] : memref<1x1024xf32, #tpu.memory_space<vmem>>, vector<1x32xf32>
    %197 = vector.broadcast %196 : vector<1x32xf32> to vector<24x32xf32>
    %198 = arith.addf %195, %197 : vector<24x32xf32>
    %cst_185 = arith.constant 0.000000e+00 : f32
    %199 = vector.broadcast %cst_185 : f32 to vector<24x32xf32>
    %200 = arith.cmpf ogt, %198, %199 : vector<24x32xf32>
    %cst_186 = arith.constant 0.000000e+00 : f32
    %201 = vector.broadcast %cst_186 : f32 to vector<24x32xf32>
    %202 = arith.minimumf %198, %201 : vector<24x32xf32>
    %203 = math.exp %202 : vector<24x32xf32>
    %cst_187 = arith.constant 1.000000e+00 : f32
    %204 = vector.broadcast %cst_187 : f32 to vector<24x32xf32>
    %205 = arith.subf %203, %204 : vector<24x32xf32>
    %206 = arith.select %200, %198, %205 : vector<24x32xi1>, vector<24x32xf32>
    %207 = vector.extract_strided_slice %206 {offsets = [0, 0], sizes = [1, 32], strides = [1, 1]} : vector<24x32xf32> to vector<1x32xf32>
    %208 = vector.extract_strided_slice %206 {offsets = [16, 0], sizes = [1, 32], strides = [1, 1]} : vector<24x32xf32> to vector<1x32xf32>
    %209 = tpu.concatenate %207, %208 in 0 : vector<1x32xf32>, vector<1x32xf32> -> vector<2x32xf32>
    %c0_188 = arith.constant 0 : index
    %c0_189 = arith.constant 0 : index
    %210 = vector.load %arg6[%c0_188, %c0_189] : memref<2x32xf32, #tpu.memory_space<vmem>>, vector<2x32xf32>
    tpu.vector_store %arg6[%c0_188, %c0_189], %209 {strides = array<i32>} : memref<2x32xf32, #tpu.memory_space<vmem>>, vector<2x32xf32>,
    return
  }
}

</mosaic_0001>

<bundles_post_ra>
// kernel: cnn_forward.1
= control target key start
LH: loop header
LB: loop body
LE: loop exit
PB: predicated region body
PF: predicated region fallthrough
CT: control target
= control target key end

     0   :  { %11 = vsyncpa [#allocation7], 0  ;;  %s8838_s0 = inlined_call_operand.vmem [shape: f32[320,14], index: 0, kind: input, shape index: {}]   ;;  %s8839_s1 = inlined_call_operand.vmem [shape: bf16[3,142,112], index: 1, kind: input, shape index: {}]   ;;  %s8840_s2 = inlined_call_operand.vmem [shape: bf16[3,112,224], index: 2, kind: input, shape index: {}]   ;;  %s8841_s3 = inlined_call_operand.vmem [shape: bf16[3,224,448], index: 3, kind: input, shape index: {}]   ;;  %s8842_s4 = inlined_call_operand.vmem [shape: bf16[10,256,32], index: 4, kind: input, shape index: {}]   ;;  %s8843_s5 = inlined_call_operand.hbm [shape: f32[1,1024], index: 5, kind: input, shape index: {}]   ;;  %s8844_s6 = inlined_call_operand.hbm [shape: f32[2,32], index: 6, kind: output, shape index: {}]  }
   0x1   :  { %12 = vsyncpa [#allocation8], 0  ;;  %s6919_s21 = smov [#allocation6]   ;;  %s6871_s25 = scalar_lea.hbm %s8843_s5, 128 }
   0x2   :  { %s29_s22 = sshll.u32 %s6919_s21, 4  ;;  %p6872_p0 = scmp.ne.s32.totalorder %s8843_s5, %s6871_s25  ;;  %s30_s22 = int_to_ptr.vmem [resolvable:$true] %s29_s22 }
   0x3   :  { %p6875_p1 = scmp.lt.u32.totalorder %s6871_s25, %s8843_s5 }
   0x5   :  { %p6877_p2 = pnand %p6875_p1, %p6872_p0 }
   0x7   :  { %6880 = shalt.err (!%p6877_p2)
}
   0x8   :  { %s6881_s30 = scalar_lea.vmem %s30_s22, 128  ;;  %p6886_p4 = scmp.lt.s32.totalorder %s30_s22, %s30_s22 }
   0x9   :  { %p6882_p3 = scmp.ne.s32.totalorder %s30_s22, %s6881_s30  ;;  %p6887_p5 = scmp.lt.s32.totalorder %s6881_s30, %s6881_s30 }
   0xb   :  { %p6888_p6 = por %p6887_p5, %p6886_p4 }
   0xd   :  { %p6889_p7 = pnand %p6888_p6, %p6882_p3 }
   0xf   :  { %6892 = shalt.err (!%p6889_p7)
}
  0x10   :  { %32 = dma.hbm_to_vmem [thread:$0]  %s8843_s5, 128, %s30_s22, [#allocation7]  }
  0x11   :  { %6915 = dma.done.wait [#allocation7], 128  }
  0x12   :  { %6916 = vsyncadd [#allocation7], 4294967168  ;;  %vm38_vm0 = vcmask 113664   ;;  %v6920_v0 = vmov 0.0   ;;  %v65_v1 = vld [vmem:[%s8838_s0 + $0x20] sm:$0xff]  ;;  %v52_v2 = vld [vmem:[%s8838_s0 + $0x10] sm:$0xff] }
  0x13   :  { %37 = vst [vmem:[#allocation2] sm:$0xff] %v6920_v0  ;;  %39 = vst.msk [vmem:[#allocation2 + $0x8] sm:$0xff] %vm38_vm0, %v6920_v0  ;;  %s6921_s12 = smov 28   ;;  %s6922_s13 = smov 14   ;;  %v66_v3 = vld [vmem:[%s8838_s0 + $0x28] sm:$0xff]  ;;  %v53_v4 = vld [vmem:[%s8838_s0 + $0x18] sm:$0xff] }
  0x14   :  { %40 = vst [vmem:[#allocation2 + $0x10] sm:$0xff] %v6920_v0  ;;  %41 = vst.msk [vmem:[#allocation2 + $0x18] sm:$0xff] %vm38_vm0, %v6920_v0  ;;  %69 = vrot.lane.b32.xlu1 %v65_v1, %s6921_s12  ;;  %56 = vrot.lane.b32.xlu0 %v52_v2, %s6922_s13  ;;  %v79_v5 = vld [vmem:[%s8838_s0 + $0x38] sm:$0xff]  ;;  %v78_v6 = vld [vmem:[%s8838_s0 + $0x30] sm:$0xff]  ;;  %s6923_s22 = smov 42   ;;  %v6924_v9 = vmov 0  }
  0x15   :  { %42 = vst [vmem:[#allocation2 + $0x20] sm:$0xff] %v6920_v0  ;;  %43 = vst.msk [vmem:[#allocation2 + $0x28] sm:$0xff] %vm38_vm0, %v6920_v0  ;;  %v165_v7 = vld [vmem:[%s8838_s0 + $0xb8] sm:$0xff]  ;;  %v164_v8 = vld [vmem:[%s8838_s0 + $0xb0] sm:$0xff]  ;;  %538 = vmatprep.subr.bf16.mxu1 %v6924_v9  ;;  %428 = vmatprep.subr.bf16.mxu0 %v6924_v9  ;;  %s6925_s24 = smov 56   ;;  %s6927_s8 = smov 84  }
  0x16   :  { %44 = vst [vmem:[#allocation2 + $0x30] sm:$0xff] %v6920_v0  ;;  %45 = vst.msk [vmem:[#allocation2 + $0x38] sm:$0xff] %vm38_vm0, %v6920_v0  ;;  %v48_v10 = vld [vmem:[%s8838_s0] sm:$0xff]  ;;  %v92_v11 = vld [vmem:[%s8838_s0 + $0x48] sm:$0xff]  ;;  %vm424_vm1 = vcmask 1046528   ;;  %s6929_s26 = smov 112  }
  0x17   :  { %46 = vst [vmem:[#allocation2 + $0x40] sm:$0xff] %v6920_v0  ;;  %47 = vst.msk [vmem:[#allocation2 + $0x48] sm:$0xff] %vm38_vm0, %v6920_v0  ;;  %v91_v12 = vld [vmem:[%s8838_s0 + $0x40] sm:$0xff]  ;;  %v49_v13 = vld [vmem:[%s8838_s0 + $0x8] sm:$0xff]  ;;  %vm322_vm2 = vsmask.f32 7424 }
  0x18   :  { %71 = vrot.lane.b32.xlu1 %v66_v3, %s6921_s12  ;;  %58 = vrot.lane.b32.xlu0 %v53_v4, %s6922_s13  ;;  %50 = vst.msk [vmem:[#allocation2] sm:$0xff] %vm38_vm0, %v48_v10  ;;  %v161_v14 = vld [vmem:[%s8838_s0 + $0xa8] sm:$0xff]  ;;  %v160_v15 = vld [vmem:[%s8838_s0 + $0xa0] sm:$0xff]  ;;  %51 = vst.msk [vmem:[#allocation2 + $0x10] sm:$0xff] %vm38_vm0, %v49_v13  ;;  %vm62_vm3 = vcmask 228464   ;;  %vm75_vm4 = vcmask 343264  }
  0x19   :  { %163 = vst.msk [vmem:[#allocation2 + $0x30] sm:$0xff] %vm38_vm0, %v161_v14  ;;  %162 = vst.msk [vmem:[#allocation2 + $0x20] sm:$0xff] %vm38_vm0, %v160_v15  ;;  %v6309_v16 = vld [vmem:[%s8839_s1] sm:$0xff]   ;;  %v177_v17 = vld [vmem:[%s8838_s0 + $0xc8] sm:$0xff]  ;;  %vm88_vm5 = vcmask 458064   ;;  %vm101_vm6 = vcmask 572864  }
  0x1a   :  { %v176_v18 = vld [vmem:[%s8838_s0 + $0xc0] sm:$0xff]  ;;  %539 = vmatpush1.bf16.msra.mxu1 %v6309_v16  ;;  %v6310_v19 = vld [vmem:[%s8839_s1 + $0x8] sm:$0xff]   ;;  %v105_v20 = vld [vmem:[%s8838_s0 + $0x58] sm:$0xff]  ;;  %vm114_vm7 = vcmask 687664   ;;  %vm127_vm8 = vcmask 802464   ;;  %vm140_vm9 = vcmask 917264  }
  0x1b   :  { %540 = vmatprep.subr.bf16.mxu1 %v6924_v9  ;;  %v104_v21 = vld [vmem:[%s8838_s0 + $0x50] sm:$0xff]  ;;  %v189_v23 = vld [vmem:[%s8838_s0 + $0xd8] sm:$0xff]  ;;  %v6313_v26 = vld [vmem:[%s8839_s1 + $0x48] sm:$0xff]   ;;  %vm153_vm10 = vcmask 1032064   ;;  %vm782_vm11 = vcmask 916480  }
  0x1c   :  { %84 = vrot.lane.b32.xlu1 %v79_v5, %s6923_s22  ;;  %82 = vrot.lane.b32.xlu0 %v78_v6, %s6923_s22  ;;  %v6311_v22 = vld [vmem:[%s8839_s1 + $0x10] sm:$0xff]   ;;  %v6312_v25 = vld [vmem:[%s8839_s1 + $0x18] sm:$0xff]  }
  0x1d   :  { %v188_v24 = vld [vmem:[%s8838_s0 + $0xd0] sm:$0xff]  ;;  %429 = vmatpush1.bf16.msra.mxu0 %v6313_v26  ;;  %v118_v27 = vld [vmem:[%s8838_s0 + $0x68] sm:$0xff]  ;;  %v117_v28 = vld [vmem:[%s8838_s0 + $0x60] sm:$0xff] }
  0x1e   :  { %541 = vmatpush1.bf16.msra.mxu1 %v6310_v19  ;;  %430 = vmatprep.subr.bf16.mxu0 %v6924_v9  ;;  %v6314_v29 = vld [vmem:[%s8839_s1 + $0x20] sm:$0xff]   ;;  %v6315_v30 = vld [vmem:[%s8839_s1 + $0x50] sm:$0xff]   ;;  %v201_v31 = vld [vmem:[%s8838_s0 + $0xe8] sm:$0xff] }
  0x1f   :  { %542 = vmatprep.subr.bf16.mxu1 %v6924_v9  ;;  %v200_v32 = vld [vmem:[%s8838_s0 + $0xe0] sm:$0xff]  ;;  %v6316_v33 = vld [vmem:[%s8839_s1 + $0x28] sm:$0xff]   ;;  %v6317_v34 = vld [vmem:[%s8839_s1 + $0x58] sm:$0xff]  }
  0x20   :  { %170 = vrot.lane.b32.xlu1 %v165_v7, %s6922_s13  ;;  %168 = vrot.lane.b32.xlu0 %v164_v8, %s6922_s13  ;;  %v156_v35 = vld [vmem:[%s8838_s0 + $0x90] sm:$0xff]  ;;  %v157_v36 = vld [vmem:[%s8838_s0 + $0x98] sm:$0xff]  ;;  %v298_v14 = vld [vmem:[#allocation2 + $0x48] sm:$0x1] }
  0x21   :  { %431 = vmatpush1.bf16.msra.mxu0 %v6315_v30  ;;  %158 = vst.msk [vmem:[#allocation2 + $0x8] sm:$0xff] %vm38_vm0, %v156_v35  ;;  %159 = vst.msk [vmem:[#allocation2 + $0x18] sm:$0xff] %vm38_vm0, %v157_v36  ;;  %v131_v37 = vld [vmem:[%s8838_s0 + $0x78] sm:$0xff]  ;;  %v130_v38 = vld [vmem:[%s8838_s0 + $0x70] sm:$0xff] }
  0x22   :  { %543 = vmatpush1.bf16.msra.mxu1 %v6311_v22  ;;  %432 = vmatprep.subr.bf16.mxu0 %v6924_v9  ;;  %v6318_v39 = vld [vmem:[%s8839_s1 + $0x30] sm:$0xff]   ;;  %v6319_v40 = vld [vmem:[%s8839_s1 + $0x60] sm:$0xff]   ;;  %v6320_v41 = vld [vmem:[%s8839_s1 + $0x38] sm:$0xff]  }
  0x23   :  { %544 = vmatprep.subr.bf16.mxu1 %v6924_v9  ;;  %v213_v42 = vld [vmem:[%s8838_s0 + $0xf8] sm:$0xff]  ;;  %v212_v43 = vld [vmem:[%s8838_s0 + $0xf0] sm:$0xff]  ;;  %v6321_v44 = vld [vmem:[%s8839_s1 + $0x68] sm:$0xff]  }
  0x24   :  { %97 = vrot.lane.b32.xlu1 %v92_v11, %s6925_s24  ;;  %95 = vrot.lane.b32.xlu0 %v91_v12, %s6925_s24  ;;  %v6322_v45 = vld [vmem:[%s8839_s1 + $0x40] sm:$0x7f]   ;;  %v144_v49 = vld [vmem:[%s8838_s0 + $0x88] sm:$0xff] }
  0x25   :  { %433 = vmatpush1.bf16.msra.mxu0 %v6317_v34  ;;  %v143_v50 = vld [vmem:[%s8838_s0 + $0x80] sm:$0xff]  ;;  %v536_v51 = vsel %vm424_vm1, %v6322_v45, 0  ;;  %v6323_v52 = vld [vmem:[%s8839_s1 + $0x70] sm:$0xff]   ;;  %v261_v54 = vld [vmem:[%s8838_s0 + $0x138] sm:$0xff] }
  0x26   :  { %545 = vmatpush1.bf16.msra.mxu1 %v6312_v25  ;;  %434 = vmatprep.subr.bf16.mxu0 %v6924_v9  ;;  %v260_v53 = vld [vmem:[%s8838_s0 + $0x130] sm:$0xff]  ;;  %v225_v55 = vld [vmem:[%s8838_s0 + $0x108] sm:$0xff]  ;;  %v224_v56 = vld [vmem:[%s8838_s0 + $0x100] sm:$0xff]  ;;  %263 = vst.msk [vmem:[#allocation2 + $0x38] sm:$0xff] %vm38_vm0, %v261_v54 }
  0x27   :  { %546 = vmatprep.subr.bf16.mxu1 %v6924_v9  ;;  %v6324_v57 = vld [vmem:[%s8839_s1 + $0x78] sm:$0xff]   ;;  %262 = vst.msk [vmem:[#allocation2 + $0x28] sm:$0xff] %vm38_vm0, %v260_v53  ;;  %v6325_v59 = vld [vmem:[%s8839_s1 + $0x80] sm:$0xff]   ;;  %v236_v61 = vld [vmem:[%s8838_s0 + $0x110] sm:$0xff] }
  0x28   :  { %182 = vrot.lane.b32.xlu1 %v177_v17, %s6921_s12  ;;  %180 = vrot.lane.b32.xlu0 %v176_v18, %s6921_s12  ;;  %s6926_s12 = smov 70   ;;  %v266_v46 = vld [vmem:[#allocation2 + $0x8] sm:$0xff]  ;;  %v7152_v47 = vld [vmem:[#allocation2 + $0x18] sm:$0xff]  ;;  %v248_v5 = vld [vmem:[%s8838_s0 + $0x120] sm:$0xff]  ;;  %v302_v18 = vpack.c.bf16 %v298_v14, %v298_v14 }
  0x29   :  { %435 = vmatpush1.bf16.msra.mxu0 %v6319_v40  ;;  %v274_v48 = vpack.c.bf16 %v7152_v47, %v266_v46  ;;  %v296_v58 = vld [vmem:[#allocation2 + $0x8] sm:$0xfe]  ;;  %v237_v60 = vld [vmem:[%s8838_s0 + $0x118] sm:$0xff]  ;;  %v297_v15 = vld [vmem:[#allocation2 + $0x40] sm:$0x1] }
  0x2a   :  { %547 = vmatpush1.bf16.msra.mxu1 %v6314_v29  ;;  %436 = vmatprep.subr.bf16.mxu0 %v6924_v9  ;;  %v300_v62 = vpack.c.bf16 %v7152_v47, %v296_v58  ;;  %v6326_v3 = vld [vmem:[%s8839_s1 + $0x88] sm:$0x7f]   ;;  %v301_v19 = vpack.c.bf16 %v297_v15, %v297_v15  ;;  %v7229_v22 = vshll.u32 %v302_v18, 16 }
  0x2b   :  { %548 = vmatprep.subr.bf16.mxu1 %v6924_v9  ;;  %5090 = vmatprep.mubr.msk.bf16.mxu1 %vm38_vm0, %v274_v48  ;;  %v249_v4 = vld [vmem:[%s8838_s0 + $0x128] sm:$0xff]  ;;  %v426_v10 = vsel %vm424_vm1, %v6326_v3, 0 }
  0x2c   :  { %110 = vrot.lane.b32.xlu1 %v105_v20, %s6926_s12  ;;  %108 = vrot.lane.b32.xlu0 %v104_v21, %s6926_s12  ;;  %v338_v2 = vshll.u32 %v300_v62, 16  ;;  %v336_v6 = vshrl.u32 %v300_v62, 16 }
  0x2d   :  { %437 = vmatpush1.bf16.msra.mxu0 %v6321_v44  ;;  %v272_v0 = vld [vmem:[#allocation2 + $0x38] sm:$0xff]  ;;  %v588_v44 = vld [vmem:[#allocation2 + $0x8] sm:$0xfc] }
  0x2e   :  { %549 = vmatpush1.bf16.msra.mxu1 %v6316_v33  ;;  %438 = vmatprep.subr.bf16.mxu0 %v6924_v9  ;;  %v270_v63 = vld [vmem:[#allocation2 + $0x28] sm:$0xff]  ;;  %v340_v7 = vrot.slane %v338_v2, 1 }
  0x2f   :  { %550 = vmatprep.subr.bf16.mxu1 %v6924_v9  ;;  %v7203_v1 = vpack.c.bf16 %v272_v0, %v270_v63  ;;  %v590_v2 = vld [vmem:[#allocation2 + $0x48] sm:$0x3] }
  0x30   :  { %194 = vrot.lane.b32.xlu1 %v189_v23, %s6923_s22  ;;  %192 = vrot.lane.b32.xlu0 %v188_v24, %s6923_s22  ;;  %s6928_s22 = smov 98   ;;  %v341_v11 = vor.u32 %v340_v7, %v336_v6  ;;  %v7231_v23 = vshll.u32 %v301_v19, 16  ;;  %v594_v6 = vpack.c.bf16 %v590_v2, %v590_v2  ;;  %v6327_v19 = vld [vmem:[%s8839_s1 + $0x90] sm:$0xff]  }
  0x31   :  { %439 = vmatpush1.bf16.msra.mxu0 %v6323_v52  ;;  %v343_v8 = vshll.u32 %v7203_v1, 16 }
  0x32   :  { %551 = vmatpush1.bf16.msra.mxu1 %v6318_v39  ;;  %440 = vmatprep.subr.bf16.mxu0 %v6924_v9 }
  0x33   :  { %552 = vmatprep.subr.bf16.mxu1 %v6924_v9  ;;  %v7219_v12 = vrot.slane %v343_v8, 1 }
  0x34   :  { %123 = vrot.lane.b32.xlu1 %v118_v27, %s6927_s8  ;;  %121 = vrot.lane.b32.xlu0 %v117_v28, %s6927_s8 }
  0x35   :  { %441 = vmatpush1.bf16.msra.mxu0 %v6324_v57  ;;  %v346_v13 = vsel %vm322_vm2, %v341_v11, %v7219_v12 }
  0x36   :  { %553 = vmatpush1.bf16.msra.mxu1 %v6320_v41  ;;  %442 = vmatprep.subr.bf16.mxu0 %v6924_v9 }
  0x37   :  { %554 = vmatprep.subr.bf16.mxu1 %v6924_v9  ;;  %5079 = vmatprep.mubr.msk.bf16.mxu0 %vm38_vm0, %v346_v13  ;;  %v629_v13 = vrot.slane %v594_v6, 1 }
  0x38   :  { %206 = vrot.lane.b32.xlu1 %v201_v31, %s6925_s24  ;;  %204 = vrot.lane.b32.xlu0 %v200_v32, %s6925_s24 }
  0x39   :  { %443 = vmatpush1.bf16.msra.mxu0 %v6325_v59  ;;  %v355_v59 = vshrl.u32 %v7203_v1, 16 }
  0x3a   :  { %555 = vmatpush1.bf16.msra.mxu1 %v536_v51  ;;  %444 = vmatprep.subr.bf16.mxu0 %v6924_v9  ;;  %v6335_v51 = vld [vmem:[%s8839_s1 + $0xd0] sm:$0x7f]  }
  0x3b   :  { %v693_v62 = vsel %vm424_vm1, %v6335_v51, 0  ;;  %v357_v15 = vor.u32 %v355_v59, %v7219_v12  ;;  %v6328_v12 = vld [vmem:[%s8839_s1 + $0x98] sm:$0xff]   ;;  %v6353_v51 = vld [vmem:[%s8840_s2 + $0xc4] ss:$8 sps:$4 sm:$0xff]  }
  0x3c   :  { %136 = vrot.lane.b32.xlu1 %v131_v37, %s6928_s22  ;;  %134 = vrot.lane.b32.xlu0 %v130_v38, %s6928_s22 }
  0x3d   :  { %445 = vmatpush1.bf16.msra.mxu0 %v426_v10 }
  0x3e   :  { %695 = vmatprep.subr.bf16.mxu0 %v6924_v9 }
  0x40   :  { %218 = vrot.lane.b32.xlu1 %v213_v42, %s6926_s12  ;;  %216 = vrot.lane.b32.xlu0 %v212_v43, %s6926_s12 }
  0x44   :  { %149 = vrot.lane.b32.xlu1 %v144_v49, %s6929_s26  ;;  %147 = vrot.lane.b32.xlu0 %v143_v50, %s6929_s26  ;;  %v592_v50 = vpack.c.bf16 %v7152_v47, %v588_v44  ;;  %v6344_v44 = vld [vmem:[%s8840_s2 + $0x94] ss:$8 sps:$4 sm:$0xff]  }
  0x46   :  { %v624_v54 = vrot.slane %v592_v50, 1  ;;  %v6348_v50 = vld [vmem:[%s8840_s2 + $0xb0] ss:$8 sps:$4 sm:$0xff]  }
  0x48   :  { %230 = vrot.lane.b32.xlu1 %v225_v55, %s6927_s8  ;;  %228 = vrot.lane.b32.xlu0 %v224_v56, %s6927_s8 }
  0x4c   :  { %242 = vrot.lane.b32.xlu1 %v237_v60, %s6928_s22  ;;  %240 = vrot.lane.b32.xlu0 %v236_v61, %s6928_s22  ;;  %v353_v60 = vrot.slane %v7231_v23, 1  ;;  %v361_v61 = vrot.slane %v7229_v22, 1 }
  0x4e   :  { %v362_v23 = vsel %vm322_vm2, %v357_v15, %v361_v61  ;;  %v6401_v15 = vld [vmem:[%s8841_s3 + $0x1c4] ss:$16 sps:$4 sm:$0xff]  }
  0x50   :  { %254 = vrot.lane.b32.xlu1 %v249_v4, %s6929_s26  ;;  %252 = vrot.lane.b32.xlu0 %v248_v5, %s6929_s26  ;;  %v625_v4 = vrot.slane %v7203_v1, 1 }
  0x86   :  { %v70_v16 = vpop.permute.xlu1 %69  ;;  %v57_v17 = vpop.permute.xlu0 %56 }
  0x87   :  { %63 = vst.msk [vmem:[#allocation2] sm:$0xff] %vm62_vm3, %v57_v17 }
  0x88   :  { %76 = vst.msk [vmem:[#allocation2] sm:$0xff] %vm75_vm4, %v70_v16 }
  0x8a   :  { %v72_v20 = vpop.permute.xlu1 %71  ;;  %v59_v21 = vpop.permute.xlu0 %58 }
  0x8b   :  { %64 = vst.msk [vmem:[#allocation2 + $0x10] sm:$0xff] %vm62_vm3, %v59_v21 }
  0x8c   :  { %77 = vst.msk [vmem:[#allocation2 + $0x10] sm:$0xff] %vm75_vm4, %v72_v20 }
  0x8e   :  { %v85_v24 = vpop.permute.xlu1 %84  ;;  %v83_v25 = vpop.permute.xlu0 %82 }
  0x8f   :  { %90 = vst.msk [vmem:[#allocation2 + $0x10] sm:$0xff] %vm88_vm5, %v85_v24  ;;  %89 = vst.msk [vmem:[#allocation2] sm:$0xff] %vm88_vm5, %v83_v25 }
  0x92   :  { %v171_v26 = vpop.permute.xlu1 %170  ;;  %v169_v27 = vpop.permute.xlu0 %168 }
  0x93   :  { %175 = vst.msk [vmem:[#allocation2 + $0x30] sm:$0xff] %vm62_vm3, %v171_v26  ;;  %174 = vst.msk [vmem:[#allocation2 + $0x20] sm:$0xff] %vm62_vm3, %v169_v27  ;;  %v6329_v26 = vld [vmem:[%s8839_s1 + $0xa0] sm:$0xff]   ;;  %v626_v27 = vsel %vm424_vm1, %v624_v54, %v625_v4  ;;  %v6356_v54 = vld [vmem:[%s8840_s2 + $0xd4] ss:$8 sps:$4 sm:$0xff]   ;;  %vm1313_vm3 = vcmask 785408  }
  0x96   :  { %v98_v28 = vpop.permute.xlu1 %97  ;;  %v96_v29 = vpop.permute.xlu0 %95 }
  0x97   :  { %103 = vst.msk [vmem:[#allocation2 + $0x10] sm:$0xff] %vm101_vm6, %v98_v28  ;;  %102 = vst.msk [vmem:[#allocation2] sm:$0xff] %vm101_vm6, %v96_v29  ;;  %v6330_v29 = vld [vmem:[%s8839_s1 + $0xa8] sm:$0xff]  }
  0x9a   :  { %v183_v30 = vpop.permute.xlu1 %182  ;;  %v181_v31 = vpop.permute.xlu0 %180 }
  0x9b   :  { %187 = vst.msk [vmem:[#allocation2 + $0x30] sm:$0xff] %vm75_vm4, %v183_v30  ;;  %186 = vst.msk [vmem:[#allocation2 + $0x20] sm:$0xff] %vm75_vm4, %v181_v31  ;;  %v6331_v30 = vld [vmem:[%s8839_s1 + $0xb0] sm:$0xff]   ;;  %v6332_v31 = vld [vmem:[%s8839_s1 + $0xb8] sm:$0xff]  }
  0x9e   :  { %v111_v32 = vpop.permute.xlu1 %110  ;;  %v109_v33 = vpop.permute.xlu0 %108 }
  0x9f   :  { %116 = vst.msk [vmem:[#allocation2 + $0x10] sm:$0xff] %vm114_vm7, %v111_v32  ;;  %115 = vst.msk [vmem:[#allocation2] sm:$0xff] %vm114_vm7, %v109_v33  ;;  %v6333_v32 = vld [vmem:[%s8839_s1 + $0xc0] sm:$0xff]   ;;  %v6334_v33 = vld [vmem:[%s8839_s1 + $0xc8] sm:$0xff]  }
  0xa2   :  { %v195_v34 = vpop.permute.xlu1 %194  ;;  %v193_v35 = vpop.permute.xlu0 %192 }
  0xa3   :  { %199 = vst.msk [vmem:[#allocation2 + $0x30] sm:$0xff] %vm88_vm5, %v195_v34  ;;  %198 = vst.msk [vmem:[#allocation2 + $0x20] sm:$0xff] %vm88_vm5, %v193_v35  ;;  %v589_v34 = vld [vmem:[#allocation2 + $0x40] sm:$0x3]  ;;  %v630_v35 = vsel %vm424_vm1, %v625_v4, %v629_v13 }
  0xa6   :  { %v124_v36 = vpop.permute.xlu1 %123  ;;  %v122_v37 = vpop.permute.xlu0 %121 }
  0xa7   :  { %129 = vst.msk [vmem:[#allocation2 + $0x10] sm:$0xff] %vm127_vm8, %v124_v36  ;;  %128 = vst.msk [vmem:[#allocation2] sm:$0xff] %vm127_vm8, %v122_v37  ;;  %v593_v37 = vpack.c.bf16 %v589_v34, %v589_v34 }
  0xaa   :  { %v207_v38 = vpop.permute.xlu1 %206  ;;  %v205_v39 = vpop.permute.xlu0 %204 }
  0xab   :  { %211 = vst.msk [vmem:[#allocation2 + $0x30] sm:$0xff] %vm101_vm6, %v207_v38  ;;  %210 = vst.msk [vmem:[#allocation2 + $0x20] sm:$0xff] %vm101_vm6, %v205_v39  ;;  %v627_v38 = vrot.slane %v593_v37, 1 }
  0xae   :  { %v137_v40 = vpop.permute.xlu1 %136  ;;  %v135_v41 = vpop.permute.xlu0 %134 }
  0xaf   :  { %142 = vst.msk [vmem:[#allocation2 + $0x10] sm:$0xff] %vm140_vm9, %v137_v40  ;;  %141 = vst.msk [vmem:[#allocation2] sm:$0xff] %vm140_vm9, %v135_v41  ;;  %v6338_v40 = vld [vmem:[%s8840_s2 + $0x74] ss:$8 sps:$4 sm:$0xff]   ;;  %v6336_v41 = vld [vmem:[%s8840_s2 + $0x70] ss:$8 sps:$4 sm:$0xff]  }
  0xb0   :  { %905 = vmatprep.subr.bf16.mxu1 %v6338_v40 }
  0xb2   :  { %v219_v42 = vpop.permute.xlu1 %218  ;;  %v217_v43 = vpop.permute.xlu0 %216 }
  0xb3   :  { %223 = vst.msk [vmem:[#allocation2 + $0x30] sm:$0xff] %vm114_vm7, %v219_v42  ;;  %222 = vst.msk [vmem:[#allocation2 + $0x20] sm:$0xff] %vm114_vm7, %v217_v43  ;;  %v6341_v42 = vld [vmem:[%s8840_s2 + $0x84] ss:$8 sps:$4 sm:$0xff]   ;;  %v6339_v43 = vld [vmem:[%s8840_s2 + $0x80] ss:$8 sps:$4 sm:$0xff]  }
  0xb6   :  { %v150_v45 = vpop.permute.xlu1 %149  ;;  %v148_v46 = vpop.permute.xlu0 %147 }
  0xb7   :  { %155 = vst.msk [vmem:[#allocation2 + $0x10] sm:$0xff] %vm153_vm10, %v150_v45  ;;  %154 = vst.msk [vmem:[#allocation2] sm:$0xff] %vm153_vm10, %v148_v46  ;;  %v6342_v45 = vld [vmem:[%s8840_s2 + $0x90] ss:$8 sps:$4 sm:$0xff]   ;;  %v6347_v46 = vld [vmem:[%s8840_s2 + $0xa4] ss:$8 sps:$4 sm:$0xff]  }
  0xba   :  { %v231_v48 = vpop.permute.xlu1 %230  ;;  %v229_v49 = vpop.permute.xlu0 %228 }
  0xbb   :  { %235 = vst.msk [vmem:[#allocation2 + $0x30] sm:$0xff] %vm127_vm8, %v231_v48  ;;  %234 = vst.msk [vmem:[#allocation2 + $0x20] sm:$0xff] %vm127_vm8, %v229_v49  ;;  %v6345_v48 = vld [vmem:[%s8840_s2 + $0xa0] ss:$8 sps:$4 sm:$0xff]   ;;  %v6350_v49 = vld [vmem:[%s8840_s2 + $0xb4] ss:$8 sps:$4 sm:$0xff]  }
  0xbe   :  { %v243_v52 = vpop.permute.xlu1 %242  ;;  %v241_v53 = vpop.permute.xlu0 %240  ;;  %v265_v55 = vld [vmem:[#allocation2] sm:$0xff]  ;;  %v267_v56 = vld [vmem:[#allocation2 + $0x10] sm:$0xff] }
  0xbf   :  { %v295_v57 = vld [vmem:[#allocation2] sm:$0xfe]  ;;  %247 = vst.msk [vmem:[#allocation2 + $0x30] sm:$0xff] %vm140_vm9, %v243_v52  ;;  %246 = vst.msk [vmem:[#allocation2 + $0x20] sm:$0xff] %vm140_vm9, %v241_v53  ;;  %v273_v58 = vpack.c.bf16 %v267_v56, %v265_v55  ;;  %v6354_v53 = vld [vmem:[%s8840_s2 + $0xd0] ss:$8 sps:$4 sm:$0xff]  }
  0xc0   :  { %v299_v47 = vpack.c.bf16 %v267_v56, %v295_v57  ;;  %v587_v5 = vld [vmem:[#allocation2] sm:$0xfc] }
  0xc1   :  { %571 = vmatmul.mubr.bf16.vlgmr.msra.gmra.mrb[0].mxu1 %v273_v58  ;;  %v591_v7 = vpack.c.bf16 %v267_v56, %v587_v5  ;;  %v6351_v52 = vld [vmem:[%s8840_s2 + $0xc0] ss:$8 sps:$4 sm:$0xff]   ;;  %v6359_v55 = vld [vmem:[%s8840_s2 + $0x4] ss:$8 sps:$4 sm:$0xff]  }
  0xc2   :  { %v255_v63 = vpop.permute.xlu1 %254  ;;  %v253_v0 = vpop.permute.xlu0 %252  ;;  %5091 = vmatprep.mubr.msk.bf16.mxu1 %vm38_vm0, %v7203_v1  ;;  %v326_v3 = vshll.u32 %v299_v47, 16  ;;  %v324_v17 = vshrl.u32 %v299_v47, 16  ;;  %906 = vmatpush1.bf16.msra.mxu1 %v6336_v41 }
  0xc3   :  { %259 = vst.msk [vmem:[#allocation2 + $0x30] sm:$0xff] %vm153_vm10, %v255_v63  ;;  %258 = vst.msk [vmem:[#allocation2 + $0x20] sm:$0xff] %vm153_vm10, %v253_v0  ;;  %v621_v16 = vrot.slane %v591_v7, 1  ;;  %907 = vmatprep.subr.bf16.mxu1 %v6341_v42 }
  0xc4   :  { %v328_v11 = vrot.slane %v326_v3, 1 }
  0xc6   :  { %v329_v1 = vor.u32 %v328_v11, %v324_v17  ;;  %908 = vmatpush1.bf16.msra.mxu1 %v6339_v43  ;;  %v6405_v17 = vld [vmem:[%s8841_s3 + $0x1e0] ss:$16 sps:$4 sm:$0xff]  }
  0xc7   :  { %909 = vmatprep.subr.bf16.mxu1 %v6344_v44 }
  0xca   :  { %v269_v8 = vld [vmem:[#allocation2 + $0x20] sm:$0xff]  ;;  %v271_v10 = vld [vmem:[#allocation2 + $0x30] sm:$0xff]  ;;  %910 = vmatpush1.bf16.msra.mxu1 %v6342_v45 }
  0xcb   :  { %v275_v14 = vpack.c.bf16 %v271_v10, %v269_v8  ;;  %911 = vmatprep.subr.bf16.mxu1 %v6347_v46 }
  0xcd   :  { %579 = vmatmul.mubr.bf16.gmra.mrb[4].mxu1 %v275_v14  ;;  %v331_v18 = vshll.u32 %v275_v14, 16  ;;  %v347_v20 = vshrl.u32 %v275_v14, 16  ;;  %v622_v22 = vrot.slane %v275_v14, 1  ;;  %v6399_v14 = vld [vmem:[%s8841_s3 + $0x1c0] ss:$16 sps:$4 sm:$0xff]  }
  0xce   :  { %937 = vmatprep.mubr.bf16.mxu1 %v6924_v9  ;;  %912 = vmatpush1.bf16.msra.mxu1 %v6345_v48 }
  0xcf   :  { %v333_v21 = vrot.slane %v331_v18, 1  ;;  %v623_v36 = vsel %vm424_vm1, %v621_v16, %v622_v22  ;;  %v628_v39 = vsel %vm424_vm1, %v622_v22, %v627_v38  ;;  %913 = vmatprep.subr.bf16.mxu1 %v6350_v49  ;;  %v6407_v16 = vld [vmem:[%s8841_s3 + $0x1e4] ss:$16 sps:$4 sm:$0xff]  }
  0xd0   :  { %v6413_v18 = vld [vmem:[%s8841_s3 + $0x204] ss:$16 sps:$4 sm:$0xff]  }
  0xd1   :  { %v334_v24 = vsel %vm322_vm2, %v329_v1, %v333_v21  ;;  %v349_v25 = vor.u32 %v347_v20, %v333_v21  ;;  %v5121_v20 = vld [vmem:[#allocation6] ss:$0 sm:$0xff] }
  0xd2   :  { %461 = vmatmul.mubr.bf16.vlgmr.msra.gmra.mrb[0].mxu0 %v334_v24  ;;  %914 = vmatpush1.bf16.msra.mxu1 %v6348_v50 }
  0xd3   :  { %696 = vmatpush1.bf16.msra.mxu0 %v6327_v19  ;;  %5080 = vmatprep.mubr.msk.bf16.mxu0 %vm38_vm0, %v362_v23  ;;  %v354_v28 = vsel %vm322_vm2, %v349_v25, %v353_v60  ;;  %v6411_v19 = vld [vmem:[%s8841_s3 + $0x200] ss:$16 sps:$4 sm:$0xff]  }
  0xd4   :  { %697 = vmatprep.subr.bf16.mxu0 %v6924_v9  ;;  %915 = vmatprep.subr.bf16.mxu1 %v6353_v51 }
  0xd6   :  { %916 = vmatpush1.bf16.msra.mxu1 %v6351_v52 }
  0xd7   :  { %698 = vmatpush1.bf16.msra.mxu0 %v6328_v12  ;;  %917 = vmatprep.subr.bf16.mxu1 %v6356_v54 }
  0xd8   :  { %699 = vmatprep.subr.bf16.mxu0 %v6924_v9 }
  0xda   :  { %469 = vmatmul.mubr.bf16.gmra.mrb[4].mxu0 %v354_v28  ;;  %918 = vmatpush1.bf16.msra.mxu1 %v6354_v53 }
  0xdb   :  { %700 = vmatpush1.bf16.msra.mxu0 %v6329_v26  ;;  %5119 = vmatprep.mubr.msk.bf16.mxu0 %vm38_vm0, %v626_v27 }
  0xdc   :  { %701 = vmatprep.subr.bf16.mxu0 %v6924_v9  ;;  %1034 = vmatprep.subr.bf16.mxu1 %v6359_v55 }
  0xdf   :  { %702 = vmatpush1.bf16.msra.mxu0 %v6330_v29 }
  0xe0   :  { %703 = vmatprep.subr.bf16.mxu0 %v6924_v9 }
  0xe3   :  { %704 = vmatpush1.bf16.msra.mxu0 %v6331_v30 }
  0xe4   :  { %705 = vmatprep.subr.bf16.mxu0 %v6924_v9 }
  0xe7   :  { %706 = vmatpush1.bf16.msra.mxu0 %v6332_v31 }
  0xe8   :  { %707 = vmatprep.subr.bf16.mxu0 %v6924_v9 }
  0xeb   :  { %708 = vmatpush1.bf16.msra.mxu0 %v6333_v32 }
  0xec   :  { %709 = vmatprep.subr.bf16.mxu0 %v6924_v9 }
  0xef   :  { %710 = vmatpush1.bf16.msra.mxu0 %v6334_v33 }
  0xf0   :  { %711 = vmatprep.subr.bf16.mxu0 %v6924_v9 }
  0xf3   :  { %712 = vmatpush1.bf16.msra.mxu0 %v693_v62 }
  0xf4   :  { %1783 = vmatprep.subr.bf16.mxu0 %v6401_v15 }
  0xf6   :  { %728 = vmatmul.mubr.bf16.vlgmr.msra.gmra.mrb[8].mxu0 %v623_v36 }
  0xf7   :  { %5120 = vmatprep.mubr.msk.bf16.mxu0 %vm38_vm0, %v630_v35  ;;  %1784 = vmatpush1.bf16.msra.mxu0 %v6399_v14 }
  0xf8   :  { %1785 = vmatprep.subr.bf16.mxu0 %v6407_v16  ;;  %v6378_v16 = vld [vmem:[%s8840_s2 + $0xe0] ss:$8 sps:$4 sm:$0xff]  }
  0xfb   :  { %1786 = vmatpush1.bf16.msra.mxu0 %v6405_v17 }
  0xfc   :  { %1787 = vmatprep.subr.bf16.mxu0 %v6413_v18  ;;  %v6383_v18 = vld [vmem:[%s8840_s2 + $0xf4] ss:$8 sps:$4 sm:$0xff]  }
  0xfe   :  { %736 = vmatmul.mubr.bf16.gmra.mrb[12].mxu0 %v628_v39 }
  0xff   :  { %1788 = vmatpush1.bf16.msra.mxu0 %v6411_v19  ;;  %v6381_v19 = vld [vmem:[%s8840_s2 + $0xf0] ss:$8 sps:$4 sm:$0xff]  }
 0x194   :  { %v572_v56 = vpop.f32.mrb[0].mxu1 }
 0x195   :  { %v574_v57 = vpop.f32.mrb[1].mxu1 }
 0x196   :  { %v575_v58 = vpop.f32.mrb[2].mxu1 }
 0x197   :  { %v577_v47 = vpop.f32.mrb[3].mxu1 }
 0x1a0   :  { %v580_v59 = vpop.f32.mrb[4].mxu1 }
 0x1a1   :  { %v582_v60 = vpop.f32.mrb[5].mxu1 }
 0x1a2   :  { %v583_v61 = vpop.f32.mrb[6].mxu1  ;;  %v6360_v60 = vld [vmem:[%s8840_s2 + $0x10] ss:$8 sps:$4 sm:$0xff]  }
 0x1a3   :  { %v585_v62 = vpop.f32.mrb[7].mxu1 }
 0x1a5   :  { %v462_v63 = vpop.f32.mrb[0].mxu0 }
 0x1a6   :  { %v573_v0 = vadd.f32 %v572_v56, %v462_v63  ;;  %v464_v2 = vpop.f32.mrb[1].mxu0  ;;  %v6357_v56 = vld [vmem:[%s8840_s2] ss:$8 sps:$4 sm:$0xff]  }
 0x1a7   :  { %v465_v3 = vpop.f32.mrb[2].mxu0 }
 0x1a8   :  { %v576_v4 = vadd.f32 %v575_v58, %v465_v3  ;;  %v467_v5 = vpop.f32.mrb[3].mxu0  ;;  %v6368_v3 = vld [vmem:[%s8840_s2 + $0x34] ss:$8 sps:$4 sm:$0xff]  }
 0x1a9   :  { %v6371_v5 = vld [vmem:[%s8840_s2 + $0x44] ss:$8 sps:$4 sm:$0xff]  }
 0x1ad   :  { %v470_v6 = vpop.f32.mrb[4].mxu0 }
 0x1ae   :  { %v581_v7 = vadd.f32 %v580_v59, %v470_v6  ;;  %v472_v8 = vpop.f32.mrb[5].mxu0  ;;  %v6362_v59 = vld [vmem:[%s8840_s2 + $0x14] ss:$8 sps:$4 sm:$0xff]   ;;  %v6369_v6 = vld [vmem:[%s8840_s2 + $0x40] ss:$8 sps:$4 sm:$0xff]  }
 0x1af   :  { %v473_v10 = vpop.f32.mrb[6].mxu0  ;;  %v6372_v8 = vld [vmem:[%s8840_s2 + $0x50] ss:$8 sps:$4 sm:$0xff]  }
 0x1b0   :  { %v584_v11 = vadd.f32 %v583_v61, %v473_v10  ;;  %v475_v13 = vpop.f32.mrb[7].mxu0  ;;  %v6365_v61 = vld [vmem:[%s8840_s2 + $0x24] ss:$8 sps:$4 sm:$0xff]  }
 0x1b1   :  { %v6377_v10 = vld [vmem:[%s8840_s2 + $0x64] ss:$8 sps:$4 sm:$0xff]  }
 0x1b2   :  { %v6380_v13 = vld [vmem:[%s8840_s2 + $0xe4] ss:$8 sps:$4 sm:$0xff]  }
 0x1c9   :  { %v729_v1 = vpop.f32.mrb[8].mxu0 }
 0x1ca   :  { %v744_v21 = vadd.f32 %v729_v1, %v573_v0  ;;  %v731_v22 = vpop.f32.mrb[9].mxu0  ;;  %v6363_v0 = vld [vmem:[%s8840_s2 + $0x20] ss:$8 sps:$4 sm:$0xff]  }
 0x1cb   :  { %v732_v23 = vpop.f32.mrb[10].mxu0  ;;  %v6384_v22 = vld [vmem:[%s8840_s2 + $0x100] ss:$8 sps:$4 sm:$0xff]  }
 0x1cc   :  { %v754_v24 = vadd.f32 %v5121_v20, %v744_v21  ;;  %v745_v12 = vadd.f32 %v732_v23, %v576_v4  ;;  %v734_v25 = vpop.f32.mrb[11].mxu0  ;;  %v6366_v4 = vld [vmem:[%s8840_s2 + $0x30] ss:$8 sps:$4 sm:$0xff]  }
 0x1cd   :  { %v6392_v25 = vld [vmem:[%s8840_s2 + $0x124] ss:$8 sps:$4 sm:$0xff]  }
 0x1ce   :  { %v762_v26 = vmin.f32 %v754_v24, 0.0  ;;  %v755_v27 = vadd.f32 %v5121_v20, %v745_v12  ;;  %vm758_vm12 = vcmp.gt.f32.partialorder %v754_v24, 0.0  ;;  %v6387_v12 = vld [vmem:[%s8840_s2 + $0x110] ss:$8 sps:$4 sm:$0xff]  }
 0x1d0   :  { %v766_v28 = vmul.f32 1.442695, %v762_v26  ;;  %v763_v29 = vmin.f32 %v755_v27, 0.0  ;;  %vm759_vm13 = vcmp.gt.f32.partialorder %v755_v27, 0.0  ;;  %v6390_v26 = vld [vmem:[%s8840_s2 + $0x120] ss:$8 sps:$4 sm:$0xff]  }
 0x1d1   :  { %v737_v30 = vpop.f32.mrb[12].mxu0 }
 0x1d2   :  { %6811 = vpow2.f32 %v766_v28  ;;  %v768_v31 = vmul.f32 1.442695, %v763_v29  ;;  %v746_v32 = vadd.f32 %v737_v30, %v581_v7  ;;  %v739_v33 = vpop.f32.mrb[13].mxu0  ;;  %v6374_v7 = vld [vmem:[%s8840_s2 + $0x54] ss:$8 sps:$4 sm:$0xff]  }
 0x1d3   :  { %v740_v34 = vpop.f32.mrb[14].mxu0  ;;  %v6393_v28 = vld [vmem:[%s8840_s2 + $0x130] ss:$8 sps:$4 sm:$0xff]   ;;  %v6398_v29 = vld [vmem:[%s8840_s2 + $0x144] ss:$8 sps:$4 sm:$0xff]  }
 0x1d4   :  { %6813 = vpow2.f32 %v768_v31  ;;  %v756_v35 = vadd.f32 %v5121_v20, %v746_v32  ;;  %v747_v36 = vadd.f32 %v740_v34, %v584_v11  ;;  %v742_v37 = vpop.f32.mrb[15].mxu0  ;;  %v6375_v11 = vld [vmem:[%s8840_s2 + $0x60] ss:$8 sps:$4 sm:$0xff]   ;;  %v6404_v31 = vld [vmem:[%s8841_s3 + $0x1cc] ss:$16 sps:$4 sm:$0xff]  }
 0x1d5   :  { %v6396_v30 = vld [vmem:[%s8840_s2 + $0x140] ss:$8 sps:$4 sm:$0xff]  }
 0x1d6   :  { %v764_v38 = vmin.f32 %v756_v35, 0.0  ;;  %v757_v39 = vadd.f32 %v5121_v20, %v747_v36  ;;  %vm760_vm14 = vcmp.gt.f32.partialorder %v756_v35, 0.0  ;;  %v6386_v20 = vld [vmem:[%s8840_s2 + $0x104] ss:$8 sps:$4 sm:$0xff]   ;;  %v6402_v34 = vld [vmem:[%s8841_s3 + $0x1c8] ss:$16 sps:$4 sm:$0xff]  }
 0x1d7   :  { %v6410_v36 = vld [vmem:[%s8841_s3 + $0x1ec] ss:$16 sps:$4 sm:$0xff]   ;;  %v6408_v37 = vld [vmem:[%s8841_s3 + $0x1e8] ss:$16 sps:$4 sm:$0xff]  }
 0x1d8   :  { %v770_v40 = vmul.f32 1.442695, %v764_v38  ;;  %v765_v41 = vmin.f32 %v757_v39, 0.0  ;;  %vm761_vm15 = vcmp.gt.f32.partialorder %v757_v39, 0.0  ;;  %v6416_v38 = vld [vmem:[%s8841_s3 + $0x20c] ss:$16 sps:$4 sm:$0xff]  }
 0x1da   :  { %6815 = vpow2.f32 %v770_v40  ;;  %v772_v42 = vmul.f32 1.442695, %v765_v41  ;;  %v6414_v41 = vld [vmem:[%s8841_s3 + $0x208] ss:$16 sps:$4 sm:$0xff]  }
 0x1dc   :  { %v6812_v43 = vpop.eup %6811  ;;  %6817 = vpow2.f32 %v772_v42 }
 0x1dd   :  { %v5122_v44 = vadd.f32 -1.0, %v6812_v43  ;;  %v6422_v43 = vld [vmem:[%s8841_s3 + $0x22c] ss:$16 sps:$4 sm:$0xff]  }
 0x1de   :  { %v6814_v45 = vpop.eup %6813 }
 0x1df   :  { %v778_v46 = vsel %vm758_vm12, %v754_v24, %v5122_v44  ;;  %v5123_v48 = vadd.f32 -1.0, %v6814_v45  ;;  %v6389_v24 = vld [vmem:[%s8840_s2 + $0x114] ss:$8 sps:$4 sm:$0xff]   ;;  %v6417_v44 = vld [vmem:[%s8841_s3 + $0x220] ss:$16 sps:$4 sm:$0xff]  }
 0x1e0   :  { %783 = vst.msk [vmem:[#allocation3] sm:$0xff] %vm782_vm11, %v778_v46  ;;  %v6420_v45 = vld [vmem:[%s8841_s3 + $0x228] ss:$16 sps:$4 sm:$0xff]   ;;  %v6425_v46 = vld [vmem:[%s8841_s3 + $0x244] ss:$16 sps:$4 sm:$0xff]  }
 0x1e1   :  { %v779_v49 = vsel %vm759_vm13, %v755_v27, %v5123_v48  ;;  %v6395_v27 = vld [vmem:[%s8840_s2 + $0x134] ss:$8 sps:$4 sm:$0xff]  }
 0x1e2   :  { %784 = vst.msk [vmem:[#allocation3 + $0x8] sm:$0xff] %vm782_vm11, %v779_v49  ;;  %v6428_v48 = vld [vmem:[%s8841_s3 + $0x24c] ss:$16 sps:$4 sm:$0xff]   ;;  %v6423_v49 = vld [vmem:[%s8841_s3 + $0x240] ss:$16 sps:$4 sm:$0xff]  }
 0x1e4   :  { %v6816_v50 = vpop.eup %6815 }
 0x1e5   :  { %v5124_v51 = vadd.f32 -1.0, %v6816_v50  ;;  %v6426_v50 = vld [vmem:[%s8841_s3 + $0x248] ss:$16 sps:$4 sm:$0xff]  }
 0x1e6   :  { %v6818_v52 = vpop.eup %6817 }
 0x1e7   :  { %v780_v53 = vsel %vm760_vm14, %v756_v35, %v5124_v51  ;;  %v5125_v54 = vadd.f32 -1.0, %v6818_v52  ;;  %v788_v15 = vld [vmem:[#allocation3] sm:$0xff]  ;;  %v6434_v52 = vld [vmem:[%s8841_s3 + $0x26c] ss:$16 sps:$4 sm:$0xff]  }
 0x1e8   :  { %785 = vst.msk [vmem:[#allocation3 + $0x10] sm:$0xff] %vm782_vm11, %v780_v53  ;;  %v6431_v51 = vld [vmem:[%s8841_s3 + $0x264] ss:$16 sps:$4 sm:$0xff]   ;;  %v6429_v53 = vld [vmem:[%s8841_s3 + $0x260] ss:$16 sps:$4 sm:$0xff]  }
 0x1e9   :  { %v781_v55 = vsel %vm761_vm15, %v757_v39, %v5125_v54  ;;  %v808_v57 = vld [vmem:[#allocation3 + $0x1] sm:$0xff] }
 0x1ea   :  { %786 = vst.msk [vmem:[#allocation3 + $0x18] sm:$0xff] %vm782_vm11, %v781_v55  ;;  %v789_v14 = vld [vmem:[#allocation3 + $0x8] sm:$0xff]  ;;  %v6437_v55 = vld [vmem:[%s8841_s3 + $0x284] ss:$16 sps:$4 sm:$0xff]  }
 0x1eb   :  { %v792_v17 = vpack.c.bf16 %v789_v14, %v788_v15  ;;  %v1087_v33 = vld [vmem:[#allocation3 + $0x2] sm:$0xff] }
 0x1ec   :  { %v6432_v54 = vld [vmem:[%s8841_s3 + $0x268] ss:$16 sps:$4 sm:$0xff]   ;;  %v6467_v14 = vld [vmem:[%s8841_s3 + $0x324] ss:$16 sps:$4 sm:$0xff]  }
 0x1ed   :  { %v6468_v15 = vld [vmem:[%s8841_s3 + $0x328] ss:$16 sps:$4 sm:$0xff]  }
 0x1ef   :  { %v809_v58 = vld [vmem:[#allocation3 + $0x9] sm:$0xff] }
 0x1f0   :  { %v812_v47 = vpack.c.bf16 %v809_v58, %v808_v57  ;;  %v790_v21 = vld [vmem:[#allocation3 + $0x10] sm:$0xff]  ;;  %v6438_v58 = vld [vmem:[%s8841_s3 + $0x288] ss:$16 sps:$4 sm:$0xff]  }
 0x1f1   :  { %v810_v62 = vld [vmem:[#allocation3 + $0x11] sm:$0xff]  ;;  %v811_v63 = vld [vmem:[#allocation3 + $0x19] sm:$0xff] }
 0x1f2   :  { %5154 = vmatmul.mubr.msk.bf16.vlgmr.msra.gmra.mrb[8].mxu1 %vm782_vm11, %v812_v47  ;;  %v813_v2 = vpack.c.bf16 %v811_v63, %v810_v62  ;;  %v791_v1 = vld [vmem:[#allocation3 + $0x18] sm:$0xff]  ;;  %v1088_v32 = vld [vmem:[#allocation3 + $0xa] sm:$0xff]  ;;  %v6443_v47 = vld [vmem:[%s8841_s3 + $0x2a4] ss:$16 sps:$4 sm:$0xff]  }
 0x1f3   :  { %1035 = vmatpush1.bf16.msra.mxu1 %v6357_v56  ;;  %947 = vmatprep.mubr.bf16.mxu1 %v6924_v9  ;;  %v793_v23 = vpack.c.bf16 %v791_v1, %v790_v21  ;;  %v1091_v35 = vpack.c.bf16 %v1088_v32, %v1087_v33  ;;  %v1089_v39 = vld [vmem:[#allocation3 + $0x12] sm:$0xff]  ;;  %v1090_v40 = vld [vmem:[#allocation3 + $0x1a] sm:$0xff] }
 0x1f4   :  { %1036 = vmatprep.subr.bf16.mxu1 %v6362_v59  ;;  %v1092_v42 = vpack.c.bf16 %v1090_v40, %v1089_v39  ;;  %v6440_v56 = vld [vmem:[%s8841_s3 + $0x28c] ss:$16 sps:$4 sm:$0xff]   ;;  %v6435_v57 = vld [vmem:[%s8841_s3 + $0x280] ss:$16 sps:$4 sm:$0xff]   ;;  %v6449_v62 = vld [vmem:[%s8841_s3 + $0x2c4] ss:$16 sps:$4 sm:$0xff]  }
 0x1f5   :  { %v6446_v59 = vld [vmem:[%s8841_s3 + $0x2ac] ss:$16 sps:$4 sm:$0xff]   ;;  %v6479_v1 = vld [vmem:[%s8841_s3 + $0x364] ss:$16 sps:$4 sm:$0xff]  }
 0x1f6   :  { %v6452_v63 = vld [vmem:[%s8841_s3 + $0x2cc] ss:$16 sps:$4 sm:$0xff]  }
 0x1f7   :  { %1037 = vmatpush1.bf16.msra.mxu1 %v6360_v60  ;;  %v6441_v60 = vld [vmem:[%s8841_s3 + $0x2a0] ss:$16 sps:$4 sm:$0xff]   ;;  %v6482_v21 = vld [vmem:[%s8841_s3 + $0x36c] ss:$16 sps:$4 sm:$0xff]  }
 0x1f8   :  { %1038 = vmatprep.subr.bf16.mxu1 %v6365_v61  ;;  %v6444_v61 = vld [vmem:[%s8841_s3 + $0x2a8] ss:$16 sps:$4 sm:$0xff]  }
 0x1fa   :  { %5155 = vmatmul.mubr.msk.bf16.gmra.mrb[12].mxu1 %vm782_vm11, %v813_v2  ;;  %v6450_v2 = vld [vmem:[%s8841_s3 + $0x2c8] ss:$16 sps:$4 sm:$0xff]  }
 0x1fb   :  { %1039 = vmatpush1.bf16.msra.mxu1 %v6363_v0  ;;  %1066 = vmatprep.mubr.bf16.mxu1 %v6924_v9  ;;  %v6447_v0 = vld [vmem:[%s8841_s3 + $0x2c0] ss:$16 sps:$4 sm:$0xff]  }
 0x1fc   :  { %1040 = vmatprep.subr.bf16.mxu1 %v6368_v3  ;;  %v6455_v3 = vld [vmem:[%s8841_s3 + $0x2e4] ss:$16 sps:$4 sm:$0xff]  }
 0x1ff   :  { %1041 = vmatpush1.bf16.msra.mxu1 %v6366_v4  ;;  %v6458_v4 = vld [vmem:[%s8841_s3 + $0x2ec] ss:$16 sps:$4 sm:$0xff]  }
 0x200   :  { %1042 = vmatprep.subr.bf16.mxu1 %v6371_v5  ;;  %v6453_v5 = vld [vmem:[%s8841_s3 + $0x2e0] ss:$16 sps:$4 sm:$0xff]  }
 0x203   :  { %1043 = vmatpush1.bf16.msra.mxu1 %v6369_v6  ;;  %v6456_v6 = vld [vmem:[%s8841_s3 + $0x2e8] ss:$16 sps:$4 sm:$0xff]  }
 0x204   :  { %1044 = vmatprep.subr.bf16.mxu1 %v6374_v7  ;;  %v6461_v7 = vld [vmem:[%s8841_s3 + $0x304] ss:$16 sps:$4 sm:$0xff]  }
 0x207   :  { %1045 = vmatpush1.bf16.msra.mxu1 %v6372_v8  ;;  %v6464_v8 = vld [vmem:[%s8841_s3 + $0x30c] ss:$16 sps:$4 sm:$0xff]  }
 0x208   :  { %1046 = vmatprep.subr.bf16.mxu1 %v6377_v10  ;;  %v6459_v10 = vld [vmem:[%s8841_s3 + $0x300] ss:$16 sps:$4 sm:$0xff]  }
 0x20b   :  { %1047 = vmatpush1.bf16.msra.mxu1 %v6375_v11  ;;  %v6462_v11 = vld [vmem:[%s8841_s3 + $0x308] ss:$16 sps:$4 sm:$0xff]  }
 0x20c   :  { %1184 = vmatprep.subr.bf16.mxu1 %v6380_v13  ;;  %v6465_v13 = vld [vmem:[%s8841_s3 + $0x320] ss:$16 sps:$4 sm:$0xff]  }
 0x20e   :  { %5170 = vmatmul.mubr.msk.bf16.vlgmr.msra.gmra.mrb[8].mxu1 %vm782_vm11, %v792_v17  ;;  %v6473_v17 = vld [vmem:[%s8841_s3 + $0x344] ss:$16 sps:$4 sm:$0xff]  }
 0x20f   :  { %1185 = vmatpush1.bf16.msra.mxu1 %v6378_v16  ;;  %1076 = vmatprep.mubr.bf16.mxu1 %v6924_v9  ;;  %v6470_v16 = vld [vmem:[%s8841_s3 + $0x32c] ss:$16 sps:$4 sm:$0xff]  }
 0x210   :  { %1186 = vmatprep.subr.bf16.mxu1 %v6383_v18  ;;  %v6476_v18 = vld [vmem:[%s8841_s3 + $0x34c] ss:$16 sps:$4 sm:$0xff]  }
 0x213   :  { %1187 = vmatpush1.bf16.msra.mxu1 %v6381_v19  ;;  %v6471_v19 = vld [vmem:[%s8841_s3 + $0x340] ss:$16 sps:$4 sm:$0xff]  }
 0x214   :  { %1188 = vmatprep.subr.bf16.mxu1 %v6386_v20  ;;  %v6474_v20 = vld [vmem:[%s8841_s3 + $0x348] ss:$16 sps:$4 sm:$0xff]  }
 0x216   :  { %5171 = vmatmul.mubr.msk.bf16.gmra.mrb[12].mxu1 %vm782_vm11, %v793_v23  ;;  %v6480_v23 = vld [vmem:[%s8841_s3 + $0x368] ss:$16 sps:$4 sm:$0xff]  }
 0x217   :  { %1189 = vmatpush1.bf16.msra.mxu1 %v6384_v22  ;;  %1216 = vmatprep.mubr.bf16.mxu1 %v6924_v9  ;;  %v6477_v22 = vld [vmem:[%s8841_s3 + $0x360] ss:$16 sps:$4 sm:$0xff]  }
 0x218   :  { %1190 = vmatprep.subr.bf16.mxu1 %v6389_v24  ;;  %v6485_v24 = vld [vmem:[%s8841_s3 + $0x4] ss:$16 sps:$4 sm:$0xff]  }
 0x21b   :  { %1191 = vmatpush1.bf16.msra.mxu1 %v6387_v12  ;;  %v6488_v12 = vld [vmem:[%s8841_s3 + $0xc] ss:$16 sps:$4 sm:$0xff]  }
 0x21c   :  { %1192 = vmatprep.subr.bf16.mxu1 %v6392_v25  ;;  %v1246_v25 = vlaneseq }
 0x21f   :  { %1193 = vmatpush1.bf16.msra.mxu1 %v6390_v26  ;;  %v7633_v26 = vshrl.u32 %v1246_v25, 7 }
 0x220   :  { %1194 = vmatprep.subr.bf16.mxu1 %v6395_v27 }
 0x221   :  { %v1248_v27 = vsub.s32 0, %v7633_v26 }
 0x223   :  { %1195 = vmatpush1.bf16.msra.mxu1 %v6393_v28  ;;  %v787_v28 = vld [vmem:[#allocation6 + $0x1] sm:$0x3] }
 0x224   :  { %1196 = vmatprep.subr.bf16.mxu1 %v6398_v29  ;;  %v1252_v29 = vsub.s32 1, %v7633_v26 }
 0x227   :  { %1197 = vmatpush1.bf16.msra.mxu1 %v6396_v30  ;;  %v1249_v30 = vrot.slane %v787_v28, %v1248_v27 }
 0x228   :  { %1836 = vmatprep.subr.bf16.mxu1 %v6404_v31  ;;  %v1253_v31 = vrot.slane %v787_v28, %v1252_v29 }
 0x22a   :  { %5200 = vmatmul.mubr.msk.bf16.vlgmr.msra.gmra.mrb[8].mxu1 %vm782_vm11, %v1091_v35 }
 0x22b   :  { %1226 = vmatprep.mubr.bf16.mxu1 %v6924_v9  ;;  %1837 = vmatpush1.bf16.msra.mxu1 %v6402_v34  ;;  %v6419_v9 = vld [vmem:[%s8841_s3 + $0x224] ss:$16 sps:$4 sm:$0xff]  }
 0x22c   :  { %1838 = vmatprep.subr.bf16.mxu1 %v6410_v36  ;;  %1789 = vmatprep.subr.bf16.mxu0 %v6419_v9 }
 0x22d   :  { %1790 = vmatpush1.bf16.msra.mxu0 %v6417_v44 }
 0x22e   :  { %1791 = vmatprep.subr.bf16.mxu0 %v6425_v46 }
 0x22f   :  { %1839 = vmatpush1.bf16.msra.mxu1 %v6408_v37 }
 0x230   :  { %1840 = vmatprep.subr.bf16.mxu1 %v6416_v38 }
 0x231   :  { %1792 = vmatpush1.bf16.msra.mxu0 %v6423_v49 }
 0x232   :  { %5201 = vmatmul.mubr.msk.bf16.gmra.mrb[12].mxu1 %vm782_vm11, %v1092_v42  ;;  %1793 = vmatprep.subr.bf16.mxu0 %v6431_v51 }
 0x233   :  { %1841 = vmatpush1.bf16.msra.mxu1 %v6414_v41 }
 0x234   :  { %1842 = vmatprep.subr.bf16.mxu1 %v6422_v43 }
 0x235   :  { %1794 = vmatpush1.bf16.msra.mxu0 %v6429_v53 }
 0x236   :  { %1795 = vmatprep.subr.bf16.mxu0 %v6437_v55 }
 0x237   :  { %1843 = vmatpush1.bf16.msra.mxu1 %v6420_v45 }
 0x238   :  { %1844 = vmatprep.subr.bf16.mxu1 %v6428_v48 }
 0x239   :  { %1796 = vmatpush1.bf16.msra.mxu0 %v6435_v57 }
 0x23a   :  { %1797 = vmatprep.subr.bf16.mxu0 %v6443_v47 }
 0x23b   :  { %1845 = vmatpush1.bf16.msra.mxu1 %v6426_v50 }
 0x23c   :  { %1846 = vmatprep.subr.bf16.mxu1 %v6434_v52 }
 0x23d   :  { %1798 = vmatpush1.bf16.msra.mxu0 %v6441_v60 }
 0x23e   :  { %1799 = vmatprep.subr.bf16.mxu0 %v6449_v62 }
 0x23f   :  { %1847 = vmatpush1.bf16.msra.mxu1 %v6432_v54 }
 0x240   :  { %1848 = vmatprep.subr.bf16.mxu1 %v6440_v56 }
 0x241   :  { %1800 = vmatpush1.bf16.msra.mxu0 %v6447_v0 }
 0x242   :  { %1801 = vmatprep.subr.bf16.mxu0 %v6455_v3 }
 0x243   :  { %1849 = vmatpush1.bf16.msra.mxu1 %v6438_v58 }
 0x244   :  { %1850 = vmatprep.subr.bf16.mxu1 %v6446_v59 }
 0x245   :  { %1802 = vmatpush1.bf16.msra.mxu0 %v6453_v5 }
 0x246   :  { %1803 = vmatprep.subr.bf16.mxu0 %v6461_v7 }
 0x247   :  { %1851 = vmatpush1.bf16.msra.mxu1 %v6444_v61 }
 0x248   :  { %1852 = vmatprep.subr.bf16.mxu1 %v6452_v63 }
 0x249   :  { %1804 = vmatpush1.bf16.msra.mxu0 %v6459_v10 }
 0x24a   :  { %1805 = vmatprep.subr.bf16.mxu0 %v6467_v14 }
 0x24b   :  { %1853 = vmatpush1.bf16.msra.mxu1 %v6450_v2 }
 0x24c   :  { %1854 = vmatprep.subr.bf16.mxu1 %v6458_v4 }
 0x24d   :  { %1806 = vmatpush1.bf16.msra.mxu0 %v6465_v13 }
 0x24e   :  { %1807 = vmatprep.subr.bf16.mxu0 %v6473_v17 }
 0x24f   :  { %1855 = vmatpush1.bf16.msra.mxu1 %v6456_v6 }
 0x250   :  { %1856 = vmatprep.subr.bf16.mxu1 %v6464_v8 }
 0x251   :  { %1808 = vmatpush1.bf16.msra.mxu0 %v6471_v19 }
 0x252   :  { %1809 = vmatprep.subr.bf16.mxu0 %v6479_v1 }
 0x253   :  { %1857 = vmatpush1.bf16.msra.mxu1 %v6462_v11 }
 0x254   :  { %1858 = vmatprep.subr.bf16.mxu1 %v6470_v16 }
 0x255   :  { %1810 = vmatpush1.bf16.msra.mxu0 %v6477_v22 }
 0x256   :  { %2174 = vmatprep.subr.bf16.mxu0 %v6485_v24 }
 0x257   :  { %1859 = vmatpush1.bf16.msra.mxu1 %v6468_v15 }
 0x258   :  { %1860 = vmatprep.subr.bf16.mxu1 %v6476_v18 }
 0x25b   :  { %1861 = vmatpush1.bf16.msra.mxu1 %v6474_v20 }
 0x25c   :  { %1862 = vmatprep.subr.bf16.mxu1 %v6482_v21 }
 0x25f   :  { %1863 = vmatpush1.bf16.msra.mxu1 %v6480_v23 }
 0x260   :  { %2227 = vmatprep.subr.bf16.mxu1 %v6488_v12 }
 0x2fd   :  { %v1218_v32 = vpop.f32.mrb[8].mxu1 }
 0x2fe   :  { %v1256_v33 = vadd.f32 %v1249_v30, %v1218_v32  ;;  %v1220_v34 = vpop.f32.mrb[9].mxu1 }
 0x2ff   :  { %v1257_v35 = vadd.f32 %v1253_v31, %v1220_v34  ;;  %v1222_v36 = vpop.f32.mrb[10].mxu1  ;;  %v1393_v34 = vld [vmem:[#allocation4 + $0x48] sm:$0x1] }
 0x300   :  { %v1272_v37 = vmin.f32 %v1256_v33, 0.0  ;;  %v1258_v38 = vadd.f32 %v1249_v30, %v1222_v36  ;;  %v1224_v39 = vpop.f32.mrb[11].mxu1  ;;  %vm1264_vm0 = vcmp.gt.f32.partialorder %v1256_v33, 0.0  ;;  %v1397_v36 = vpack.c.bf16 %v1393_v34, %v1393_v34  ;;  %v6513_v34 = vld [vmem:[%s8841_s3 + $0xa0] ss:$16 sps:$4 sm:$0xff]  }
 0x301   :  { %v1273_v40 = vmin.f32 %v1257_v35, 0.0  ;;  %v1259_v41 = vadd.f32 %v1253_v31, %v1224_v39  ;;  %vm1265_vm4 = vcmp.gt.f32.partialorder %v1257_v35, 0.0 }
 0x302   :  { %v1280_v42 = vmul.f32 1.442695, %v1272_v37  ;;  %v1274_v9 = vmin.f32 %v1258_v38, 0.0  ;;  %vm1266_vm5 = vcmp.gt.f32.partialorder %v1258_v38, 0.0 }
 0x303   :  { %v1282_v43 = vmul.f32 1.442695, %v1273_v40  ;;  %v1275_v44 = vmin.f32 %v1259_v41, 0.0  ;;  %vm1267_vm6 = vcmp.gt.f32.partialorder %v1259_v41, 0.0 }
 0x304   :  { %6819 = vpow2.f32 %v1280_v42  ;;  %v1284_v45 = vmul.f32 1.442695, %v1274_v9 }
 0x305   :  { %6821 = vpow2.f32 %v1282_v43  ;;  %v1286_v46 = vmul.f32 1.442695, %v1275_v44  ;;  %v1228_v48 = vpop.f32.mrb[12].mxu1  ;;  %v1491_v43 = vshll.u32 %v1397_v36, 16  ;;  %v6521_v36 = vld [vmem:[%s8841_s3 + $0xc4] ss:$16 sps:$4 sm:$0xff]  }
 0x306   :  { %6823 = vpow2.f32 %v1284_v45  ;;  %v1260_v49 = vadd.f32 %v1249_v30, %v1228_v48  ;;  %v1230_v50 = vpop.f32.mrb[13].mxu1 }
 0x307   :  { %6825 = vpow2.f32 %v1286_v46  ;;  %v1261_v51 = vadd.f32 %v1253_v31, %v1230_v50  ;;  %v1232_v52 = vpop.f32.mrb[14].mxu1  ;;  %v1392_v46 = vld [vmem:[#allocation4 + $0x40] sm:$0x1] }
 0x308   :  { %v1276_v53 = vmin.f32 %v1260_v49, 0.0  ;;  %v1262_v54 = vadd.f32 %v1249_v30, %v1232_v52  ;;  %v1234_v55 = vpop.f32.mrb[15].mxu1  ;;  %vm1268_vm7 = vcmp.gt.f32.partialorder %v1260_v49, 0.0 }
 0x309   :  { %v1277_v56 = vmin.f32 %v1261_v51, 0.0  ;;  %v1263_v57 = vadd.f32 %v1253_v31, %v1234_v55  ;;  %vm1269_vm8 = vcmp.gt.f32.partialorder %v1261_v51, 0.0  ;;  %v1493_v55 = vrot.slane %v1491_v43, 1  ;;  %v6533_v43 = vld [vmem:[%s8841_s3 + $0x104] ss:$16 sps:$4 sm:$0xff]  }
 0x30a   :  { %v1288_v58 = vmul.f32 1.442695, %v1276_v53  ;;  %v1278_v47 = vmin.f32 %v1262_v54, 0.0  ;;  %vm1270_vm9 = vcmp.gt.f32.partialorder %v1262_v54, 0.0 }
 0x30b   :  { %v1290_v59 = vmul.f32 1.442695, %v1277_v56  ;;  %v1279_v60 = vmin.f32 %v1263_v57, 0.0  ;;  %vm1271_vm10 = vcmp.gt.f32.partialorder %v1263_v57, 0.0  ;;  %v1396_v56 = vpack.c.bf16 %v1392_v46, %v1392_v46  ;;  %v6531_v46 = vld [vmem:[%s8841_s3 + $0x100] ss:$16 sps:$4 sm:$0xff]  }
 0x30c   :  { %6827 = vpow2.f32 %v1288_v58  ;;  %v1292_v61 = vmul.f32 1.442695, %v1278_v47 }
 0x30d   :  { %6829 = vpow2.f32 %v1290_v59  ;;  %v1294_v62 = vmul.f32 1.442695, %v1279_v60  ;;  %v6483_v60 = vld [vmem:[%s8841_s3] ss:$16 sps:$4 sm:$0xff]  }
 0x30e   :  { %v6820_v63 = vpop.eup %6819  ;;  %6831 = vpow2.f32 %v1292_v61  ;;  %v6486_v61 = vld [vmem:[%s8841_s3 + $0x8] ss:$16 sps:$4 sm:$0xff]  }
 0x30f   :  { %v6822_v0 = vpop.eup %6821  ;;  %v5202_v2 = vadd.f32 -1.0, %v6820_v63  ;;  %6833 = vpow2.f32 %v1294_v62 }
 0x310   :  { %v6824_v3 = vpop.eup %6823  ;;  %v5203_v4 = vadd.f32 -1.0, %v6822_v0 }
 0x311   :  { %v6826_v5 = vpop.eup %6825  ;;  %v1304_v6 = vsel %vm1264_vm0, %v1256_v33, %v5202_v2  ;;  %v5204_v7 = vadd.f32 -1.0, %v6824_v3  ;;  %v6491_v2 = vld [vmem:[%s8841_s3 + $0x24] ss:$16 sps:$4 sm:$0xff]   ;;  %v6494_v3 = vld [vmem:[%s8841_s3 + $0x2c] ss:$16 sps:$4 sm:$0xff]  }
 0x312   :  { %1312 = vst [vmem:[#allocation4] sm:$0xff] %v1304_v6  ;;  %v1305_v8 = vsel %vm1265_vm4, %v1257_v35, %v5203_v4  ;;  %v5205_v10 = vadd.f32 -1.0, %v6826_v5  ;;  %v1483_v4 = vshll.u32 %v1396_v56, 16  ;;  %v6543_v56 = vld [vmem:[%s8841_s3 + $0x140] ss:$16 sps:$4 sm:$0xff]  }
 0x313   :  { %1314 = vst.msk [vmem:[#allocation4 + $0x8] sm:$0xff] %vm1313_vm3, %v1305_v8  ;;  %v7642_v11 = vsel %vm1266_vm5, %v1258_v38, %v5204_v7  ;;  %v6492_v7 = vld [vmem:[%s8841_s3 + $0x28] ss:$16 sps:$4 sm:$0xff]   ;;  %vm3794_vm5 = vcmask 1045504  }
 0x314   :  { %v1307_v13 = vsel %vm1267_vm6, %v1259_v41, %v5205_v10  ;;  %v7645_v14 = vpack.c.bf16 %v7642_v11, %v1304_v6  ;;  %v6489_v6 = vld [vmem:[%s8841_s3 + $0x20] ss:$16 sps:$4 sm:$0xff]   ;;  %v6497_v10 = vld [vmem:[%s8841_s3 + $0x44] ss:$16 sps:$4 sm:$0xff]   ;;  %vm4220_vm6 = vcmask 1044480  }
 0x315   :  { %1316 = vst.msk [vmem:[#allocation4 + $0x18] sm:$0xff] %vm1313_vm3, %v1307_v13  ;;  %v6500_v13 = vld [vmem:[%s8841_s3 + $0x4c] ss:$16 sps:$4 sm:$0xff]  }
 0x316   :  { %v6828_v15 = vpop.eup %6827 }
 0x317   :  { %v6830_v16 = vpop.eup %6829  ;;  %v5206_v17 = vadd.f32 -1.0, %v6828_v15 }
 0x318   :  { %v6832_v18 = vpop.eup %6831  ;;  %v5207_v19 = vadd.f32 -1.0, %v6830_v16  ;;  %v1485_v16 = vrot.slane %v1483_v4, 1  ;;  %v6566_v4 = vld [vmem:[%s8841_s3 + $0x1ac] ss:$16 sps:$4 sm:$0xff]  }
 0x319   :  { %v6834_v20 = vpop.eup %6833  ;;  %v1308_v1 = vsel %vm1268_vm7, %v1260_v49, %v5206_v17  ;;  %v5208_v21 = vadd.f32 -1.0, %v6832_v18  ;;  %v1390_v22 = vld [vmem:[#allocation4] sm:$0xfe]  ;;  %v6495_v17 = vld [vmem:[%s8841_s3 + $0x40] ss:$16 sps:$4 sm:$0xff]  }
 0x31a   :  { %v1309_v23 = vsel %vm1269_vm8, %v1261_v51, %v5207_v19  ;;  %v5209_v24 = vadd.f32 -1.0, %v6834_v20  ;;  %v1391_v30 = vld [vmem:[#allocation4 + $0x8] sm:$0xfe]  ;;  %v1394_v32 = vpack.c.bf16 %v7642_v11, %v1390_v22  ;;  %v6498_v18 = vld [vmem:[%s8841_s3 + $0x48] ss:$16 sps:$4 sm:$0xff]  }
 0x31b   :  { %1318 = vst.msk [vmem:[#allocation4 + $0x28] sm:$0xff] %vm1313_vm3, %v1309_v23  ;;  %v1310_v12 = vsel %vm1270_vm9, %v1262_v54, %v5208_v21  ;;  %v2281_v38 = vld [vmem:[#allocation4 + $0x8] sm:$0xfc]  ;;  %v6506_v21 = vld [vmem:[%s8841_s3 + $0x6c] ss:$16 sps:$4 sm:$0xff]   ;;  %vm5033_vm9 = vcmask 1040384  }
 0x31c   :  { %v1311_v25 = vsel %vm1271_vm10, %v1263_v57, %v5209_v24  ;;  %v7649_v28 = vld [vmem:[#allocation4 + $0x18] sm:$0xff]  ;;  %v7651_v31 = vpack.c.bf16 %v1310_v12, %v1308_v1  ;;  %v1458_v35 = vshll.u32 %v1394_v32, 16  ;;  %v1456_v48 = vshrl.u32 %v1394_v32, 16  ;;  %v1323_v20 = vld [vmem:[#allocation4 + $0x8] sm:$0xff]  ;;  %v6504_v24 = vld [vmem:[%s8841_s3 + $0x68] ss:$16 sps:$4 sm:$0xff]  }
 0x31d   :  { %1320 = vst.msk [vmem:[#allocation4 + $0x38] sm:$0xff] %vm1313_vm3, %v1311_v25  ;;  %v1395_v33 = vpack.c.bf16 %v7649_v28, %v1391_v30  ;;  %v2285_v39 = vpack.c.bf16 %v7649_v28, %v2281_v38  ;;  %v6503_v1 = vld [vmem:[%s8841_s3 + $0x64] ss:$16 sps:$4 sm:$0xff]   ;;  %v1331_v22 = vpack.c.bf16 %v7649_v28, %v1323_v20  ;;  %v6501_v23 = vld [vmem:[%s8841_s3 + $0x60] ss:$16 sps:$4 sm:$0xff]  }
 0x31e   :  { %v1460_v42 = vrot.slane %v1458_v35, 1  ;;  %v1463_v9 = vshll.u32 %v7651_v31, 16  ;;  %v1479_v8 = vshrl.u32 %v7651_v31, 16  ;;  %v6509_v12 = vld [vmem:[%s8841_s3 + $0x84] ss:$16 sps:$4 sm:$0xff]  }
 0x31f   :  { %v1470_v37 = vshll.u32 %v1395_v33, 16  ;;  %v1468_v49 = vshrl.u32 %v1395_v33, 16  ;;  %v2354_v51 = vrot.slane %v2285_v39, 1  ;;  %v6512_v25 = vld [vmem:[%s8841_s3 + $0x8c] ss:$16 sps:$4 sm:$0xff]  }
 0x320   :  { %v1461_v53 = vor.u32 %v1460_v42, %v1456_v48  ;;  %v1465_v54 = vrot.slane %v1463_v9, 1  ;;  %v6507_v28 = vld [vmem:[%s8841_s3 + $0x80] ss:$16 sps:$4 sm:$0xff]   ;;  %v6510_v30 = vld [vmem:[%s8841_s3 + $0x88] ss:$16 sps:$4 sm:$0xff]  }
 0x321   :  { %v1472_v45 = vrot.slane %v1470_v37, 1  ;;  %v6515_v32 = vld [vmem:[%s8841_s3 + $0xa4] ss:$16 sps:$4 sm:$0xff]   ;;  %v6518_v33 = vld [vmem:[%s8841_s3 + $0xac] ss:$16 sps:$4 sm:$0xff]  }
 0x322   :  { %v1327_v40 = vld [vmem:[#allocation4 + $0x28] sm:$0xff]  ;;  %v1466_v0 = vsel %vm322_vm2, %v1461_v53, %v1465_v54  ;;  %v1481_v15 = vor.u32 %v1479_v8, %v1465_v54  ;;  %v6516_v35 = vld [vmem:[%s8841_s3 + $0xa8] ss:$16 sps:$4 sm:$0xff]   ;;  %v6524_v37 = vld [vmem:[%s8841_s3 + $0xcc] ss:$16 sps:$4 sm:$0xff]  }
 0x323   :  { %v1473_v57 = vor.u32 %v1472_v45, %v1468_v49  ;;  %v6519_v38 = vld [vmem:[%s8841_s3 + $0xc0] ss:$16 sps:$4 sm:$0xff]   ;;  %v6522_v39 = vld [vmem:[%s8841_s3 + $0xc8] ss:$16 sps:$4 sm:$0xff]   ;;  %v6536_v45 = vld [vmem:[%s8841_s3 + $0x10c] ss:$16 sps:$4 sm:$0xff]  }
 0x324   :  { %v1329_v41 = vld [vmem:[#allocation4 + $0x38] sm:$0xff]  ;;  %v1486_v19 = vsel %vm322_vm2, %v1481_v15, %v1485_v16  ;;  %v6528_v9 = vld [vmem:[%s8841_s3 + $0xe8] ss:$16 sps:$4 sm:$0xff]   ;;  %v6572_v8 = vld [vmem:[%s8841_s3 + $0x38c] ss:$16 sps:$4 sm:$0xff]  }
 0x325   :  { %v7658_v44 = vpack.c.bf16 %v1329_v41, %v1327_v40  ;;  %v6527_v40 = vld [vmem:[%s8841_s3 + $0xe4] ss:$16 sps:$4 sm:$0xff]   ;;  %v6530_v41 = vld [vmem:[%s8841_s3 + $0xec] ss:$16 sps:$4 sm:$0xff]   ;;  %v6525_v42 = vld [vmem:[%s8841_s3 + $0xe0] ss:$16 sps:$4 sm:$0xff]  }
 0x326   :  { %v6534_v48 = vld [vmem:[%s8841_s3 + $0x108] ss:$16 sps:$4 sm:$0xff]   ;;  %v6539_v49 = vld [vmem:[%s8841_s3 + $0x124] ss:$16 sps:$4 sm:$0xff]   ;;  %v6578_v16 = vld [vmem:[%s8841_s3 + $0x3ac] ss:$16 sps:$4 sm:$0xff]  }
 0x327   :  { %v1475_v50 = vshll.u32 %v7658_v44, 16  ;;  %v2355_v52 = vrot.slane %v7658_v44, 1  ;;  %v1487_v47 = vshrl.u32 %v7658_v44, 16  ;;  %v6540_v53 = vld [vmem:[%s8841_s3 + $0x128] ss:$16 sps:$4 sm:$0xff]  }
 0x328   :  { %v6545_v54 = vld [vmem:[%s8841_s3 + $0x144] ss:$16 sps:$4 sm:$0xff]   ;;  %v6579_v20 = vld [vmem:[%s8841_s3 + $0x3c0] ss:$16 sps:$4 sm:$0xff]   ;;  %vm3565_vm7 = vsmask.f32 6400 }
 0x329   :  { %v1477_v58 = vrot.slane %v1475_v50, 1  ;;  %v7666_v59 = vsel %vm424_vm1, %v2354_v51, %v2355_v52  ;;  %v6542_v50 = vld [vmem:[%s8841_s3 + $0x12c] ss:$16 sps:$4 sm:$0xff]   ;;  %v6537_v51 = vld [vmem:[%s8841_s3 + $0x120] ss:$16 sps:$4 sm:$0xff]  }
 0x32a   :  { %v6575_v15 = vld [vmem:[%s8841_s3 + $0x3a4] ss:$16 sps:$4 sm:$0xff]   ;;  %vm3991_vm8 = vsmask.f32 5376 }
 0x32b   :  { %v1478_v62 = vsel %vm322_vm2, %v1473_v57, %v1477_v58  ;;  %v1489_v63 = vor.u32 %v1487_v47, %v1477_v58  ;;  %v6546_v57 = vld [vmem:[%s8841_s3 + $0x148] ss:$16 sps:$4 sm:$0xff]   ;;  %v6551_v58 = vld [vmem:[%s8841_s3 + $0x164] ss:$16 sps:$4 sm:$0xff]   ;;  %v6554_v47 = vld [vmem:[%s8841_s3 + $0x16c] ss:$16 sps:$4 sm:$0xff]  }
 0x32c   :  { %5322 = vmatprep.mubr.msk.bf16.mxu0 %vm1313_vm3, %v1478_v62  ;;  %5324 = vmatprep.mubr.msk.bf16.mxu1 %vm1313_vm3, %v1478_v62  ;;  %v6557_v62 = vld [vmem:[%s8841_s3 + $0x184] ss:$16 sps:$4 sm:$0xff]  }
 0x32d   :  { %1816 = vmatmul.mubr.bf16.vlgmr.msra.gmra.mrb[16].mxu0 %v1466_v0  ;;  %1869 = vmatmul.mubr.bf16.vlgmr.msra.gmra.mrb[16].mxu1 %v1466_v0  ;;  %v1494_v5 = vsel %vm322_vm2, %v1489_v63, %v1493_v55  ;;  %v6548_v55 = vld [vmem:[%s8841_s3 + $0x14c] ss:$16 sps:$4 sm:$0xff]   ;;  %v6555_v0 = vld [vmem:[%s8841_s3 + $0x180] ss:$16 sps:$4 sm:$0xff]  }
 0x32e   :  { %2175 = vmatpush1.bf16.msra.mxu0 %v6483_v60  ;;  %2228 = vmatpush1.bf16.msra.mxu1 %v6486_v61  ;;  %v6549_v60 = vld [vmem:[%s8841_s3 + $0x160] ss:$16 sps:$4 sm:$0xff]   ;;  %v6552_v61 = vld [vmem:[%s8841_s3 + $0x168] ss:$16 sps:$4 sm:$0xff]   ;;  %v6560_v63 = vld [vmem:[%s8841_s3 + $0x18c] ss:$16 sps:$4 sm:$0xff]  }
 0x32f   :  { %5323 = vmatprep.mubr.msk.bf16.mxu0 %vm1313_vm3, %v1494_v5  ;;  %5325 = vmatprep.mubr.msk.bf16.mxu1 %vm1313_vm3, %v1494_v5  ;;  %v6561_v5 = vld [vmem:[%s8841_s3 + $0x1a0] ss:$16 sps:$4 sm:$0xff]  }
 0x330   :  { %2176 = vmatprep.subr.bf16.mxu0 %v6491_v2  ;;  %2229 = vmatprep.subr.bf16.mxu1 %v6494_v3  ;;  %v6558_v2 = vld [vmem:[%s8841_s3 + $0x188] ss:$16 sps:$4 sm:$0xff]   ;;  %v6563_v3 = vld [vmem:[%s8841_s3 + $0x1a4] ss:$16 sps:$4 sm:$0xff]  }
 0x332   :  { %2177 = vmatpush1.bf16.msra.mxu0 %v6489_v6  ;;  %2230 = vmatpush1.bf16.msra.mxu1 %v6492_v7  ;;  %v6564_v6 = vld [vmem:[%s8841_s3 + $0x1a8] ss:$16 sps:$4 sm:$0xff]   ;;  %v6569_v7 = vld [vmem:[%s8841_s3 + $0x384] ss:$16 sps:$4 sm:$0xff]  }
 0x333   :  { %2178 = vmatprep.subr.bf16.mxu0 %v6497_v10  ;;  %2231 = vmatprep.subr.bf16.mxu1 %v6500_v13  ;;  %v6567_v10 = vld [vmem:[%s8841_s3 + $0x380] ss:$16 sps:$4 sm:$0xff]   ;;  %v6570_v13 = vld [vmem:[%s8841_s3 + $0x388] ss:$16 sps:$4 sm:$0xff]  }
 0x335   :  { %1826 = vmatmul.mubr.bf16.gmra.mrb[20].mxu0 %v1486_v19  ;;  %1879 = vmatmul.mubr.bf16.gmra.mrb[20].mxu1 %v1486_v19  ;;  %v6584_v19 = vld [vmem:[%s8841_s3 + $0x3cc] ss:$16 sps:$4 sm:$0xff]  }
 0x336   :  { %2179 = vmatpush1.bf16.msra.mxu0 %v6495_v17  ;;  %2232 = vmatpush1.bf16.msra.mxu1 %v6498_v18  ;;  %v6573_v17 = vld [vmem:[%s8841_s3 + $0x3a0] ss:$16 sps:$4 sm:$0xff]   ;;  %v6576_v18 = vld [vmem:[%s8841_s3 + $0x3a8] ss:$16 sps:$4 sm:$0xff]  }
 0x337   :  { %5382 = vmatprep.mubr.msk.bf16.mxu0 %vm1313_vm3, %v1331_v22  ;;  %5384 = vmatprep.mubr.msk.bf16.mxu1 %vm1313_vm3, %v1331_v22  ;;  %v6590_v22 = vld [vmem:[%s8841_s3 + $0x3ec] ss:$16 sps:$4 sm:$0xff]  }
 0x338   :  { %2180 = vmatprep.subr.bf16.mxu0 %v6503_v1  ;;  %2233 = vmatprep.subr.bf16.mxu1 %v6506_v21  ;;  %v6582_v1 = vld [vmem:[%s8841_s3 + $0x3c8] ss:$16 sps:$4 sm:$0xff]   ;;  %v6587_v21 = vld [vmem:[%s8841_s3 + $0x3e4] ss:$16 sps:$4 sm:$0xff]  }
 0x33a   :  { %2181 = vmatpush1.bf16.msra.mxu0 %v6501_v23  ;;  %2234 = vmatpush1.bf16.msra.mxu1 %v6504_v24  ;;  %v6585_v23 = vld [vmem:[%s8841_s3 + $0x3e0] ss:$16 sps:$4 sm:$0xff]   ;;  %v6588_v24 = vld [vmem:[%s8841_s3 + $0x3e8] ss:$16 sps:$4 sm:$0xff]  }
 0x33b   :  { %2182 = vmatprep.subr.bf16.mxu0 %v6509_v12  ;;  %2235 = vmatprep.subr.bf16.mxu1 %v6512_v25  ;;  %v6593_v12 = vld [vmem:[%s8841_s3 + $0x404] ss:$16 sps:$4 sm:$0xff]   ;;  %v6591_v25 = vld [vmem:[%s8841_s3 + $0x400] ss:$16 sps:$4 sm:$0xff]  }
 0x33e   :  { %2183 = vmatpush1.bf16.msra.mxu0 %v6507_v28  ;;  %2236 = vmatpush1.bf16.msra.mxu1 %v6510_v30  ;;  %v6594_v28 = vld [vmem:[%s8841_s3 + $0x408] ss:$16 sps:$4 sm:$0xff]   ;;  %v6599_v30 = vld [vmem:[%s8841_s3 + $0x424] ss:$16 sps:$4 sm:$0xff]  }
 0x33f   :  { %2184 = vmatprep.subr.bf16.mxu0 %v6515_v32  ;;  %2237 = vmatprep.subr.bf16.mxu1 %v6518_v33  ;;  %v6602_v32 = vld [vmem:[%s8841_s3 + $0x42c] ss:$16 sps:$4 sm:$0xff]   ;;  %v6597_v33 = vld [vmem:[%s8841_s3 + $0x420] ss:$16 sps:$4 sm:$0xff]  }
 0x342   :  { %2185 = vmatpush1.bf16.msra.mxu0 %v6513_v34  ;;  %2238 = vmatpush1.bf16.msra.mxu1 %v6516_v35  ;;  %v6600_v34 = vld [vmem:[%s8841_s3 + $0x428] ss:$16 sps:$4 sm:$0xff]   ;;  %v6605_v35 = vld [vmem:[%s8841_s3 + $0x444] ss:$16 sps:$4 sm:$0xff]  }
 0x343   :  { %2186 = vmatprep.subr.bf16.mxu0 %v6521_v36  ;;  %2239 = vmatprep.subr.bf16.mxu1 %v6524_v37  ;;  %v6608_v36 = vld [vmem:[%s8841_s3 + $0x44c] ss:$16 sps:$4 sm:$0xff]   ;;  %v6603_v37 = vld [vmem:[%s8841_s3 + $0x440] ss:$16 sps:$4 sm:$0xff]  }
 0x346   :  { %2187 = vmatpush1.bf16.msra.mxu0 %v6519_v38  ;;  %2240 = vmatpush1.bf16.msra.mxu1 %v6522_v39  ;;  %v6606_v38 = vld [vmem:[%s8841_s3 + $0x448] ss:$16 sps:$4 sm:$0xff]   ;;  %v6611_v39 = vld [vmem:[%s8841_s3 + $0x464] ss:$16 sps:$4 sm:$0xff]  }
 0x347   :  { %2188 = vmatprep.subr.bf16.mxu0 %v6527_v40  ;;  %2241 = vmatprep.subr.bf16.mxu1 %v6530_v41  ;;  %v6614_v40 = vld [vmem:[%s8841_s3 + $0x46c] ss:$16 sps:$4 sm:$0xff]   ;;  %v6609_v41 = vld [vmem:[%s8841_s3 + $0x460] ss:$16 sps:$4 sm:$0xff]  }
 0x34a   :  { %2189 = vmatpush1.bf16.msra.mxu0 %v6525_v42  ;;  %2242 = vmatpush1.bf16.msra.mxu1 %v6528_v9  ;;  %v6612_v42 = vld [vmem:[%s8841_s3 + $0x468] ss:$16 sps:$4 sm:$0xff]   ;;  %v6617_v9 = vld [vmem:[%s8841_s3 + $0x484] ss:$16 sps:$4 sm:$0xff]  }
 0x34b   :  { %2190 = vmatprep.subr.bf16.mxu0 %v6533_v43  ;;  %2243 = vmatprep.subr.bf16.mxu1 %v6536_v45  ;;  %v6620_v43 = vld [vmem:[%s8841_s3 + $0x48c] ss:$16 sps:$4 sm:$0xff]   ;;  %v6615_v45 = vld [vmem:[%s8841_s3 + $0x480] ss:$16 sps:$4 sm:$0xff]  }
 0x34e   :  { %2191 = vmatpush1.bf16.msra.mxu0 %v6531_v46  ;;  %2244 = vmatpush1.bf16.msra.mxu1 %v6534_v48  ;;  %v6618_v46 = vld [vmem:[%s8841_s3 + $0x488] ss:$16 sps:$4 sm:$0xff]   ;;  %v6623_v48 = vld [vmem:[%s8841_s3 + $0x4a4] ss:$16 sps:$4 sm:$0xff]  }
 0x34f   :  { %2192 = vmatprep.subr.bf16.mxu0 %v6539_v49  ;;  %2245 = vmatprep.subr.bf16.mxu1 %v6542_v50  ;;  %v6626_v49 = vld [vmem:[%s8841_s3 + $0x4ac] ss:$16 sps:$4 sm:$0xff]   ;;  %v6621_v50 = vld [vmem:[%s8841_s3 + $0x4a0] ss:$16 sps:$4 sm:$0xff]  }
 0x352   :  { %2193 = vmatpush1.bf16.msra.mxu0 %v6537_v51  ;;  %2246 = vmatpush1.bf16.msra.mxu1 %v6540_v53  ;;  %v6624_v51 = vld [vmem:[%s8841_s3 + $0x4a8] ss:$16 sps:$4 sm:$0xff]   ;;  %v6629_v53 = vld [vmem:[%s8841_s3 + $0x4c4] ss:$16 sps:$4 sm:$0xff]  }
 0x353   :  { %2194 = vmatprep.subr.bf16.mxu0 %v6545_v54  ;;  %2247 = vmatprep.subr.bf16.mxu1 %v6548_v55  ;;  %v6632_v54 = vld [vmem:[%s8841_s3 + $0x4cc] ss:$16 sps:$4 sm:$0xff]   ;;  %v6627_v55 = vld [vmem:[%s8841_s3 + $0x4c0] ss:$16 sps:$4 sm:$0xff]  }
 0x356   :  { %2195 = vmatpush1.bf16.msra.mxu0 %v6543_v56  ;;  %2248 = vmatpush1.bf16.msra.mxu1 %v6546_v57  ;;  %v6630_v56 = vld [vmem:[%s8841_s3 + $0x4c8] ss:$16 sps:$4 sm:$0xff]   ;;  %v6635_v57 = vld [vmem:[%s8841_s3 + $0x4e4] ss:$16 sps:$4 sm:$0xff]  }
 0x357   :  { %2196 = vmatprep.subr.bf16.mxu0 %v6551_v58  ;;  %2249 = vmatprep.subr.bf16.mxu1 %v6554_v47  ;;  %v6638_v58 = vld [vmem:[%s8841_s3 + $0x4ec] ss:$16 sps:$4 sm:$0xff]   ;;  %v6633_v47 = vld [vmem:[%s8841_s3 + $0x4e0] ss:$16 sps:$4 sm:$0xff]  }
 0x35a   :  { %2197 = vmatpush1.bf16.msra.mxu0 %v6549_v60  ;;  %2250 = vmatpush1.bf16.msra.mxu1 %v6552_v61  ;;  %v6636_v60 = vld [vmem:[%s8841_s3 + $0x4e8] ss:$16 sps:$4 sm:$0xff]   ;;  %v6641_v61 = vld [vmem:[%s8841_s3 + $0x504] ss:$16 sps:$4 sm:$0xff]  }
 0x35b   :  { %2198 = vmatprep.subr.bf16.mxu0 %v6557_v62  ;;  %2251 = vmatprep.subr.bf16.mxu1 %v6560_v63  ;;  %v6644_v62 = vld [vmem:[%s8841_s3 + $0x50c] ss:$16 sps:$4 sm:$0xff]   ;;  %v6639_v63 = vld [vmem:[%s8841_s3 + $0x500] ss:$16 sps:$4 sm:$0xff]  }
 0x35e   :  { %2199 = vmatpush1.bf16.msra.mxu0 %v6555_v0  ;;  %2252 = vmatpush1.bf16.msra.mxu1 %v6558_v2  ;;  %v6642_v0 = vld [vmem:[%s8841_s3 + $0x508] ss:$16 sps:$4 sm:$0xff]   ;;  %v2283_v2 = vld [vmem:[#allocation4 + $0x48] sm:$0x3] }
 0x35f   :  { %2200 = vmatprep.subr.bf16.mxu0 %v6563_v3  ;;  %2253 = vmatprep.subr.bf16.mxu1 %v6566_v4  ;;  %v6647_v3 = vld [vmem:[%s8841_s3 + $0x524] ss:$16 sps:$4 sm:$0xff]   ;;  %v6650_v4 = vld [vmem:[%s8841_s3 + $0x52c] ss:$16 sps:$4 sm:$0xff]  }
 0x362   :  { %2201 = vmatpush1.bf16.msra.mxu0 %v6561_v5  ;;  %2254 = vmatpush1.bf16.msra.mxu1 %v6564_v6  ;;  %v2280_v5 = vld [vmem:[#allocation4] sm:$0xfc]  ;;  %v2287_v6 = vpack.c.bf16 %v2283_v2, %v2283_v2 }
 0x363   :  { %2649 = vmatprep.subr.bf16.mxu0 %v6569_v7  ;;  %2702 = vmatprep.subr.bf16.mxu1 %v6572_v8  ;;  %v6645_v7 = vld [vmem:[%s8841_s3 + $0x520] ss:$16 sps:$4 sm:$0xff]   ;;  %v6648_v8 = vld [vmem:[%s8841_s3 + $0x528] ss:$16 sps:$4 sm:$0xff]  }
 0x365   :  { %2207 = vmatmul.mubr.bf16.vlgmr.msra.gmra.mrb[16].mxu0 %v7645_v14  ;;  %2260 = vmatmul.mubr.bf16.vlgmr.msra.gmra.mrb[16].mxu1 %v7645_v14  ;;  %v6581_v14 = vld [vmem:[%s8841_s3 + $0x3c4] ss:$16 sps:$4 sm:$0xff]  }
 0x366   :  { %5383 = vmatprep.mubr.msk.bf16.mxu0 %vm1313_vm3, %v7658_v44  ;;  %5385 = vmatprep.mubr.msk.bf16.mxu1 %vm1313_vm3, %v7658_v44  ;;  %v6653_v44 = vld [vmem:[%s8842_s4 + $0xc0] sm:$0xff]  }
 0x367   :  { %2650 = vmatpush1.bf16.msra.mxu0 %v6567_v10  ;;  %2703 = vmatpush1.bf16.msra.mxu1 %v6570_v13  ;;  %v2284_v10 = vpack.c.bf16 %v7642_v11, %v2280_v5  ;;  %v2352_v13 = vrot.slane %v7651_v31, 1 }
 0x368   :  { %2651 = vmatprep.subr.bf16.mxu0 %v6575_v15  ;;  %2704 = vmatprep.subr.bf16.mxu1 %v6578_v16  ;;  %v2359_v15 = vrot.slane %v2287_v6, 1  ;;  %v2282_v16 = vld [vmem:[#allocation4 + $0x40] sm:$0x3] }
 0x36b   :  { %2652 = vmatpush1.bf16.msra.mxu0 %v6573_v17  ;;  %2705 = vmatpush1.bf16.msra.mxu1 %v6576_v18  ;;  %v2351_v17 = vrot.slane %v2284_v10, 1 }
 0x36c   :  { %2653 = vmatprep.subr.bf16.mxu0 %v6581_v14  ;;  %2706 = vmatprep.subr.bf16.mxu1 %v6584_v19  ;;  %v2286_v14 = vpack.c.bf16 %v2282_v16, %v2282_v16  ;;  %v2360_v19 = vsel %vm424_vm1, %v2355_v52, %v2359_v15  ;;  %v6654_v52 = vld [vmem:[%s8842_s4 + $0x80] sm:$0xff]  }
 0x36d   :  { %2217 = vmatmul.mubr.bf16.gmra.mrb[20].mxu0 %v7651_v31  ;;  %2270 = vmatmul.mubr.bf16.gmra.mrb[20].mxu1 %v7651_v31  ;;  %v2353_v18 = vsel %vm424_vm1, %v2351_v17, %v2352_v13 }
 0x36e   :  { %5498 = vmatprep.mubr.msk.bf16.mxu0 %vm1313_vm3, %v7666_v59  ;;  %5500 = vmatprep.mubr.msk.bf16.mxu1 %vm1313_vm3, %v7666_v59  ;;  %v6596_v59 = vld [vmem:[%s8841_s3 + $0x40c] ss:$16 sps:$4 sm:$0xff]   ;;  %v2357_v11 = vrot.slane %v2286_v14, 1 }
 0x36f   :  { %2654 = vmatpush1.bf16.msra.mxu0 %v6579_v20  ;;  %2707 = vmatpush1.bf16.msra.mxu1 %v6582_v1  ;;  %v6651_v20 = vld [vmem:[%s8842_s4 + $0x140] sm:$0xff]  }
 0x370   :  { %2655 = vmatprep.subr.bf16.mxu0 %v6587_v21  ;;  %2708 = vmatprep.subr.bf16.mxu1 %v6590_v22  ;;  %v2358_v31 = vsel %vm424_vm1, %v2352_v13, %v2357_v11  ;;  %v6652_v1 = vld [vmem:[%s8842_s4 + $0x100] sm:$0xff]   ;;  %v6655_v21 = vld [vmem:[%s8842_s4 + $0x148] sm:$0xff]  }
 0x371   :  { %v6656_v22 = vld [vmem:[%s8842_s4 + $0x108] sm:$0xff]  }
 0x373   :  { %2656 = vmatpush1.bf16.msra.mxu0 %v6585_v23  ;;  %2709 = vmatpush1.bf16.msra.mxu1 %v6588_v24  ;;  %v6657_v23 = vld [vmem:[%s8842_s4 + $0xc8] sm:$0xff]  }
 0x374   :  { %2657 = vmatprep.subr.bf16.mxu0 %v6593_v12  ;;  %2710 = vmatprep.subr.bf16.mxu1 %v6596_v59  ;;  %v6658_v24 = vld [vmem:[%s8842_s4 + $0x88] sm:$0xff]   ;;  %v6659_v12 = vld [vmem:[%s8842_s4 + $0x150] sm:$0xff]  }
 0x375   :  { %v6660_v59 = vld [vmem:[%s8842_s4 + $0x110] sm:$0xff]  }
 0x377   :  { %2658 = vmatpush1.bf16.msra.mxu0 %v6591_v25  ;;  %2711 = vmatpush1.bf16.msra.mxu1 %v6594_v28  ;;  %v6661_v25 = vld [vmem:[%s8842_s4 + $0xd0] sm:$0xff]  }
 0x378   :  { %2659 = vmatprep.subr.bf16.mxu0 %v6599_v30  ;;  %2712 = vmatprep.subr.bf16.mxu1 %v6602_v32  ;;  %v6662_v28 = vld [vmem:[%s8842_s4 + $0x90] sm:$0xff]   ;;  %v6663_v30 = vld [vmem:[%s8842_s4 + $0x158] sm:$0xff]  }
 0x379   :  { %v6664_v32 = vld [vmem:[%s8842_s4 + $0x118] sm:$0xff]  }
 0x37b   :  { %2660 = vmatpush1.bf16.msra.mxu0 %v6597_v33  ;;  %2713 = vmatpush1.bf16.msra.mxu1 %v6600_v34  ;;  %v6665_v33 = vld [vmem:[%s8842_s4 + $0xd8] sm:$0xff]  }
 0x37c   :  { %2661 = vmatprep.subr.bf16.mxu0 %v6605_v35  ;;  %2714 = vmatprep.subr.bf16.mxu1 %v6608_v36  ;;  %v6666_v34 = vld [vmem:[%s8842_s4 + $0x98] sm:$0xff]   ;;  %v6667_v35 = vld [vmem:[%s8842_s4 + $0x160] sm:$0xff]  }
 0x37d   :  { %v6668_v36 = vld [vmem:[%s8842_s4 + $0x120] sm:$0xff]  }
 0x37f   :  { %2662 = vmatpush1.bf16.msra.mxu0 %v6603_v37  ;;  %2715 = vmatpush1.bf16.msra.mxu1 %v6606_v38  ;;  %v6669_v37 = vld [vmem:[%s8842_s4 + $0xe0] sm:$0xff]  }
 0x380   :  { %2663 = vmatprep.subr.bf16.mxu0 %v6611_v39  ;;  %2716 = vmatprep.subr.bf16.mxu1 %v6614_v40  ;;  %v6670_v38 = vld [vmem:[%s8842_s4 + $0xa0] sm:$0xff]   ;;  %v6671_v39 = vld [vmem:[%s8842_s4 + $0x168] sm:$0xff]  }
 0x381   :  { %v6672_v40 = vld [vmem:[%s8842_s4 + $0x128] sm:$0xff]  }
 0x383   :  { %2664 = vmatpush1.bf16.msra.mxu0 %v6609_v41  ;;  %2717 = vmatpush1.bf16.msra.mxu1 %v6612_v42  ;;  %v6673_v41 = vld [vmem:[%s8842_s4 + $0xe8] sm:$0xff]  }
 0x384   :  { %2665 = vmatprep.subr.bf16.mxu0 %v6617_v9  ;;  %2718 = vmatprep.subr.bf16.mxu1 %v6620_v43  ;;  %v6674_v42 = vld [vmem:[%s8842_s4 + $0xa8] sm:$0xff]   ;;  %v6675_v9 = vld [vmem:[%s8842_s4 + $0x170] sm:$0xff]  }
 0x385   :  { %v6677_v43 = vld [vmem:[%s8842_s4 + $0xf0] sm:$0xff]  }
 0x387   :  { %2666 = vmatpush1.bf16.msra.mxu0 %v6615_v45  ;;  %2719 = vmatpush1.bf16.msra.mxu1 %v6618_v46  ;;  %v6676_v45 = vld [vmem:[%s8842_s4 + $0x130] sm:$0xff]   ;;  %v6679_v46 = vld [vmem:[%s8842_s4 + $0x178] sm:$0xff]  }
 0x388   :  { %2667 = vmatprep.subr.bf16.mxu0 %v6623_v48  ;;  %2720 = vmatprep.subr.bf16.mxu1 %v6626_v49  ;;  %v6678_v48 = vld [vmem:[%s8842_s4 + $0xb0] sm:$0xff]   ;;  %v6681_v49 = vld [vmem:[%s8842_s4 + $0xf8] sm:$0xff]  }
 0x38b   :  { %2668 = vmatpush1.bf16.msra.mxu0 %v6621_v50  ;;  %2721 = vmatpush1.bf16.msra.mxu1 %v6624_v51  ;;  %v6680_v50 = vld [vmem:[%s8842_s4 + $0x138] sm:$0xff]  }
 0x38c   :  { %2669 = vmatprep.subr.bf16.mxu0 %v6629_v53  ;;  %2722 = vmatprep.subr.bf16.mxu1 %v6632_v54  ;;  %v6682_v51 = vld [vmem:[%s8842_s4 + $0xb8] sm:$0xff]   ;;  %v6683_v53 = vld [vmem:[%s8842_s4 + $0x240] sm:$0xff]  }
 0x38d   :  { %v6685_v54 = vld [vmem:[%s8842_s4 + $0x40] sm:$0xff]  }
 0x38f   :  { %2670 = vmatpush1.bf16.msra.mxu0 %v6627_v55  ;;  %2723 = vmatpush1.bf16.msra.mxu1 %v6630_v56  ;;  %v2782_v55 = vsub.s32 2, %v7633_v26  ;;  %v1321_v56 = vld [vmem:[#allocation6 + $0x3] sm:$0xf] }
 0x390   :  { %2671 = vmatprep.subr.bf16.mxu0 %v6635_v57  ;;  %2724 = vmatprep.subr.bf16.mxu1 %v6638_v58  ;;  %v2786_v57 = vsub.s32 3, %v7633_v26  ;;  %v8137_v58 = vrot.slane %v1321_v56, %v1248_v27 }
 0x393   :  { %2672 = vmatpush1.bf16.msra.mxu0 %v6633_v47  ;;  %2725 = vmatpush1.bf16.msra.mxu1 %v6636_v60  ;;  %v8139_v47 = vrot.slane %v1321_v56, %v2782_v55  ;;  %v8143_v60 = vrot.slane %v1321_v56, %v1252_v29 }
 0x394   :  { %2673 = vmatprep.subr.bf16.mxu0 %v6641_v61  ;;  %2726 = vmatprep.subr.bf16.mxu1 %v6644_v62  ;;  %v8145_v61 = vrot.slane %v1321_v56, %v2786_v57 }
 0x397   :  { %2674 = vmatpush1.bf16.msra.mxu0 %v6639_v63  ;;  %2727 = vmatpush1.bf16.msra.mxu1 %v6642_v0 }
 0x398   :  { %2675 = vmatprep.subr.bf16.mxu0 %v6647_v3  ;;  %2728 = vmatprep.subr.bf16.mxu1 %v6650_v4 }
 0x39b   :  { %2676 = vmatpush1.bf16.msra.mxu0 %v6645_v7  ;;  %2729 = vmatpush1.bf16.msra.mxu1 %v6648_v8 }
 0x39c   :  { %6025 = vmatprep.subr.bf16.mxu1 %v6651_v20  ;;  %5969 = vmatprep.subr.bf16.mxu0 %v6653_v44 }
 0x39e   :  { %2682 = vmatmul.mubr.bf16.vlgmr.msra.gmra.mrb[16].mxu0 %v2353_v18  ;;  %2735 = vmatmul.mubr.bf16.vlgmr.msra.gmra.mrb[16].mxu1 %v2353_v18 }
 0x39f   :  { %5499 = vmatprep.mubr.msk.bf16.mxu0 %vm1313_vm3, %v2360_v19  ;;  %5501 = vmatprep.mubr.msk.bf16.mxu1 %vm1313_vm3, %v2360_v19 }
 0x3a0   :  { %6026 = vmatpush3.bf16.msra.mxu1 %v6652_v1  ;;  %5970 = vmatpush3.bf16.msra.mxu0 %v6654_v52 }
 0x3a1   :  { %6027 = vmatprep.subr.bf16.mxu1 %v6655_v21  ;;  %5971 = vmatprep.subr.bf16.mxu0 %v6657_v23 }
 0x3a4   :  { %6028 = vmatpush3.bf16.msra.mxu1 %v6656_v22  ;;  %5972 = vmatpush3.bf16.msra.mxu0 %v6658_v24 }
 0x3a5   :  { %6029 = vmatprep.subr.bf16.mxu1 %v6659_v12  ;;  %5973 = vmatprep.subr.bf16.mxu0 %v6661_v25 }
 0x3a6   :  { %2692 = vmatmul.mubr.bf16.gmra.mrb[20].mxu0 %v2358_v31  ;;  %2745 = vmatmul.mubr.bf16.gmra.mrb[20].mxu1 %v2358_v31 }
 0x3a8   :  { %6030 = vmatpush3.bf16.msra.mxu1 %v6660_v59  ;;  %5974 = vmatpush3.bf16.msra.mxu0 %v6662_v28 }
 0x3a9   :  { %6031 = vmatprep.subr.bf16.mxu1 %v6663_v30  ;;  %5975 = vmatprep.subr.bf16.mxu0 %v6665_v33 }
 0x3ac   :  { %6032 = vmatpush3.bf16.msra.mxu1 %v6664_v32  ;;  %5976 = vmatpush3.bf16.msra.mxu0 %v6666_v34 }
 0x3ad   :  { %6033 = vmatprep.subr.bf16.mxu1 %v6667_v35  ;;  %5977 = vmatprep.subr.bf16.mxu0 %v6669_v37 }
 0x3b0   :  { %6034 = vmatpush3.bf16.msra.mxu1 %v6668_v36  ;;  %5978 = vmatpush3.bf16.msra.mxu0 %v6670_v38 }
 0x3b1   :  { %6035 = vmatprep.subr.bf16.mxu1 %v6671_v39  ;;  %5979 = vmatprep.subr.bf16.mxu0 %v6673_v41 }
 0x3b4   :  { %6036 = vmatpush3.bf16.msra.mxu1 %v6672_v40  ;;  %5980 = vmatpush3.bf16.msra.mxu0 %v6674_v42 }
 0x3b5   :  { %6037 = vmatprep.subr.bf16.mxu1 %v6675_v9  ;;  %5981 = vmatprep.subr.bf16.mxu0 %v6677_v43 }
 0x3b8   :  { %6038 = vmatpush3.bf16.msra.mxu1 %v6676_v45  ;;  %5982 = vmatpush3.bf16.msra.mxu0 %v6678_v48 }
 0x3b9   :  { %6039 = vmatprep.subr.bf16.mxu1 %v6679_v46  ;;  %5983 = vmatprep.subr.bf16.mxu0 %v6681_v49 }
 0x3bc   :  { %6040 = vmatpush3.bf16.msra.mxu1 %v6680_v50  ;;  %5984 = vmatpush3.bf16.msra.mxu0 %v6682_v51 }
 0x3bd   :  { %6081 = vmatprep.subr.bf16.mxu1 %v6683_v53  ;;  %5997 = vmatprep.subr.bf16.mxu0 %v6685_v54 }
 0x471   :  { %v2683_v62 = vpop.f32.mrb[16].mxu0  ;;  %v2736_v63 = vpop.f32.mrb[16].mxu1 }
 0x472   :  { %v8148_v0 = vadd.f32 %v8137_v58, %v2683_v62  ;;  %v2794_v2 = vadd.f32 %v8139_v47, %v2736_v63  ;;  %v2685_v3 = vpop.f32.mrb[17].mxu0  ;;  %v2738_v4 = vpop.f32.mrb[17].mxu1 }
 0x473   :  { %v8152_v27 = vadd.f32 %v8143_v60, %v2685_v3  ;;  %v2795_v5 = vadd.f32 %v8145_v61, %v2738_v4  ;;  %v2687_v6 = vpop.f32.mrb[18].mxu0  ;;  %v2740_v26 = vpop.f32.mrb[18].mxu1 }
 0x474   :  { %v2824_v29 = vmin.f32 %v8148_v0, 0.0  ;;  %v2826_v7 = vmin.f32 %v2794_v2, 0.0  ;;  %v2689_v8 = vpop.f32.mrb[19].mxu0  ;;  %v2742_v10 = vpop.f32.mrb[19].mxu1  ;;  %v8158_v18 = vadd.f32 %v8137_v58, %v2687_v6  ;;  %v2798_v14 = vadd.f32 %v8139_v47, %v2740_v26 }
 0x475   :  { %v2825_v13 = vmin.f32 %v8152_v27, 0.0  ;;  %v2827_v15 = vmin.f32 %v2795_v5, 0.0  ;;  %v8162_v31 = vadd.f32 %v8143_v60, %v2689_v8  ;;  %v2799_v20 = vadd.f32 %v8145_v61, %v2742_v10 }
 0x476   :  { %v2840_v16 = vmul.f32 1.442695, %v2824_v29  ;;  %v2844_v17 = vmul.f32 1.442695, %v2826_v7  ;;  %v2828_v1 = vmin.f32 %v8158_v18, 0.0  ;;  %v2830_v44 = vmin.f32 %v2798_v14, 0.0 }
 0x477   :  { %v2842_v19 = vmul.f32 1.442695, %v2825_v13  ;;  %v2846_v11 = vmul.f32 1.442695, %v2827_v15  ;;  %v2829_v52 = vmin.f32 %v8162_v31, 0.0  ;;  %v2831_v24 = vmin.f32 %v2799_v20, 0.0 }
 0x478   :  { %6835 = vpow2.f32 %v2840_v16  ;;  %v2848_v23 = vmul.f32 1.442695, %v2828_v1  ;;  %v2852_v25 = vmul.f32 1.442695, %v2830_v44  ;;  %vm2808_vm11 = vcmp.gt.f32.partialorder %v8148_v0, 0.0 }
 0x479   :  { %6837 = vpow2.f32 %v2844_v17  ;;  %v2693_v21 = vpop.f32.mrb[20].mxu0  ;;  %v2746_v22 = vpop.f32.mrb[20].mxu1  ;;  %v2850_v28 = vmul.f32 1.442695, %v2829_v52  ;;  %v2854_v34 = vmul.f32 1.442695, %v2831_v24 }
 0x47a   :  { %6839 = vpow2.f32 %v2842_v19  ;;  %v2695_v12 = vpop.f32.mrb[21].mxu0  ;;  %v2748_v59 = vpop.f32.mrb[21].mxu1  ;;  %v8168_v30 = vadd.f32 %v8137_v58, %v2693_v21  ;;  %v2802_v35 = vadd.f32 %v8139_v47, %v2746_v22  ;;  %vm2809_vm12 = vcmp.gt.f32.partialorder %v8152_v27, 0.0 }
 0x47b   :  { %6841 = vpow2.f32 %v2846_v11  ;;  %v2697_v32 = vpop.f32.mrb[22].mxu0  ;;  %v2750_v33 = vpop.f32.mrb[22].mxu1  ;;  %v8172_v36 = vadd.f32 %v8143_v60, %v2695_v12  ;;  %v2803_v40 = vadd.f32 %v8145_v61, %v2748_v59  ;;  %vm2812_vm13 = vcmp.gt.f32.partialorder %v8158_v18, 0.0 }
 0x47c   :  { %6843 = vpow2.f32 %v2848_v23  ;;  %v2699_v37 = vpop.f32.mrb[23].mxu0  ;;  %v2752_v38 = vpop.f32.mrb[23].mxu1  ;;  %v2832_v39 = vmin.f32 %v8168_v30, 0.0  ;;  %v2834_v41 = vmin.f32 %v2802_v35, 0.0  ;;  %v8180_v46 = vadd.f32 %v8137_v58, %v2697_v32 }
 0x47d   :  { %6845 = vpow2.f32 %v2852_v25  ;;  %v2833_v9 = vmin.f32 %v8172_v36, 0.0  ;;  %v2835_v45 = vmin.f32 %v2803_v40, 0.0  ;;  %v2806_v48 = vadd.f32 %v8139_v47, %v2750_v33 }
 0x47e   :  { %6847 = vpow2.f32 %v2850_v28  ;;  %v2856_v42 = vmul.f32 1.442695, %v2832_v39  ;;  %v2860_v43 = vmul.f32 1.442695, %v2834_v41  ;;  %v8184_v50 = vadd.f32 %v8143_v60, %v2699_v37 }
 0x47f   :  { %6849 = vpow2.f32 %v2854_v34  ;;  %v2858_v49 = vmul.f32 1.442695, %v2833_v9  ;;  %v2862_v53 = vmul.f32 1.442695, %v2835_v45  ;;  %v2836_v54 = vmin.f32 %v8180_v46, 0.0 }
 0x480   :  { %6851 = vpow2.f32 %v2856_v42  ;;  %v2838_v57 = vmin.f32 %v2806_v48, 0.0  ;;  %v2807_v47 = vadd.f32 %v8145_v61, %v2752_v38  ;;  %v2837_v4 = vmin.f32 %v8184_v50, 0.0 }
 0x481   :  { %6853 = vpow2.f32 %v2860_v43  ;;  %v2864_v62 = vmul.f32 1.442695, %v2836_v54  ;;  %vm2813_vm14 = vcmp.gt.f32.partialorder %v8162_v31, 0.0  ;;  %vm2816_vm15 = vcmp.gt.f32.partialorder %v8168_v30, 0.0 }
 0x482   :  { %v6836_v51 = vpop.eup %6835  ;;  %6855 = vpow2.f32 %v2858_v49  ;;  %v2868_v3 = vmul.f32 1.442695, %v2838_v57  ;;  %v2839_v7 = vmin.f32 %v2807_v47, 0.0  ;;  %vm2817_vm0 = vcmp.gt.f32.partialorder %v8172_v36, 0.0 }
 0x483   :  { %v6838_v55 = vpop.eup %6837  ;;  %v5502_v56 = vadd.f32 -1.0, %v6836_v51  ;;  %6857 = vpow2.f32 %v2862_v53  ;;  %vm2820_vm3 = vcmp.gt.f32.partialorder %v8180_v46, 0.0  ;;  %vm2821_vm4 = vcmp.gt.f32.partialorder %v8184_v50, 0.0 }
 0x484   :  { %v6840_v58 = vpop.eup %6839  ;;  %6859 = vpow2.f32 %v2864_v62 }
 0x485   :  { %v6842_v63 = vpop.eup %6841  ;;  %v8192_v60 = vsel %vm2808_vm11, %v8148_v0, %v5502_v56  ;;  %v5503_v2 = vadd.f32 -1.0, %v6840_v58  ;;  %6861 = vpow2.f32 %v2868_v3  ;;  %v2866_v0 = vmul.f32 1.442695, %v2837_v4 }
 0x486   :  { %v6844_v5 = vpop.eup %6843  ;;  %2904 = vst [vmem:[#allocation5] sm:$0xff] %v8192_v60  ;;  %vm5035_vm11 = vcmask 254976  }
 0x487   :  { %v6846_v6 = vpop.eup %6845  ;;  %v8200_v61 = vsel %vm2809_vm12, %v8152_v27, %v5503_v2  ;;  %v5506_v26 = vadd.f32 -1.0, %v6844_v5  ;;  %6863 = vpow2.f32 %v2866_v0  ;;  %v2870_v27 = vmul.f32 1.442695, %v2839_v7 }
 0x488   :  { %v6848_v29 = vpop.eup %6847  ;;  %2905 = vst [vmem:[#allocation5 + $0x8] sm:$0xff] %v8200_v61 }
 0x489   :  { %v6850_v8 = vpop.eup %6849  ;;  %v8206_v10 = vsel %vm2812_vm13, %v8158_v18, %v5506_v26  ;;  %v5507_v13 = vadd.f32 -1.0, %v6848_v29  ;;  %6865 = vpow2.f32 %v2870_v27 }
 0x48a   :  { %2909 = vst [vmem:[#allocation5 + $0x20] sm:$0xff] %v8206_v10  ;;  %v2927_v15 = vpack.c.bf16 %v8206_v10, %v8192_v60  ;;  %v6852_v16 = vpop.eup %6851  ;;  %v6724_v60 = vld [vmem:[%s8842_s4 + $0x310] sm:$0xff]  }
 0x48b   :  { %v8215_v17 = vsel %vm2813_vm14, %v8162_v31, %v5507_v13  ;;  %v6854_v18 = vpop.eup %6853  ;;  %v5510_v14 = vadd.f32 -1.0, %v6852_v16 }
 0x48c   :  { %2910 = vst [vmem:[#allocation5 + $0x28] sm:$0xff] %v8215_v17  ;;  %v2928_v19 = vpack.c.bf16 %v8215_v17, %v8200_v61  ;;  %v6856_v11 = vpop.eup %6855 }
 0x48d   :  { %v3324_v20 = vld [vmem:[#allocation5] sm:$0xfc]  ;;  %v6858_v44 = vpop.eup %6857  ;;  %v8225_v31 = vsel %vm2816_vm15, %v8168_v30, %v5510_v14  ;;  %v5511_v52 = vadd.f32 -1.0, %v6856_v11 }
 0x48e   :  { %v2963_v1 = vld [vmem:[#allocation5] sm:$0xfe]  ;;  %2913 = vst [vmem:[#allocation5 + $0x40] sm:$0xff] %v8225_v31  ;;  %v3328_v24 = vpack.c.bf16 %v8206_v10, %v3324_v20  ;;  %v6860_v59 = vpop.eup %6859  ;;  %v4603_v11 = vpack.c.bf16 %v8225_v31, %v8206_v10 }
 0x48f   :  { %v8228_v21 = vpack.c.bf16 %v8206_v10, %v2963_v1  ;;  %v3749_v22 = vld [vmem:[#allocation5] sm:$0xf0]  ;;  %v3325_v23 = vld [vmem:[#allocation5 + $0x8] sm:$0xfc]  ;;  %v8236_v25 = vsel %vm2817_vm0, %v8172_v36, %v5511_v52  ;;  %v6862_v33 = vpop.eup %6861  ;;  %v5514_v34 = vadd.f32 -1.0, %v6860_v59 }
 0x490   :  { %v2964_v12 = vld [vmem:[#allocation5 + $0x8] sm:$0xfe]  ;;  %v3329_v28 = vpack.c.bf16 %v8215_v17, %v3325_v23  ;;  %2914 = vst [vmem:[#allocation5 + $0x48] sm:$0xff] %v8236_v25  ;;  %v3753_v37 = vpack.c.bf16 %v8206_v10, %v3749_v22  ;;  %v8246_v42 = vrot.slane %v3328_v24, 1  ;;  %v4175_v45 = vld [vmem:[#allocation5] sm:$0xc0]  ;;  %v4604_v29 = vpack.c.bf16 %v8236_v25, %v8215_v17 }
 0x491   :  { %v2968_v30 = vpack.c.bf16 %v8215_v17, %v2964_v12  ;;  %v3750_v32 = vld [vmem:[#allocation5 + $0x8] sm:$0xf0]  ;;  %v3007_v35 = vshll.u32 %v8228_v21, 16  ;;  %v6864_v41 = vpop.eup %6863  ;;  %v2900_v36 = vsel %vm2820_vm3, %v8180_v46, %v5514_v34  ;;  %v3005_v9 = vshrl.u32 %v8228_v21, 16  ;;  %v3524_v48 = vld [vmem:[#allocation5] sm:$0xf8] }
 0x492   :  { %v4176_v39 = vld [vmem:[#allocation5 + $0x8] sm:$0xc0]  ;;  %v3754_v43 = vpack.c.bf16 %v8215_v17, %v3750_v32  ;;  %2917 = vst [vmem:[#allocation5 + $0x60] sm:$0xff] %v2900_v36  ;;  %v5515_v49 = vadd.f32 -1.0, %v6864_v41  ;;  %v8250_v51 = vrot.slane %v3329_v28, 1  ;;  %v8252_v55 = vrot.slane %v3753_v37, 2 }
 0x493   :  { %v3019_v38 = vshll.u32 %v2968_v30, 16  ;;  %v3525_v40 = vld [vmem:[#allocation5 + $0x8] sm:$0xf8]  ;;  %v3017_v53 = vshrl.u32 %v2968_v30, 16  ;;  %v3009_v54 = vrot.slane %v3007_v35, 1  ;;  %v4180_v56 = vpack.c.bf16 %v8215_v17, %v4176_v39  ;;  %v6866_v57 = vpop.eup %6865 }
 0x494   :  { %v3529_v46 = vpack.c.bf16 %v8215_v17, %v3525_v40  ;;  %v2901_v58 = vsel %vm2821_vm4, %v8184_v50, %v5515_v49  ;;  %v4179_v47 = vpack.c.bf16 %v8206_v10, %v4175_v45  ;;  %v3528_v63 = vpack.c.bf16 %v8206_v10, %v3524_v48  ;;  %v3951_v2 = vld [vmem:[#allocation5 + $0x8] sm:$0xe0]  ;;  %v3950_v50 = vld [vmem:[#allocation5] sm:$0xe0] }
 0x495   :  { %v3021_v62 = vrot.slane %v3019_v38, 1  ;;  %2918 = vst [vmem:[#allocation5 + $0x68] sm:$0xff] %v2901_v58  ;;  %v8261_v3 = vrot.slane %v3754_v43, 2  ;;  %v8263_v6 = vrot.slane %v4180_v56, 3  ;;  %v8272_v13 = vpack.c.bf16 %v8215_v17, %v3951_v2  ;;  %v4377_v27 = vld [vmem:[#allocation5 + $0x8] sm:$0x80] }
 0x496   :  { %v3584_v4 = vshrl.u32 %v3529_v46, 16  ;;  %v3587_v5 = vshll.u32 %v3529_v46, 16  ;;  %v3567_v26 = vshrl.u32 %v3528_v63, 16  ;;  %v3570_v0 = vshll.u32 %v3528_v63, 16  ;;  %v4376_v20 = vld [vmem:[#allocation5] sm:$0x80] }
 0x497   :  { %v8274_v16 = vrot.slane %v4179_v47, 3  ;;  %v3022_v44 = vor.u32 %v3021_v62, %v3017_v53  ;;  %v3010_v21 = vor.u32 %v3009_v54, %v3005_v9  ;;  %v8285_v24 = vpack.c.bf16 %v8206_v10, %v3950_v50 }
 0x498   :  { %v8267_v7 = vrot.slane %v3584_v4, 1  ;;  %v8269_v8 = vrot.slane %v3587_v5, 2  ;;  %v8276_v18 = vrot.slane %v3567_v26, 1  ;;  %v8278_v14 = vrot.slane %v3570_v0, 2  ;;  %v6684_v0 = vld [vmem:[%s8842_s4 + $0x200] sm:$0xff]  }
 0x499   :  { %v3326_v1 = vld [vmem:[#allocation5 + $0x60] sm:$0x3]  ;;  %v8293_v34 = vpack.c.bf16 %v8215_v17, %v4377_v27  ;;  %v4010_v37 = vshrl.u32 %v8272_v13, 16  ;;  %v4013_v38 = vshll.u32 %v8272_v13, 16  ;;  %v8300_v39 = vpack.c.bf16 %v8206_v10, %v4376_v20  ;;  %v6765_v17 = vld [vmem:[%s8842_s4 + $0x2e0] sm:$0xff]   ;;  %v6783_v10 = vld [vmem:[%s8842_s4 + $0x3d0] sm:$0xff]  }
 0x49a   :  { %v2965_v52 = vld [vmem:[#allocation5 + $0x60] sm:$0x1]  ;;  %v3590_v23 = vor.u32 %v8269_v8, %v8267_v7  ;;  %v3330_v12 = vpack.c.bf16 %v3326_v1, %v8225_v31  ;;  %v3573_v35 = vor.u32 %v8278_v14, %v8276_v18  ;;  %v6697_v7 = vld [vmem:[%s8842_s4 + $0x58] sm:$0xff]  }
 0x49b   :  { %v3751_v22 = vld [vmem:[#allocation5 + $0x60] sm:$0xf]  ;;  %v8289_v59 = vpack.c.bf16 %v2965_v52, %v8225_v31 }
 0x49c   :  { %v3755_v28 = vpack.c.bf16 %v3751_v22, %v8225_v31  ;;  %v4177_v30 = vld [vmem:[#allocation5 + $0x60] sm:$0x3f]  ;;  %v3327_v40 = vld [vmem:[#allocation5 + $0x68] sm:$0x3]  ;;  %v8302_v41 = vrot.slane %v3330_v12, 1 }
 0x49d   :  { %v3526_v32 = vld [vmem:[#allocation5 + $0x60] sm:$0x7]  ;;  %v2966_v36 = vld [vmem:[#allocation5 + $0x68] sm:$0x1]  ;;  %v3012_v9 = vshll.u32 %v8289_v59, 16  ;;  %v4181_v43 = vpack.c.bf16 %v4177_v30, %v8225_v31  ;;  %v3331_v48 = vpack.c.bf16 %v3327_v40, %v8236_v25  ;;  %v3028_v5 = vshrl.u32 %v8289_v59, 16 }
 0x49e   :  { %v3952_v33 = vld [vmem:[#allocation5 + $0x60] sm:$0x1f]  ;;  %v3530_v45 = vpack.c.bf16 %v3526_v32, %v8225_v31  ;;  %v2970_v49 = vpack.c.bf16 %v2966_v36, %v8236_v25  ;;  %v3752_v53 = vld [vmem:[#allocation5 + $0x68] sm:$0xf]  ;;  %v8309_v54 = vrot.slane %v3755_v28, 2  ;;  %v3371_v57 = vsel %vm424_vm1, %v8246_v42, %v8302_v41 }
 0x49f   :  { %v4178_v56 = vld [vmem:[#allocation5 + $0x68] sm:$0x3f]  ;;  %v8312_v46 = vpack.c.bf16 %v3952_v33, %v8225_v31  ;;  %v3014_v58 = vrot.slane %v3012_v9, 1  ;;  %v3756_v62 = vpack.c.bf16 %v3752_v53, %v8236_v25  ;;  %v3373_v2 = vrot.slane %v3331_v48, 1  ;;  %v6687_v33 = vld [vmem:[%s8842_s4 + $0x248] sm:$0xff]  }
 0x4a0   :  { %v4182_v47 = vpack.c.bf16 %v4178_v56, %v8236_v25  ;;  %v3527_v63 = vld [vmem:[#allocation5 + $0x68] sm:$0x7]  ;;  %v3024_v4 = vshll.u32 %v2970_v49, 16  ;;  %v8323_v26 = vsel %vm3794_vm5, %v8252_v55, %v8309_v54  ;;  %v3031_v50 = vshrl.u32 %v2970_v49, 16 }
 0x4a1   :  { %v3015_v42 = vsel %vm322_vm2, %v3010_v21, %v3014_v58  ;;  %v8329_v13 = vrot.slane %v3756_v62, 2  ;;  %v3374_v20 = vsel %vm424_vm1, %v8250_v51, %v3373_v2  ;;  %v3531_v52 = vpack.c.bf16 %v3527_v63, %v8236_v25  ;;  %v3953_v55 = vld [vmem:[#allocation5 + $0x68] sm:$0x1f]  ;;  %v6686_v21 = vld [vmem:[%s8842_s4] sm:$0xff]  }
 0x4a2   :  { %v8331_v27 = vrot.slane %v4182_v47, 3  ;;  %v3026_v1 = vrot.slane %v3024_v4, 1  ;;  %v8336_v22 = vrot.slane %v4181_v43, 3  ;;  %3507 = vmatprep.mubr.bf16.mxu1 %v3374_v20  ;;  %v3575_v59 = vshrl.u32 %v3530_v45, 16  ;;  %v6691_v48 = vld [vmem:[%s8842_s4 + $0x250] sm:$0xff]  }
 0x4a3   :  { %v8344_v12 = vsel %vm3794_vm5, %v8261_v3, %v8329_v13  ;;  %v3578_v28 = vshll.u32 %v3530_v45, 16  ;;  %3508 = vmatmul.mubr.bf16.vlgmr.msra.gmra.mrb[24].mxu1 %v3371_v57  ;;  %v6689_v3 = vld [vmem:[%s8842_s4 + $0x48] sm:$0xff]   ;;  %v3592_v40 = vshrl.u32 %v3531_v52, 16  ;;  %v3595_v36 = vshll.u32 %v3531_v52, 16  ;;  %v6693_v4 = vld [vmem:[%s8842_s4 + $0x50] sm:$0xff]  }
 0x4a4   :  { %v8349_v51 = vsel %vm4220_vm6, %v8263_v6, %v8331_v27  ;;  %v3027_v30 = vsel %vm322_vm2, %v3022_v44, %v3026_v1  ;;  %v3033_v32 = vor.u32 %v3031_v50, %v3026_v1  ;;  %6082 = vmatpush3.bf16.msra.mxu1 %v6684_v0  ;;  %v6688_v6 = vld [vmem:[%s8842_s4 + $0x208] sm:$0xff]   ;;  %v8364_v44 = vsel %vm4220_vm6, %v8274_v16, %v8336_v22  ;;  %v4379_v50 = vld [vmem:[#allocation5 + $0x68] sm:$0x7f] }
 0x4a5   :  { %3166 = vmatprep.mubr.bf16.mxu0 %v3027_v30  ;;  %v3577_v9 = vrot.slane %v3575_v59, 1  ;;  %v3580_v43 = vrot.slane %v3578_v28, 2  ;;  %v3957_v45 = vpack.c.bf16 %v3953_v55, %v8236_v25  ;;  %3514 = vmatprep.mubr.bf16.mxu1 %v3373_v2  ;;  %v3594_v49 = vrot.slane %v3592_v40, 1  ;;  %v6690_v16 = vld [vmem:[%s8842_s4 + $0x8] sm:$0xff]   ;;  %v6694_v59 = vld [vmem:[%s8842_s4 + $0x10] sm:$0xff]   ;;  %v6696_v40 = vld [vmem:[%s8842_s4 + $0x218] sm:$0xff]  }
 0x4a6   :  { %3167 = vmatmul.mubr.bf16.vlgmr.msra.gmra.mrb[24].mxu0 %v3015_v42  ;;  %v3597_v53 = vrot.slane %v3595_v36, 2  ;;  %v4012_v56 = vrot.slane %v4010_v37, 2  ;;  %v4015_v57 = vrot.slane %v4013_v38, 3  ;;  %v3030_v62 = vor.u32 %v3028_v5, %v3014_v58  ;;  %6083 = vmatprep.subr.bf16.mxu1 %v6687_v33  ;;  %v6692_v58 = vld [vmem:[%s8842_s4 + $0x210] sm:$0xff]   ;;  %v4378_v55 = vld [vmem:[#allocation5 + $0x60] sm:$0x7f] }
 0x4a7   :  { %5998 = vmatpush3.bf16.msra.mxu0 %v6686_v21  ;;  %3173 = vmatprep.mubr.bf16.mxu0 %v3033_v32  ;;  %v8373_v47 = vor.u32 %v3580_v43, %v3577_v9  ;;  %v4018_v63 = vshrl.u32 %v3957_v45, 16  ;;  %v4021_v2 = vshll.u32 %v3957_v45, 16  ;;  %v3993_v38 = vshrl.u32 %v8285_v24, 16 }
 0x4a8   :  { %5999 = vmatprep.subr.bf16.mxu0 %v6689_v3  ;;  %v8378_v0 = vor.u32 %v3597_v53, %v3594_v49  ;;  %v4016_v37 = vor.u32 %v4015_v57, %v4012_v56  ;;  %v3996_v42 = vshll.u32 %v8285_v24, 16  ;;  %6084 = vmatpush3.bf16.msra.mxu1 %v6688_v6  ;;  %v4001_v52 = vshrl.u32 %v8312_v46, 16  ;;  %v6695_v24 = vld [vmem:[%s8842_s4 + $0x258] sm:$0xff]  }
 0x4a9   :  { %v8390_v5 = vsel %vm3565_vm7, %v3573_v35, %v8373_v47  ;;  %v4020_v20 = vrot.slane %v4018_v63, 2  ;;  %v4023_v1 = vrot.slane %v4021_v2, 3  ;;  %6085 = vmatprep.subr.bf16.mxu1 %v6691_v48  ;;  %v3995_v18 = vrot.slane %v3993_v38, 2  ;;  %v6698_v49 = vld [vmem:[%s8842_s4 + $0x18] sm:$0xff]   ;;  %v6700_v63 = vld [vmem:[%s8842_s4 + $0x220] sm:$0xff]  }
 0x4aa   :  { %v8401_v21 = vsel %vm3565_vm7, %v3590_v23, %v8378_v0  ;;  %v3998_v14 = vrot.slane %v3996_v42, 3  ;;  %v4004_v35 = vshll.u32 %v8312_v46, 16  ;;  %v4003_v30 = vrot.slane %v4001_v52, 2  ;;  %v6703_v42 = vld [vmem:[%s8842_s4 + $0x268] sm:$0xff]  }
 0x4ab   :  { %6000 = vmatpush3.bf16.msra.mxu0 %v6690_v16  ;;  %v8407_v28 = vor.u32 %v4023_v1, %v4020_v20  ;;  %v4383_v32 = vpack.c.bf16 %v4379_v50, %v8236_v25  ;;  %v4436_v33 = vshrl.u32 %v8293_v34, 16  ;;  %3515 = vmatmul.mubr.bf16.gmra.mrb[28].mxu1 %v8302_v41  ;;  %v4439_v46 = vshll.u32 %v8293_v34, 16  ;;  %v6699_v34 = vld [vmem:[%s8842_s4 + $0x260] sm:$0xff]   ;;  %v6705_v52 = vld [vmem:[%s8842_s4 + $0x68] sm:$0xff]  }
 0x4ac   :  { %6001 = vmatprep.subr.bf16.mxu0 %v6693_v4  ;;  %v3999_v8 = vor.u32 %v3998_v14, %v3995_v18  ;;  %v4006_v23 = vrot.slane %v4004_v35, 3  ;;  %v4382_v3 = vpack.c.bf16 %v4378_v55, %v8225_v31  ;;  %6086 = vmatpush3.bf16.msra.mxu1 %v6692_v58  ;;  %v4419_v45 = vshrl.u32 %v8300_v39, 16  ;;  %v6702_v50 = vld [vmem:[%s8842_s4 + $0x20] sm:$0xff]   ;;  %v6704_v55 = vld [vmem:[%s8842_s4 + $0x228] sm:$0xff]   ;;  %v6707_v18 = vld [vmem:[%s8842_s4 + $0x270] sm:$0xff]  }
 0x4ad   :  { %3933 = vmatprep.mubr.bf16.mxu1 %v8344_v12  ;;  %v8423_v41 = vsel %vm3991_vm8, %v4016_v37, %v8407_v28  ;;  %v4438_v36 = vrot.slane %v4436_v33, 3  ;;  %v4444_v6 = vshrl.u32 %v4383_v32, 16  ;;  %v4447_v9 = vshll.u32 %v4383_v32, 16  ;;  %6087 = vmatprep.subr.bf16.mxu1 %v6695_v24  ;;  %v6706_v14 = vld [vmem:[%s8842_s4 + $0x28] sm:$0xff]   ;;  %v6709_v35 = vld [vmem:[%s8842_s4 + $0x70] sm:$0xff]   ;;  %v6713_v33 = vld [vmem:[%s8842_s4 + $0x78] sm:$0xff]  }
 0x4ae   :  { %3174 = vmatmul.mubr.bf16.gmra.mrb[28].mxu0 %v3030_v62  ;;  %v8428_v43 = vor.u32 %v4006_v23, %v4003_v30  ;;  %v4441_v12 = vrot.slane %v4439_v46, 4  ;;  %v4422_v48 = vshll.u32 %v8300_v39, 16  ;;  %v4427_v57 = vshrl.u32 %v4382_v3, 16  ;;  %v6701_v62 = vld [vmem:[%s8842_s4 + $0x60] sm:$0xff]   ;;  %v6711_v30 = vld [vmem:[%s8842_s4 + $0x278] sm:$0xff]   ;;  %v6710_v32 = vld [vmem:[%s8842_s4 + $0x30] sm:$0xff]  }
 0x4af   :  { %6002 = vmatpush3.bf16.msra.mxu0 %v6694_v59  ;;  %3309 = vmatprep.mubr.bf16.mxu0 %v2928_v19  ;;  %v4446_v53 = vrot.slane %v4444_v6, 3  ;;  %v4449_v56 = vrot.slane %v4447_v9, 4  ;;  %v4430_v16 = vshll.u32 %v4382_v3, 16  ;;  %vm4417_vm1 = vsmask.f32 4352  ;;  %v6708_v59 = vld [vmem:[%s8842_s4 + $0x230] sm:$0xff]  }
 0x4b0   :  { %6003 = vmatprep.subr.bf16.mxu0 %v6697_v7  ;;  %v8443_v39 = vsel %vm3991_vm8, %v3999_v8, %v8428_v43  ;;  %v4421_v61 = vrot.slane %v4419_v45, 3  ;;  %v4424_v19 = vrot.slane %v4422_v48, 4  ;;  %6088 = vmatpush3.bf16.msra.mxu1 %v6696_v40  ;;  %v4442_v2 = vor.u32 %v4441_v12, %v4438_v36  ;;  %v6712_v7 = vld [vmem:[%s8842_s4 + $0x238] sm:$0xff]   ;;  %v6715_v8 = vld [vmem:[%s8842_s4 + $0x340] sm:$0xff]   ;;  %v6719_v40 = vld [vmem:[%s8842_s4 + $0x348] sm:$0xff]  }
 0x4b1   :  { %v8448_v4 = vor.u32 %v4449_v56, %v4446_v53  ;;  %v4429_v37 = vrot.slane %v4427_v57, 3  ;;  %v4432_v38 = vrot.slane %v4430_v16, 4  ;;  %6089 = vmatprep.subr.bf16.mxu1 %v6699_v34  ;;  %v6714_v23 = vld [vmem:[%s8842_s4 + $0x38] sm:$0xff]   ;;  %v6717_v46 = vld [vmem:[%s8842_s4 + $0x1c0] sm:$0xff]   ;;  %v6721_v6 = vld [vmem:[%s8842_s4 + $0x1c8] sm:$0xff]   ;;  %v2930_v9 = vpack.c.bf16 %v8236_v25, %v8236_v25 }
 0x4b2   :  { %v4425_v20 = vor.u32 %v4424_v19, %v4421_v61  ;;  %v6716_v3 = vld [vmem:[%s8842_s4 + $0x300] sm:$0xff]   ;;  %v6720_v34 = vld [vmem:[%s8842_s4 + $0x308] sm:$0xff]   ;;  %v6725_v12 = vld [vmem:[%s8842_s4 + $0x1d0] sm:$0xff]   ;;  %v2929_v48 = vpack.c.bf16 %v8225_v31, %v8225_v31 }
 0x4b3   :  { %6004 = vmatpush3.bf16.msra.mxu0 %v6698_v49  ;;  %v8458_v58 = vsel %vm4417_vm1, %v4442_v2, %v8448_v4  ;;  %v8460_v1 = vor.u32 %v4432_v38, %v4429_v37  ;;  %v6718_v36 = vld [vmem:[%s8842_s4 + $0x180] sm:$0xff]   ;;  %v6726_v45 = vld [vmem:[%s8842_s4 + $0x190] sm:$0xff]   ;;  %v6729_v49 = vld [vmem:[%s8842_s4 + $0x1d8] sm:$0xff]  }
 0x4b4   :  { %6005 = vmatprep.subr.bf16.mxu0 %v6701_v62  ;;  %6090 = vmatpush3.bf16.msra.mxu1 %v6700_v63  ;;  %v6728_v53 = vld [vmem:[%s8842_s4 + $0x318] sm:$0xff]   ;;  %v6732_v57 = vld [vmem:[%s8842_s4 + $0x320] sm:$0xff]   ;;  %v6735_v16 = vld [vmem:[%s8842_s4 + $0x368] sm:$0xff]  }
 0x4b5   :  { %v8470_v24 = vsel %vm4417_vm1, %v4425_v20, %v8460_v1  ;;  %6091 = vmatprep.subr.bf16.mxu1 %v6703_v42  ;;  %v6730_v56 = vld [vmem:[%s8842_s4 + $0x198] sm:$0xff]   ;;  %v6737_v62 = vld [vmem:[%s8842_s4 + $0x1e8] sm:$0xff]   ;;  %v6739_v19 = vld [vmem:[%s8842_s4 + $0x370] sm:$0xff]  }
 0x4b6   :  { %v6736_v61 = vld [vmem:[%s8842_s4 + $0x328] sm:$0xff]   ;;  %v6741_v2 = vld [vmem:[%s8842_s4 + $0x1f0] sm:$0xff]   ;;  %v6743_v38 = vld [vmem:[%s8842_s4 + $0x378] sm:$0xff]  }
 0x4b7   :  { %6006 = vmatpush3.bf16.msra.mxu0 %v6702_v50  ;;  %v6738_v63 = vld [vmem:[%s8842_s4 + $0x1a8] sm:$0xff]   ;;  %v6740_v37 = vld [vmem:[%s8842_s4 + $0x330] sm:$0xff]   ;;  %v6745_v50 = vld [vmem:[%s8842_s4 + $0x1f8] sm:$0xff]  }
 0x4b8   :  { %6007 = vmatprep.subr.bf16.mxu0 %v6705_v52  ;;  %6092 = vmatpush3.bf16.msra.mxu1 %v6704_v55  ;;  %v6742_v42 = vld [vmem:[%s8842_s4 + $0x1b0] sm:$0xff]   ;;  %v6744_v20 = vld [vmem:[%s8842_s4 + $0x338] sm:$0xff]   ;;  %v6747_v52 = vld [vmem:[%s8842_s4 + $0x440] sm:$0xff]  }
 0x4b9   :  { %6093 = vmatprep.subr.bf16.mxu1 %v6707_v18  ;;  %v6746_v55 = vld [vmem:[%s8842_s4 + $0x1b8] sm:$0xff]   ;;  %v6749_v18 = vld [vmem:[%s8842_s4 + $0x2c0] sm:$0xff]  }
 0x4ba   :  { %v6764_v25 = vld [vmem:[%s8842_s4 + $0x420] sm:$0xff]  }
 0x4bb   :  { %6008 = vmatpush3.bf16.msra.mxu0 %v6706_v14  ;;  %v6748_v14 = vld [vmem:[%s8842_s4 + $0x400] sm:$0xff]  }
 0x4bc   :  { %6009 = vmatprep.subr.bf16.mxu0 %v6709_v35  ;;  %6094 = vmatpush3.bf16.msra.mxu1 %v6708_v59  ;;  %v6751_v35 = vld [vmem:[%s8842_s4 + $0x448] sm:$0xff]   ;;  %v6750_v59 = vld [vmem:[%s8842_s4 + $0x280] sm:$0xff]  }
 0x4bd   :  { %6095 = vmatprep.subr.bf16.mxu1 %v6711_v30  ;;  %v6753_v30 = vld [vmem:[%s8842_s4 + $0x2c8] sm:$0xff]  }
 0x4bf   :  { %6010 = vmatpush3.bf16.msra.mxu0 %v6710_v32  ;;  %v6752_v32 = vld [vmem:[%s8842_s4 + $0x408] sm:$0xff]  }
 0x4c0   :  { %6011 = vmatprep.subr.bf16.mxu0 %v6713_v33  ;;  %6096 = vmatpush3.bf16.msra.mxu1 %v6712_v7  ;;  %v6755_v33 = vld [vmem:[%s8842_s4 + $0x450] sm:$0xff]  }
 0x4c1   :  { %6137 = vmatprep.subr.bf16.mxu1 %v6715_v8  ;;  %v6758_v7 = vld [vmem:[%s8842_s4 + $0x290] sm:$0xff]   ;;  %v6761_v8 = vld [vmem:[%s8842_s4 + $0x2d8] sm:$0xff]  }
 0x4c3   :  { %6012 = vmatpush3.bf16.msra.mxu0 %v6714_v23  ;;  %3934 = vmatmul.mubr.bf16.vlgmr.msra.gmra.mrb[32].mxu1 %v8323_v26  ;;  %v6723_v26 = vld [vmem:[%s8842_s4 + $0x350] sm:$0xff]   ;;  %v6760_v23 = vld [vmem:[%s8842_s4 + $0x418] sm:$0xff]  }
 0x4c4   :  { %6053 = vmatprep.subr.bf16.mxu0 %v6717_v46  ;;  %3940 = vmatprep.mubr.bf16.mxu1 %v8329_v13  ;;  %v6722_v13 = vld [vmem:[%s8842_s4 + $0x188] sm:$0xff]   ;;  %v6762_v46 = vld [vmem:[%s8842_s4 + $0x298] sm:$0xff]  }
 0x4c5   :  { %6138 = vmatpush3.bf16.msra.mxu1 %v6716_v3  ;;  %v6768_v3 = vld [vmem:[%s8842_s4 + $0x428] sm:$0xff]  }
 0x4c6   :  { %3310 = vmatmul.mubr.bf16.vlgmr.msra.gmra.mrb[32].mxu0 %v2927_v15  ;;  %6139 = vmatprep.subr.bf16.mxu1 %v6719_v40  ;;  %v6727_v15 = vld [vmem:[%s8842_s4 + $0x358] sm:$0xff]   ;;  %v6771_v40 = vld [vmem:[%s8842_s4 + $0x470] sm:$0xff]  }
 0x4c7   :  { %3316 = vmatprep.mubr.bf16.mxu0 %v2930_v9  ;;  %6054 = vmatpush3.bf16.msra.mxu0 %v6718_v36  ;;  %v6770_v36 = vld [vmem:[%s8842_s4 + $0x2a8] sm:$0xff]   ;;  %v6772_v9 = vld [vmem:[%s8842_s4 + $0x430] sm:$0xff]  }
 0x4c8   :  { %6055 = vmatprep.subr.bf16.mxu0 %v6721_v6  ;;  %v6773_v6 = vld [vmem:[%s8842_s4 + $0x2f0] sm:$0xff]  }
 0x4c9   :  { %6140 = vmatpush3.bf16.msra.mxu1 %v6720_v34  ;;  %v6775_v34 = vld [vmem:[%s8842_s4 + $0x478] sm:$0xff]  }
 0x4ca   :  { %6141 = vmatprep.subr.bf16.mxu1 %v6723_v26  ;;  %v6774_v26 = vld [vmem:[%s8842_s4 + $0x2b0] sm:$0xff]  }
 0x4cb   :  { %6056 = vmatpush3.bf16.msra.mxu0 %v6722_v13  ;;  %3941 = vmatmul.mubr.bf16.gmra.mrb[36].mxu1 %v8309_v54  ;;  %v6731_v54 = vld [vmem:[%s8842_s4 + $0x360] sm:$0xff]   ;;  %v6777_v13 = vld [vmem:[%s8842_s4 + $0x2f8] sm:$0xff]  }
 0x4cc   :  { %6057 = vmatprep.subr.bf16.mxu0 %v6725_v12  ;;  %4359 = vmatprep.mubr.bf16.mxu1 %v8349_v51  ;;  %v6733_v51 = vld [vmem:[%s8842_s4 + $0x1e0] sm:$0xff]   ;;  %v6776_v12 = vld [vmem:[%s8842_s4 + $0x438] sm:$0xff]  }
 0x4cd   :  { %6142 = vmatpush3.bf16.msra.mxu1 %v6724_v60  ;;  %v6778_v60 = vld [vmem:[%s8842_s4 + $0x2b8] sm:$0xff]  }
 0x4ce   :  { %3317 = vmatmul.mubr.bf16.gmra.mrb[36].mxu0 %v2929_v48  ;;  %6143 = vmatprep.subr.bf16.mxu1 %v6727_v15  ;;  %v4602_v15 = vld [vmem:[#allocation5 + $0x68] sm:$0xff] }
 0x4cf   :  { %6058 = vmatpush3.bf16.msra.mxu0 %v6726_v45  ;;  %3732 = vmatprep.mubr.bf16.mxu0 %v8401_v21  ;;  %v6734_v21 = vld [vmem:[%s8842_s4 + $0x1a0] sm:$0xff]   ;;  %v4606_v48 = vpack.c.bf16 %v4602_v15, %v4602_v15 }
 0x4d0   :  { %6059 = vmatprep.subr.bf16.mxu0 %v6729_v49  ;;  %v6779_v45 = vld [vmem:[%s8842_s4 + $0x3c0] sm:$0xff]  }
 0x4d1   :  { %6144 = vmatpush3.bf16.msra.mxu1 %v6728_v53  ;;  %v6780_v49 = vld [vmem:[%s8842_s4 + $0x380] sm:$0xff]   ;;  %v6781_v53 = vld [vmem:[%s8842_s4 + $0x3c8] sm:$0xff]  }
 0x4d2   :  { %6145 = vmatprep.subr.bf16.mxu1 %v6731_v54  ;;  %v6782_v54 = vld [vmem:[%s8842_s4 + $0x388] sm:$0xff]  }
 0x4d3   :  { %6060 = vmatpush3.bf16.msra.mxu0 %v6730_v56  ;;  %v8730_v56 = vld [vmem:[#allocation5 + $0x60] sm:$0xff] }
 0x4d4   :  { %6061 = vmatprep.subr.bf16.mxu0 %v6733_v51  ;;  %v4605_v31 = vpack.c.bf16 %v8730_v56, %v8730_v56  ;;  %v6787_v51 = vld [vmem:[%s8842_s4 + $0x3e0] sm:$0xff]  }
 0x4d5   :  { %6146 = vmatpush3.bf16.msra.mxu1 %v6732_v57  ;;  %v6788_v57 = vld [vmem:[%s8842_s4 + $0x3a0] sm:$0xff]  }
 0x4d6   :  { %6147 = vmatprep.subr.bf16.mxu1 %v6735_v16  ;;  %v6791_v16 = vld [vmem:[%s8842_s4 + $0x3f0] sm:$0xff]  }
 0x4d7   :  { %6062 = vmatpush3.bf16.msra.mxu0 %v6734_v21  ;;  %v6792_v21 = vld [vmem:[%s8842_s4 + $0x3b0] sm:$0xff]  }
 0x4d8   :  { %6063 = vmatprep.subr.bf16.mxu0 %v6737_v62  ;;  %v4788_v62 = vld [vmem:[#allocation5 + $0x48] sm:$0xff] }
 0x4d9   :  { %6148 = vmatpush3.bf16.msra.mxu1 %v6736_v61  ;;  %v6793_v61 = vld [vmem:[%s8842_s4 + $0x3f8] sm:$0xff]  }
 0x4da   :  { %6149 = vmatprep.subr.bf16.mxu1 %v6739_v19  ;;  %v4786_v19 = vld [vmem:[#allocation5 + $0x28] sm:$0xfe] }
 0x4db   :  { %6064 = vmatpush3.bf16.msra.mxu0 %v6738_v63  ;;  %v4794_v63 = vpack.c.bf16 %v4788_v62, %v4786_v19 }
 0x4dc   :  { %6065 = vmatprep.subr.bf16.mxu0 %v6741_v2  ;;  %v6794_v2 = vld [vmem:[%s8842_s4 + $0x3b8] sm:$0xff]  }
 0x4dd   :  { %6150 = vmatpush3.bf16.msra.mxu1 %v6740_v37  ;;  %v4792_v37 = vld [vmem:[#allocation5 + $0x88] sm:$0x1] }
 0x4de   :  { %6151 = vmatprep.subr.bf16.mxu1 %v6743_v38  ;;  %v6795_v38 = vld [vmem:[%s8842_s4 + $0x4c0] sm:$0xff]  }
 0x4df   :  { %6066 = vmatpush3.bf16.msra.mxu0 %v6742_v42  ;;  %v4796_v42 = vpack.c.bf16 %v4792_v37, %v4602_v15 }
 0x4e0   :  { %6067 = vmatprep.subr.bf16.mxu0 %v6745_v50  ;;  %v4845_v50 = vshll.u32 %v4794_v63, 16 }
 0x4e1   :  { %6152 = vmatpush3.bf16.msra.mxu1 %v6744_v20  ;;  %v6796_v20 = vld [vmem:[%s8842_s4 + $0x480] sm:$0xff]  }
 0x4e2   :  { %6193 = vmatprep.subr.bf16.mxu1 %v6747_v52  ;;  %v6797_v52 = vld [vmem:[%s8842_s4 + $0x4c8] sm:$0xff]  }
 0x4e3   :  { %6068 = vmatpush3.bf16.msra.mxu0 %v6746_v55  ;;  %v4847_v55 = vrot.slane %v4845_v50, 1 }
 0x4e4   :  { %4360 = vmatmul.mubr.bf16.vlgmr.msra.gmra.mrb[40].mxu1 %v8364_v44  ;;  %6109 = vmatprep.subr.bf16.mxu0 %v6749_v18  ;;  %v6754_v44 = vld [vmem:[%s8842_s4 + $0x288] sm:$0xff]   ;;  %v4850_v18 = vshll.u32 %v4796_v42, 16 }
 0x4e5   :  { %4366 = vmatprep.mubr.bf16.mxu1 %v8331_v27  ;;  %6194 = vmatpush3.bf16.msra.mxu1 %v6748_v14  ;;  %v6757_v27 = vld [vmem:[%s8842_s4 + $0x2d0] sm:$0xff]   ;;  %v6798_v14 = vld [vmem:[%s8842_s4 + $0x488] sm:$0xff]  }
 0x4e6   :  { %3733 = vmatmul.mubr.bf16.vlgmr.msra.gmra.mrb[40].mxu0 %v8390_v5  ;;  %6195 = vmatprep.subr.bf16.mxu1 %v6751_v35  ;;  %v6756_v5 = vld [vmem:[%s8842_s4 + $0x410] sm:$0xff]  }
 0x4e7   :  { %3739 = vmatprep.mubr.bf16.mxu0 %v8378_v0  ;;  %6110 = vmatpush3.bf16.msra.mxu0 %v6750_v59  ;;  %v6759_v0 = vld [vmem:[%s8842_s4 + $0x458] sm:$0xff]   ;;  %v6799_v35 = vld [vmem:[%s8842_s4 + $0x4d0] sm:$0xff]   ;;  %v4843_v59 = vshrl.u32 %v4794_v63, 16 }
 0x4e8   :  { %6111 = vmatprep.subr.bf16.mxu0 %v6753_v30 }
 0x4e9   :  { %6196 = vmatpush3.bf16.msra.mxu1 %v6752_v32  ;;  %v4848_v30 = vor.u32 %v4847_v55, %v4843_v59  ;;  %v4852_v32 = vrot.slane %v4850_v18, 1 }
 0x4ea   :  { %6197 = vmatprep.subr.bf16.mxu1 %v6755_v33 }
 0x4eb   :  { %6112 = vmatpush3.bf16.msra.mxu0 %v6754_v44  ;;  %v4853_v33 = vsel %vm322_vm2, %v4848_v30, %v4852_v32  ;;  %v6802_v44 = vld [vmem:[%s8842_s4 + $0x498] sm:$0xff]  }
 0x4ec   :  { %4367 = vmatmul.mubr.bf16.gmra.mrb[44].mxu1 %v8336_v22  ;;  %6113 = vmatprep.subr.bf16.mxu0 %v6757_v27  ;;  %v6763_v22 = vld [vmem:[%s8842_s4 + $0x460] sm:$0xff]  }
 0x4ed   :  { %6198 = vmatpush3.bf16.msra.mxu1 %v6756_v5  ;;  %4768 = vmatprep.mubr.bf16.mxu1 %v4604_v29  ;;  %v6767_v29 = vld [vmem:[%s8842_s4 + $0x468] sm:$0xff]   ;;  %v6803_v27 = vld [vmem:[%s8842_s4 + $0x4e0] sm:$0xff]  }
 0x4ee   :  { %3740 = vmatmul.mubr.bf16.gmra.mrb[44].mxu0 %v8373_v47  ;;  %6199 = vmatprep.subr.bf16.mxu1 %v6759_v0  ;;  %v6766_v47 = vld [vmem:[%s8842_s4 + $0x2a0] sm:$0xff]   ;;  %v4787_v5 = vld [vmem:[#allocation5 + $0x40] sm:$0xff] }
 0x4ef   :  { %6114 = vmatpush3.bf16.msra.mxu0 %v6758_v7  ;;  %4158 = vmatprep.mubr.bf16.mxu0 %v8423_v41  ;;  %v6769_v41 = vld [vmem:[%s8842_s4 + $0x2e8] sm:$0xff]   ;;  %v6804_v0 = vld [vmem:[%s8842_s4 + $0x4a0] sm:$0xff]  }
 0x4f0   :  { %6115 = vmatprep.subr.bf16.mxu0 %v6761_v8  ;;  %v4785_v7 = vld [vmem:[#allocation5 + $0x20] sm:$0xfe] }
 0x4f1   :  { %6200 = vmatpush3.bf16.msra.mxu1 %v6760_v23  ;;  %v4793_v8 = vpack.c.bf16 %v4787_v5, %v4785_v7  ;;  %v4791_v23 = vld [vmem:[#allocation5 + $0x80] sm:$0x1] }
 0x4f2   :  { %6201 = vmatprep.subr.bf16.mxu1 %v6763_v22  ;;  %v6806_v22 = vld [vmem:[%s8842_s4 + $0x4a8] sm:$0xff]  }
 0x4f3   :  { %6116 = vmatpush3.bf16.msra.mxu0 %v6762_v46  ;;  %v6807_v46 = vld [vmem:[%s8842_s4 + $0x4f0] sm:$0xff]  }
 0x4f4   :  { %6117 = vmatprep.subr.bf16.mxu0 %v6765_v17  ;;  %v4795_v17 = vpack.c.bf16 %v4791_v23, %v8730_v56 }
 0x4f5   :  { %6202 = vmatpush3.bf16.msra.mxu1 %v6764_v25  ;;  %v4833_v25 = vshll.u32 %v4793_v8, 16 }
 0x4f6   :  { %6203 = vmatprep.subr.bf16.mxu1 %v6767_v29  ;;  %v6808_v29 = vld [vmem:[%s8842_s4 + $0x4b0] sm:$0xff]  }
 0x4f7   :  { %6118 = vmatpush3.bf16.msra.mxu0 %v6766_v47  ;;  %v6809_v47 = vld [vmem:[%s8842_s4 + $0x4f8] sm:$0xff]  }
 0x4f8   :  { %6119 = vmatprep.subr.bf16.mxu0 %v6769_v41  ;;  %v4835_v41 = vrot.slane %v4833_v25, 1 }
 0x4f9   :  { %6204 = vmatpush3.bf16.msra.mxu1 %v6768_v3  ;;  %v4838_v3 = vshll.u32 %v4795_v17, 16 }
 0x4fa   :  { %6205 = vmatprep.subr.bf16.mxu1 %v6771_v40  ;;  %v6810_v40 = vld [vmem:[%s8842_s4 + $0x4b8] sm:$0xff]  }
 0x4fb   :  { %6120 = vmatpush3.bf16.msra.mxu0 %v6770_v36  ;;  %v4831_v36 = vshrl.u32 %v4793_v8, 16 }
 0x4fc   :  { %6121 = vmatprep.subr.bf16.mxu0 %v6773_v6 }
 0x4fd   :  { %6206 = vmatpush3.bf16.msra.mxu1 %v6772_v9  ;;  %v4836_v6 = vor.u32 %v4835_v41, %v4831_v36  ;;  %v4840_v9 = vrot.slane %v4838_v3, 1 }
 0x4fe   :  { %6207 = vmatprep.subr.bf16.mxu1 %v6775_v34  ;;  %v4857_v34 = vshrl.u32 %v4796_v42, 16 }
 0x4ff   :  { %6122 = vmatpush3.bf16.msra.mxu0 %v6774_v26  ;;  %v4841_v26 = vsel %vm322_vm2, %v4836_v6, %v4840_v9 }
 0x500   :  { %6123 = vmatprep.subr.bf16.mxu0 %v6777_v13  ;;  %v4859_v13 = vor.u32 %v4857_v34, %v4852_v32 }
 0x501   :  { %6208 = vmatpush3.bf16.msra.mxu1 %v6776_v12  ;;  %v4854_v12 = vshrl.u32 %v4795_v17, 16 }
 0x503   :  { %6124 = vmatpush3.bf16.msra.mxu0 %v6778_v60  ;;  %v4856_v60 = vor.u32 %v4854_v12, %v4840_v9 }
 0x504   :  { %4769 = vmatmul.mubr.bf16.vlgmr.msra.gmra.mrb[48].mxu1 %v4603_v11  ;;  %6165 = vmatprep.subr.bf16.mxu0 %v6779_v45  ;;  %v6784_v11 = vld [vmem:[%s8842_s4 + $0x390] sm:$0xff]  }
 0x505   :  { %4775 = vmatprep.mubr.bf16.mxu1 %v4606_v48 }
 0x506   :  { %4159 = vmatmul.mubr.bf16.vlgmr.msra.gmra.mrb[48].mxu0 %v8443_v39  ;;  %v6786_v39 = vld [vmem:[%s8842_s4 + $0x398] sm:$0xff]  }
 0x507   :  { %4165 = vmatprep.mubr.bf16.mxu0 %v8407_v28  ;;  %6166 = vmatpush3.bf16.msra.mxu0 %v6780_v49  ;;  %v6785_v28 = vld [vmem:[%s8842_s4 + $0x3d8] sm:$0xff]  }
 0x508   :  { %6167 = vmatprep.subr.bf16.mxu0 %v6781_v53 }
 0x50b   :  { %6168 = vmatpush3.bf16.msra.mxu0 %v6782_v54 }
 0x50c   :  { %4776 = vmatmul.mubr.bf16.gmra.mrb[52].mxu1 %v4605_v31  ;;  %6169 = vmatprep.subr.bf16.mxu0 %v6783_v10 }
 0x50e   :  { %4166 = vmatmul.mubr.bf16.gmra.mrb[52].mxu0 %v8428_v43  ;;  %v6789_v43 = vld [vmem:[%s8842_s4 + $0x3e8] sm:$0xff]  }
 0x50f   :  { %6170 = vmatpush3.bf16.msra.mxu0 %v6784_v11  ;;  %4584 = vmatprep.mubr.bf16.mxu0 %v8458_v58  ;;  %v6790_v58 = vld [vmem:[%s8842_s4 + $0x3a8] sm:$0xff]  }
 0x510   :  { %6171 = vmatprep.subr.bf16.mxu0 %v6785_v28 }
 0x513   :  { %6172 = vmatpush3.bf16.msra.mxu0 %v6786_v39 }
 0x514   :  { %6173 = vmatprep.subr.bf16.mxu0 %v6787_v51 }
 0x517   :  { %6174 = vmatpush3.bf16.msra.mxu0 %v6788_v57 }
 0x518   :  { %6175 = vmatprep.subr.bf16.mxu0 %v6789_v43 }
 0x51b   :  { %6176 = vmatpush3.bf16.msra.mxu0 %v6790_v58 }
 0x51c   :  { %6177 = vmatprep.subr.bf16.mxu0 %v6791_v16 }
 0x51f   :  { %6178 = vmatpush3.bf16.msra.mxu0 %v6792_v21 }
 0x520   :  { %6179 = vmatprep.subr.bf16.mxu0 %v6793_v61 }
 0x523   :  { %6180 = vmatpush3.bf16.msra.mxu0 %v6794_v2 }
 0x524   :  { %6221 = vmatprep.subr.bf16.mxu0 %v6795_v38 }
 0x526   :  { %4585 = vmatmul.mubr.bf16.vlgmr.msra.gmra.mrb[56].mxu0 %v8470_v24  ;;  %v6800_v24 = vld [vmem:[%s8842_s4 + $0x490] sm:$0xff]  }
 0x527   :  { %4591 = vmatprep.mubr.bf16.mxu0 %v8448_v4  ;;  %6222 = vmatpush3.bf16.msra.mxu0 %v6796_v20  ;;  %v6801_v4 = vld [vmem:[%s8842_s4 + $0x4d8] sm:$0xff]  }
 0x528   :  { %6223 = vmatprep.subr.bf16.mxu0 %v6797_v52 }
 0x52b   :  { %6224 = vmatpush3.bf16.msra.mxu0 %v6798_v14 }
 0x52c   :  { %6225 = vmatprep.subr.bf16.mxu0 %v6799_v35 }
 0x52e   :  { %4592 = vmatmul.mubr.bf16.gmra.mrb[60].mxu0 %v8460_v1  ;;  %v6805_v1 = vld [vmem:[%s8842_s4 + $0x4e8] sm:$0xff]   ;;  %s6930_s4 = smov [#allocation9]  }
 0x52f   :  { %6226 = vmatpush3.bf16.msra.mxu0 %v6800_v24  ;;  %4992 = vmatprep.mubr.bf16.mxu0 %v4853_v33  ;;  %s5043_s5 = sshll.u32 %s6930_s4, 4  ;;  %s5044_s5 = int_to_ptr.vmem [resolvable:$true] %s5043_s5 }
 0x530   :  { %6227 = vmatprep.subr.bf16.mxu0 %v6801_v4  ;;  %s6893_s9 = scalar_lea.vmem %s5044_s5, 32  ;;  %p6898_p9 = scmp.lt.s32.totalorder %s5044_s5, %s5044_s5 }
 0x531   :  { %p6894_p8 = scmp.ne.s32.totalorder %s5044_s5, %s6893_s9  ;;  %p6899_p10 = scmp.lt.s32.totalorder %s6893_s9, %s6893_s9 }
 0x533   :  { %6228 = vmatpush3.bf16.msra.mxu0 %v6802_v44  ;;  %p6900_p11 = por %p6899_p10, %p6898_p9 }
 0x534   :  { %6229 = vmatprep.subr.bf16.mxu0 %v6803_v27 }
 0x535   :  { %p6901_p12 = pnand %p6900_p11, %p6894_p8 }
 0x537   :  { %6230 = vmatpush3.bf16.msra.mxu0 %v6804_v0 }
 0x538   :  { %6231 = vmatprep.subr.bf16.mxu0 %v6805_v1 }
 0x53b   :  { %6232 = vmatpush3.bf16.msra.mxu0 %v6806_v22 }
 0x53c   :  { %6233 = vmatprep.subr.bf16.mxu0 %v6807_v46 }
 0x53f   :  { %6234 = vmatpush3.bf16.msra.mxu0 %v6808_v29 }
 0x540   :  { %6235 = vmatprep.subr.bf16.mxu0 %v6809_v47 }
 0x543   :  { %6236 = vmatpush3.bf16.msra.mxu0 %v6810_v40 }
 0x546   :  { %4993 = vmatmul.mubr.bf16.vlgmr.msra.gmra.mrb[64].mxu0 %v4841_v26 }
 0x547   :  { %4999 = vmatprep.mubr.bf16.mxu0 %v4859_v13 }
 0x54e   :  { %5000 = vmatmul.mubr.bf16.gmra.mrb[68].mxu0 %v4856_v60 }
 0x576   :  { %v6041_v15 = vpop.f32.mrb[24].mxu1 }
 0x577   :  { %v6042_v45 = vpop.f32.mrb[25].mxu1 }
 0x578   :  { %v6043_v48 = vadd.f32 %v6042_v45, %v6041_v15  ;;  %v6044_v53 = vpop.f32.mrb[26].mxu1 }
 0x579   :  { %v5985_v49 = vpop.f32.mrb[24].mxu0  ;;  %v6045_v56 = vpop.f32.mrb[27].mxu1 }
 0x57a   :  { %v5986_v54 = vpop.f32.mrb[25].mxu0 }
 0x57b   :  { %v5987_v10 = vadd.f32 %v5986_v54, %v5985_v49  ;;  %v5988_v31 = vpop.f32.mrb[26].mxu0 }
 0x57c   :  { %v5989_v11 = vpop.f32.mrb[27].mxu0 }
 0x57e   :  { %v6047_v28 = vpop.f32.mrb[28].mxu1 }
 0x57f   :  { %v6048_v39 = vpop.f32.mrb[29].mxu1 }
 0x580   :  { %v6049_v51 = vadd.f32 %v6048_v39, %v6047_v28  ;;  %v6050_v43 = vpop.f32.mrb[30].mxu1 }
 0x581   :  { %v5991_v57 = vpop.f32.mrb[28].mxu0  ;;  %v6051_v16 = vpop.f32.mrb[31].mxu1 }
 0x582   :  { %v5992_v58 = vpop.f32.mrb[29].mxu0 }
 0x583   :  { %v5993_v21 = vadd.f32 %v5992_v58, %v5991_v57  ;;  %v5994_v62 = vpop.f32.mrb[30].mxu0 }
 0x584   :  { %v5995_v61 = vpop.f32.mrb[31].mxu0 }
 0x596   :  { %v6097_v19 = vpop.f32.mrb[32].mxu1 }
 0x597   :  { %v6098_v63 = vpop.f32.mrb[33].mxu1 }
 0x598   :  { %v6099_v2 = vadd.f32 %v6098_v63, %v6097_v19  ;;  %v6100_v38 = vpop.f32.mrb[34].mxu1 }
 0x599   :  { %v6013_v37 = vpop.f32.mrb[32].mxu0  ;;  %v6101_v50 = vpop.f32.mrb[35].mxu1 }
 0x59a   :  { %v6014_v42 = vpop.f32.mrb[33].mxu0 }
 0x59b   :  { %v6015_v20 = vadd.f32 %v6014_v42, %v6013_v37  ;;  %v6016_v52 = vpop.f32.mrb[34].mxu0 }
 0x59c   :  { %v6017_v55 = vpop.f32.mrb[35].mxu0 }
 0x59d   :  { %v3312_v18 = vadd.f32 %v6015_v20, %v5987_v10 }
 0x59e   :  { %v6103_v14 = vpop.f32.mrb[36].mxu1 }
 0x59f   :  { %v3522_v35 = vadd.f32 %v6043_v48, %v3312_v18  ;;  %v6104_v59 = vpop.f32.mrb[37].mxu1 }
 0x5a0   :  { %v6105_v30 = vadd.f32 %v6104_v59, %v6103_v14  ;;  %v6106_v24 = vpop.f32.mrb[38].mxu1 }
 0x5a1   :  { %v6019_v32 = vpop.f32.mrb[36].mxu0  ;;  %v6107_v33 = vpop.f32.mrb[39].mxu1 }
 0x5a2   :  { %v6020_v4 = vpop.f32.mrb[37].mxu0 }
 0x5a3   :  { %v6021_v44 = vadd.f32 %v6020_v4, %v6019_v32  ;;  %v6022_v27 = vpop.f32.mrb[38].mxu0 }
 0x5a4   :  { %v6023_v5 = vpop.f32.mrb[39].mxu0 }
 0x5a5   :  { %v3319_v0 = vadd.f32 %v6021_v44, %v5993_v21 }
 0x5a7   :  { %v3523_v1 = vadd.f32 %v6049_v51, %v3319_v0 }
 0x5b7   :  { %v6153_v7 = vpop.f32.mrb[40].mxu1 }
 0x5b8   :  { %v6154_v8 = vpop.f32.mrb[41].mxu1 }
 0x5b9   :  { %v6155_v23 = vadd.f32 %v6154_v8, %v6153_v7  ;;  %v6069_v22 = vpop.f32.mrb[40].mxu0  ;;  %v6156_v46 = vpop.f32.mrb[42].mxu1 }
 0x5ba   :  { %v6070_v17 = vpop.f32.mrb[41].mxu0  ;;  %v6157_v25 = vpop.f32.mrb[43].mxu1 }
 0x5bb   :  { %v6071_v29 = vadd.f32 %v6070_v17, %v6069_v22  ;;  %v6072_v47 = vpop.f32.mrb[42].mxu0 }
 0x5bc   :  { %v6073_v41 = vpop.f32.mrb[43].mxu0 }
 0x5bd   :  { %v3747_v3 = vadd.f32 %v6071_v29, %v3522_v35 }
 0x5bf   :  { %v6159_v40 = vpop.f32.mrb[44].mxu1  ;;  %v3948_v36 = vadd.f32 %v6099_v2, %v3747_v3 }
 0x5c0   :  { %v6160_v6 = vpop.f32.mrb[45].mxu1 }
 0x5c1   :  { %v6161_v9 = vadd.f32 %v6160_v6, %v6159_v40  ;;  %v6075_v34 = vpop.f32.mrb[44].mxu0  ;;  %v6162_v26 = vpop.f32.mrb[46].mxu1 }
 0x5c2   :  { %v6076_v13 = vpop.f32.mrb[45].mxu0  ;;  %v6163_v12 = vpop.f32.mrb[47].mxu1 }
 0x5c3   :  { %v6077_v60 = vadd.f32 %v6076_v13, %v6075_v34  ;;  %v6078_v15 = vpop.f32.mrb[46].mxu0 }
 0x5c4   :  { %v6079_v45 = vpop.f32.mrb[47].mxu0 }
 0x5c5   :  { %v3748_v48 = vadd.f32 %v6077_v60, %v3523_v1 }
 0x5c7   :  { %v3949_v49 = vadd.f32 %v6105_v30, %v3748_v48 }
 0x5d7   :  { %v6209_v53 = vpop.f32.mrb[48].mxu1 }
 0x5d8   :  { %v6210_v54 = vpop.f32.mrb[49].mxu1 }
 0x5d9   :  { %v6211_v56 = vadd.f32 %v6210_v54, %v6209_v53  ;;  %v6125_v10 = vpop.f32.mrb[48].mxu0  ;;  %v6212_v31 = vpop.f32.mrb[50].mxu1 }
 0x5da   :  { %v6126_v11 = vpop.f32.mrb[49].mxu0  ;;  %v6213_v28 = vpop.f32.mrb[51].mxu1 }
 0x5db   :  { %v6127_v39 = vadd.f32 %v6126_v11, %v6125_v10  ;;  %v6128_v51 = vpop.f32.mrb[50].mxu0 }
 0x5dc   :  { %v6129_v57 = vpop.f32.mrb[51].mxu0 }
 0x5dd   :  { %v4173_v43 = vadd.f32 %v6127_v39, %v3948_v36 }
 0x5df   :  { %v6215_v58 = vpop.f32.mrb[52].mxu1  ;;  %v4374_v16 = vadd.f32 %v6155_v23, %v4173_v43  ;;  %v5966_v23 = vld [vmem:[#allocation6 + $0x7] ss:$0 sm:$0xff] }
 0x5e0   :  { %v6216_v21 = vpop.f32.mrb[53].mxu1 }
 0x5e1   :  { %v6217_v62 = vadd.f32 %v6216_v21, %v6215_v58  ;;  %v6131_v61 = vpop.f32.mrb[52].mxu0  ;;  %v6218_v19 = vpop.f32.mrb[54].mxu1 }
 0x5e2   :  { %v6132_v63 = vpop.f32.mrb[53].mxu0  ;;  %v6219_v2 = vpop.f32.mrb[55].mxu1 }
 0x5e3   :  { %v6133_v37 = vadd.f32 %v6132_v63, %v6131_v61  ;;  %v6134_v38 = vpop.f32.mrb[54].mxu0 }
 0x5e4   :  { %v6135_v42 = vpop.f32.mrb[55].mxu0 }
 0x5e5   :  { %v4174_v50 = vadd.f32 %v6133_v37, %v3949_v49 }
 0x5e7   :  { %v4375_v20 = vadd.f32 %v6161_v9, %v4174_v50 }
 0x5f9   :  { %v6181_v52 = vpop.f32.mrb[56].mxu0 }
 0x5fa   :  { %v6182_v55 = vpop.f32.mrb[57].mxu0 }
 0x5fb   :  { %v6183_v18 = vadd.f32 %v6182_v55, %v6181_v52  ;;  %v6184_v14 = vpop.f32.mrb[58].mxu0 }
 0x5fc   :  { %v6185_v35 = vpop.f32.mrb[59].mxu0 }
 0x5fd   :  { %v4599_v59 = vadd.f32 %v6183_v18, %v4374_v16 }
 0x5ff   :  { %v4783_v30 = vadd.f32 %v6211_v56, %v4599_v59 }
 0x601   :  { %v6187_v32 = vpop.f32.mrb[60].mxu0 }
 0x602   :  { %v6188_v24 = vpop.f32.mrb[61].mxu0 }
 0x603   :  { %v6189_v4 = vadd.f32 %v6188_v24, %v6187_v32  ;;  %v6190_v33 = vpop.f32.mrb[62].mxu0 }
 0x604   :  { %v6191_v44 = vpop.f32.mrb[63].mxu0 }
 0x605   :  { %v4600_v27 = vadd.f32 %v6189_v4, %v4375_v20 }
 0x607   :  { %v4784_v5 = vadd.f32 %v6217_v62, %v4600_v27 }
 0x619   :  { %v6237_v0 = vpop.f32.mrb[64].mxu0 }
 0x61a   :  { %v6238_v1 = vpop.f32.mrb[65].mxu0 }
 0x61b   :  { %v6239_v7 = vadd.f32 %v6238_v1, %v6237_v0  ;;  %v6240_v8 = vpop.f32.mrb[66].mxu0 }
 0x61c   :  { %v6241_v22 = vpop.f32.mrb[67].mxu0 }
 0x61d   :  { %v5007_v46 = vadd.f32 %v6239_v7, %v4783_v30 }
 0x61f   :  { %v5016_v17 = vadd.f32 %v5966_v23, %v5007_v46 }
 0x621   :  { %v6243_v25 = vpop.f32.mrb[68].mxu0  ;;  %v5020_v47 = vmin.f32 %v5016_v17, 0.0  ;;  %vm5018_vm10 = vcmp.gt.f32.partialorder %v5016_v17, 0.0 }
 0x622   :  { %v6244_v29 = vpop.f32.mrb[69].mxu0 }
 0x623   :  { %v6245_v41 = vadd.f32 %v6244_v29, %v6243_v25  ;;  %v6246_v3 = vpop.f32.mrb[70].mxu0  ;;  %v5022_v6 = vmul.f32 1.442695, %v5020_v47 }
 0x624   :  { %v6247_v40 = vpop.f32.mrb[71].mxu0 }
 0x625   :  { %v5008_v36 = vadd.f32 %v6245_v41, %v4784_v5  ;;  %6867 = vpow2.f32 %v5022_v6 }
 0x627   :  { %v5017_v9 = vadd.f32 %v5966_v23, %v5008_v36 }
 0x629   :  { %v5021_v34 = vmin.f32 %v5017_v9, 0.0  ;;  %vm5019_vm2 = vcmp.gt.f32.partialorder %v5017_v9, 0.0 }
 0x62b   :  { %v5024_v26 = vmul.f32 1.442695, %v5021_v34 }
 0x62d   :  { %6869 = vpow2.f32 %v5024_v26 }
 0x62f   :  { %v6868_v13 = vpop.eup %6867 }
 0x630   :  { %v5967_v15 = vadd.f32 -1.0, %v6868_v13 }
 0x632   :  { %v5028_v49 = vsel %vm5018_vm10, %v5016_v17, %v5967_v15 }
 0x637   :  { %v6870_v12 = vpop.eup %6869 }
 0x638   :  { %v5968_v60 = vadd.f32 -1.0, %v6870_v12 }
 0x63a   :  { %v5029_v45 = vsel %vm5019_vm2, %v5017_v9, %v5968_v60 }
 0x63b   :  { %v5031_v48 = vrot.slane %v5029_v45, 7 }
 0x63d   :  { %v5034_v53 = vsel %vm5033_vm9, %v5028_v49, %v5031_v48 }
 0x63e   :  { %5036 = vst.msk [vmem:[#allocation9] sm:$0x3] %vm5035_vm11, %v5034_v53 }
 0x63f   :  { %6904 = shalt.err (!%p6901_p12)
}
 0x640   :  { %s6905_s8 = scalar_lea.hbm %s8844_s6, 32 }
 0x641   :  { %p6906_p13 = scmp.ne.s32.totalorder %s8844_s6, %s6905_s8  ;;  %p6909_p0 = scmp.lt.u32.totalorder %s6905_s8, %s8844_s6 }
 0x643   :  { %p6911_p1 = pnand %p6909_p0, %p6906_p13 }
 0x645   :  { %6914 = shalt.err (!%p6911_p1)
}
 0x646   :  { %5046 = dma.vmem_to_hbm [thread:$0]  %s5044_s5, 32, %s8844_s6, [#allocation8]  }
 0x647   :  { %6917 = dma.done.wait [#allocation8], 32  }
 0x648   :  { %6918 = vsyncadd [#allocation8], 4294967264 }
 0x649   :  { %5050 = vsyncpa [#allocation7], 1 }
 0x64a   :  { %5051 = vsyncpa [#allocation8], 1 }

</bundles_post_ra>
